<compile_context>
chip_gen: v5e
topology: v5e:2x2
jax: 0.10.0
libtpu: 0.0.40
codegen_flags: <defaults>
</compile_context>

<pallas_src>
import functools

import jax
import jax.numpy as jnp
from jax import lax
from jax.experimental import pallas as pl
from jax.experimental.pallas import tpu as pltpu


# ---------------------------------------------------------------------------
# Kernel 1/2: conv2d (valid, stride 1 on a pre-padded input) + bias + tanh
#             + 2x2 average pool, all inside one pallas_call.
#
#   x_ref : (Cin, F)   bf16, F = N*Hp*Wp, flat index p = n*Hp*Wp + h*Wp + w
#   w_ref : (Cout, Cin*KH*KW) bf16, column index (ki*KW + kj)*Cin + ci
#   b_ref : (Cout, 1)  f32
#   o_ref : (Cout, N*OHo*OWo) f32, column index n*OHo*OWo + r*OWo + c
#   cols_ref : scratch (Cin*KH*KW, L) f32   (in-VMEM patch matrix)
#   hv_ref   : scratch (Cout, L - Wp - 1) f32 (2x2 window sums)
# ---------------------------------------------------------------------------
def _conv_tanh_pool_kernel(x_ref, w_ref, b_ref, o_ref, cols_ref, hv_ref, *,
                           n_batch, cin, cout, hp, wp, kh, kw):
    oh, ow = hp - kh + 1, wp - kw + 1
    oho, owo = oh // 2, ow // 2
    f = n_batch * hp * wp
    l = f - (kh - 1) * wp - (kw - 1)          # number of candidate window starts
    lhv = l - wp - 1                          # valid length of 2x2 sums
    owm = 2 * owo - 1                         # row-segment length used for pooling

    # ---- in-kernel "im2col": KH*KW lane-shifted copies of the flat image ----
    for ki in range(kh):
        for kj in range(kw):
            k = ki * kw + kj
            off = ki * wp + kj
            cols_ref[k * cin:(k + 1) * cin, :] = (
                x_ref[:, off:off + l].astype(jnp.float32))

    # ---- one MXU matmul: (Cout, Cin*KH*KW) @ (Cin*KH*KW, L) -> (Cout, L) ----
    y = jnp.dot(w_ref[...], cols_ref[...].astype(jnp.bfloat16),
                preferred_element_type=jnp.float32)
    act = jnp.tanh(y + b_ref[...])            # (Cout, L) f32; bias + tanh in f32

    # ---- 2x2 window sums on the VPU (3 adds); stride-2 subsample comes next --
    hv_ref[...] = (act[:, 0:lhv] + act[:, 1:lhv + 1]
                   + act[:, wp:lhv + wp] + act[:, wp + 1:lhv + wp + 1])

    # Tiny constant selection matrix: sel[2c, c] = 0.25 (the averaging factor).
    rows_i = lax.broadcasted_iota(jnp.int32, (owm, owo), 0)
    cols_i = lax.broadcasted_iota(jnp.int32, (owm, owo), 1)
    sel = jnp.where(rows_i == 2 * cols_i, 0.25, 0.0).astype(jnp.float32)

    # ---- pooled output rows: pick row 2r of every image, subsample columns ---
    for n in range(n_batch):
        for r in range(oho):
            b0 = n * hp * wp + 2 * r * wp
            seg = hv_ref[:, b0:b0 + owm]                       # (Cout, OWm) f32
            pooled = jnp.dot(seg, sel, preferred_element_type=jnp.float32)
            o0 = n * oho * owo + r * owo
            o_ref[:, o0:o0 + owo] = pooled                     # (Cout, OWo)


def conv_tanh_pool(x_flat, w_mat, b_col, *, n_batch, cin, cout, hp, wp, kh, kw):
    oh, ow = hp - kh + 1, wp - kw + 1
    oho, owo = oh // 2, ow // 2
    f = n_batch * hp * wp
    l = f - (kh - 1) * wp - (kw - 1)
    lhv = l - wp - 1

    kern = functools.partial(_conv_tanh_pool_kernel, n_batch=n_batch, cin=cin,
                             cout=cout, hp=hp, wp=wp, kh=kh, kw=kw)
    return pl.pallas_call(
        kern,
        out_shape=jax.ShapeDtypeStruct((cout, n_batch * oho * owo), jnp.float32),
        in_specs=[pl.BlockSpec(memory_space=pltpu.MemorySpace.VMEM)] * 3,
        out_specs=pl.BlockSpec(memory_space=pltpu.MemorySpace.VMEM),
        scratch_shapes=[
            pltpu.VMEM((cin * kh * kw, l), jnp.float32),
            pltpu.VMEM((cout, lhv), jnp.float32),
        ],
    )(x_flat, w_mat, b_col)


# ---------------------------------------------------------------------------
# Kernel 3: fused fc1 + tanh + fc2 + tanh + fc3.  All weights stay in VMEM and
# the (N,120)/(N,84) intermediates never leave the kernel.
# ---------------------------------------------------------------------------
def _fc_stack_kernel(x_ref, w1_ref, b1_ref, w2_ref, b2_ref, w3_ref, b3_ref,
                     o_ref):
    h0 = x_ref[...]                                            # (N, 400) bf16
    z1 = jnp.dot(h0, w1_ref[...], preferred_element_type=jnp.float32) + b1_ref[...]
    h1 = jnp.tanh(z1).astype(jnp.bfloat16)                     # (N, 120)
    z2 = jnp.dot(h1, w2_ref[...], preferred_element_type=jnp.float32) + b2_ref[...]
    h2 = jnp.tanh(z2).astype(jnp.bfloat16)                     # (N, 84)
    o_ref[...] = (jnp.dot(h2, w3_ref[...], preferred_element_type=jnp.float32)
                  + b3_ref[...])                               # (N, 10) f32


def fc_stack(x, w1, b1, w2, b2, w3, b3):
    n = x.shape[0]
    return pl.pallas_call(
        _fc_stack_kernel,
        out_shape=jax.ShapeDtypeStruct((n, w3.shape[1]), jnp.float32),
        in_specs=[pl.BlockSpec(memory_space=pltpu.MemorySpace.VMEM)] * 7,
        out_specs=pl.BlockSpec(memory_space=pltpu.MemorySpace.VMEM),
    )(x, w1, b1, w2, b2, w3, b3)


# ---------------------------------------------------------------------------
# Parameters (PyTorch-style init) and forward pass
# ---------------------------------------------------------------------------
def init_params(key):
    def uniform(k, shape, fan_in):
        bound = 1.0 / (fan_in ** 0.5)
        return jax.random.uniform(k, shape, jnp.float32, -bound, bound)

    ks = jax.random.split(key, 10)
    return {
        "w1": uniform(ks[0], (6, 1, 5, 5), 1 * 5 * 5),
        "b1": uniform(ks[1], (6,), 1 * 5 * 5),
        "w2": uniform(ks[2], (16, 6, 5, 5), 6 * 5 * 5),
        "b2": uniform(ks[3], (16,), 6 * 5 * 5),
        "fc1_w": uniform(ks[4], (120, 400), 400),
        "fc1_b": uniform(ks[5], (120,), 400),
        "fc2_w": uniform(ks[6], (84, 120), 120),
        "fc2_b": uniform(ks[7], (84,), 120),
        "fc3_w": uniform(ks[8], (10, 84), 84),
        "fc3_b": uniform(ks[9], (10,), 84),
    }


def lenet5_forward(params, x):
    # x: (N, 1, 28, 28) NCHW, f32
    n = x.shape[0]

    # ---- conv1 (pad=2) + tanh + pool -------------------------------------
    xp = jnp.pad(x, ((0, 0), (0, 0), (2, 2), (2, 2)))          # (N, 1, 32, 32)
    x1 = xp.transpose(1, 0, 2, 3).reshape(1, n * 32 * 32).astype(jnp.bfloat16)
    w1 = params["w1"].transpose(0, 2, 3, 1).reshape(6, 25).astype(jnp.bfloat16)
    b1 = params["b1"].reshape(6, 1).astype(jnp.float32)
    y1 = conv_tanh_pool(x1, w1, b1, n_batch=n, cin=1, cout=6,
                        hp=32, wp=32, kh=5, kw=5)              # (6, N*14*14)

    # y1 is already in conv2's expected (Cin, N*H*W) flat layout: no glue.
    w2 = params["w2"].transpose(0, 2, 3, 1).reshape(16, 150).astype(jnp.bfloat16)
    b2 = params["b2"].reshape(16, 1).astype(jnp.float32)
    y2 = conv_tanh_pool(y1.astype(jnp.bfloat16), w2, b2, n_batch=n, cin=6,
                        cout=16, hp=14, wp=14, kh=5, kw=5)     # (16, N*5*5)

    # ---- flatten exactly like torch's .view(-1, 16*5*5): (N, C*H*W) -------
    fc_in = (y2.reshape(16, n, 25).transpose(1, 0, 2)
               .reshape(n, 400).astype(jnp.bfloat16))

    # ---- fused fc1/fc2/fc3 -------------------------------------------------
    return fc_stack(
        fc_in,
        params["fc1_w"].T.astype(jnp.bfloat16),
        params["fc1_b"].reshape(1, 120).astype(jnp.float32),
        params["fc2_w"].T.astype(jnp.bfloat16),
        params["fc2_b"].reshape(1, 84).astype(jnp.float32),
        params["fc3_w"].T.astype(jnp.bfloat16),
        params["fc3_b"].reshape(1, 10).astype(jnp.float32),
    )


if __name__ == "__main__":
    key = jax.random.PRNGKey(0)
    pkey, xkey = jax.random.split(key)
    params = init_params(pkey)
    # LeNet-5 expects 28x28 single-channel inputs (padding=2 on conv1); batch=2.
    x = jax.random.normal(xkey, (2, 1, 28, 28), dtype=jnp.float32)

    out = jax.jit(lenet5_forward)(params, x)
    out = jax.block_until_ready(out)

    assert out.shape == (2, 10), out.shape
    assert bool(jnp.all(jnp.isfinite(out)))
    print("KERNEL_OK")
</pallas_src>

<mosaic_0001>
module attributes {stable_mosaic.version = 11 : i64} {
  func.func @_conv_tanh_pool_kernel(%arg0: memref<6x392xbf16, #tpu.memory_space<vmem>>, %arg1: memref<16x150xbf16, #tpu.memory_space<vmem>>, %arg2: memref<16x1xf32, #tpu.memory_space<vmem>>, %arg3: memref<16x50xf32, #tpu.memory_space<vmem>>, %arg4: memref<150x332xf32, #tpu.memory_space<vmem>>, %arg5: memref<16x317xf32, #tpu.memory_space<vmem>>) attributes {dimension_semantics = [], scalar_prefetch = 0 : i64, scratch_operands = 2 : i64, tpu.core_type = #tpu.core_type<tc>} {
    %c0 = arith.constant 0 : index
    %c0_0 = arith.constant 0 : index
    %0 = vector.load %arg0[%c0, %c0_0] : memref<6x392xbf16, #tpu.memory_space<vmem>>, vector<6x332xbf16>
    %1 = arith.extf %0 : vector<6x332xbf16> to vector<6x332xf32>
    %c0_1 = arith.constant 0 : index
    %c0_2 = arith.constant 0 : index
    %2 = vector.load %arg4[%c0_1, %c0_2] : memref<150x332xf32, #tpu.memory_space<vmem>>, vector<6x332xf32>
    tpu.vector_store %arg4[%c0_1, %c0_2], %1 {strides = array<i32>} : memref<150x332xf32, #tpu.memory_space<vmem>>, vector<6x332xf32>,
    %c0_3 = arith.constant 0 : index
    %c1 = arith.constant 1 : index
    %3 = vector.load %arg0[%c0_3, %c1] : memref<6x392xbf16, #tpu.memory_space<vmem>>, vector<6x332xbf16>
    %4 = arith.extf %3 : vector<6x332xbf16> to vector<6x332xf32>
    %c6 = arith.constant 6 : index
    %c0_4 = arith.constant 0 : index
    %5 = vector.load %arg4[%c6, %c0_4] : memref<150x332xf32, #tpu.memory_space<vmem>>, vector<6x332xf32>
    tpu.vector_store %arg4[%c6, %c0_4], %4 {strides = array<i32>} : memref<150x332xf32, #tpu.memory_space<vmem>>, vector<6x332xf32>,
    %c0_5 = arith.constant 0 : index
    %c2 = arith.constant 2 : index
    %6 = vector.load %arg0[%c0_5, %c2] : memref<6x392xbf16, #tpu.memory_space<vmem>>, vector<6x332xbf16>
    %7 = arith.extf %6 : vector<6x332xbf16> to vector<6x332xf32>
    %c12 = arith.constant 12 : index
    %c0_6 = arith.constant 0 : index
    %8 = vector.load %arg4[%c12, %c0_6] : memref<150x332xf32, #tpu.memory_space<vmem>>, vector<6x332xf32>
    tpu.vector_store %arg4[%c12, %c0_6], %7 {strides = array<i32>} : memref<150x332xf32, #tpu.memory_space<vmem>>, vector<6x332xf32>,
    %c0_7 = arith.constant 0 : index
    %c3 = arith.constant 3 : index
    %9 = vector.load %arg0[%c0_7, %c3] : memref<6x392xbf16, #tpu.memory_space<vmem>>, vector<6x332xbf16>
    %10 = arith.extf %9 : vector<6x332xbf16> to vector<6x332xf32>
    %c18 = arith.constant 18 : index
    %c0_8 = arith.constant 0 : index
    %11 = vector.load %arg4[%c18, %c0_8] : memref<150x332xf32, #tpu.memory_space<vmem>>, vector<6x332xf32>
    tpu.vector_store %arg4[%c18, %c0_8], %10 {strides = array<i32>} : memref<150x332xf32, #tpu.memory_space<vmem>>, vector<6x332xf32>,
    %c0_9 = arith.constant 0 : index
    %c4 = arith.constant 4 : index
    %12 = vector.load %arg0[%c0_9, %c4] : memref<6x392xbf16, #tpu.memory_space<vmem>>, vector<6x332xbf16>
    %13 = arith.extf %12 : vector<6x332xbf16> to vector<6x332xf32>
    %c24 = arith.constant 24 : index
    %c0_10 = arith.constant 0 : index
    %14 = vector.load %arg4[%c24, %c0_10] : memref<150x332xf32, #tpu.memory_space<vmem>>, vector<6x332xf32>
    tpu.vector_store %arg4[%c24, %c0_10], %13 {strides = array<i32>} : memref<150x332xf32, #tpu.memory_space<vmem>>, vector<6x332xf32>,
    %c0_11 = arith.constant 0 : index
    %c14 = arith.constant 14 : index
    %15 = vector.load %arg0[%c0_11, %c14] : memref<6x392xbf16, #tpu.memory_space<vmem>>, vector<6x332xbf16>
    %16 = arith.extf %15 : vector<6x332xbf16> to vector<6x332xf32>
    %c30 = arith.constant 30 : index
    %c0_12 = arith.constant 0 : index
    %17 = vector.load %arg4[%c30, %c0_12] : memref<150x332xf32, #tpu.memory_space<vmem>>, vector<6x332xf32>
    tpu.vector_store %arg4[%c30, %c0_12], %16 {strides = array<i32>} : memref<150x332xf32, #tpu.memory_space<vmem>>, vector<6x332xf32>,
    %c0_13 = arith.constant 0 : index
    %c15 = arith.constant 15 : index
    %18 = vector.load %arg0[%c0_13, %c15] : memref<6x392xbf16, #tpu.memory_space<vmem>>, vector<6x332xbf16>
    %19 = arith.extf %18 : vector<6x332xbf16> to vector<6x332xf32>
    %c36 = arith.constant 36 : index
    %c0_14 = arith.constant 0 : index
    %20 = vector.load %arg4[%c36, %c0_14] : memref<150x332xf32, #tpu.memory_space<vmem>>, vector<6x332xf32>
    tpu.vector_store %arg4[%c36, %c0_14], %19 {strides = array<i32>} : memref<150x332xf32, #tpu.memory_space<vmem>>, vector<6x332xf32>,
    %c0_15 = arith.constant 0 : index
    %c16 = arith.constant 16 : index
    %21 = vector.load %arg0[%c0_15, %c16] : memref<6x392xbf16, #tpu.memory_space<vmem>>, vector<6x332xbf16>
    %22 = arith.extf %21 : vector<6x332xbf16> to vector<6x332xf32>
    %c42 = arith.constant 42 : index
    %c0_16 = arith.constant 0 : index
    %23 = vector.load %arg4[%c42, %c0_16] : memref<150x332xf32, #tpu.memory_space<vmem>>, vector<6x332xf32>
    tpu.vector_store %arg4[%c42, %c0_16], %22 {strides = array<i32>} : memref<150x332xf32, #tpu.memory_space<vmem>>, vector<6x332xf32>,
    %c0_17 = arith.constant 0 : index
    %c17 = arith.constant 17 : index
    %24 = vector.load %arg0[%c0_17, %c17] : memref<6x392xbf16, #tpu.memory_space<vmem>>, vector<6x332xbf16>
    %25 = arith.extf %24 : vector<6x332xbf16> to vector<6x332xf32>
    %c48 = arith.constant 48 : index
    %c0_18 = arith.constant 0 : index
    %26 = vector.load %arg4[%c48, %c0_18] : memref<150x332xf32, #tpu.memory_space<vmem>>, vector<6x332xf32>
    tpu.vector_store %arg4[%c48, %c0_18], %25 {strides = array<i32>} : memref<150x332xf32, #tpu.memory_space<vmem>>, vector<6x332xf32>,
    %c0_19 = arith.constant 0 : index
    %c18_20 = arith.constant 18 : index
    %27 = vector.load %arg0[%c0_19, %c18_20] : memref<6x392xbf16, #tpu.memory_space<vmem>>, vector<6x332xbf16>
    %28 = arith.extf %27 : vector<6x332xbf16> to vector<6x332xf32>
    %c54 = arith.constant 54 : index
    %c0_21 = arith.constant 0 : index
    %29 = vector.load %arg4[%c54, %c0_21] : memref<150x332xf32, #tpu.memory_space<vmem>>, vector<6x332xf32>
    tpu.vector_store %arg4[%c54, %c0_21], %28 {strides = array<i32>} : memref<150x332xf32, #tpu.memory_space<vmem>>, vector<6x332xf32>,
    %c0_22 = arith.constant 0 : index
    %c28 = arith.constant 28 : index
    %30 = vector.load %arg0[%c0_22, %c28] : memref<6x392xbf16, #tpu.memory_space<vmem>>, vector<6x332xbf16>
    %31 = arith.extf %30 : vector<6x332xbf16> to vector<6x332xf32>
    %c60 = arith.constant 60 : index
    %c0_23 = arith.constant 0 : index
    %32 = vector.load %arg4[%c60, %c0_23] : memref<150x332xf32, #tpu.memory_space<vmem>>, vector<6x332xf32>
    tpu.vector_store %arg4[%c60, %c0_23], %31 {strides = array<i32>} : memref<150x332xf32, #tpu.memory_space<vmem>>, vector<6x332xf32>,
    %c0_24 = arith.constant 0 : index
    %c29 = arith.constant 29 : index
    %33 = vector.load %arg0[%c0_24, %c29] : memref<6x392xbf16, #tpu.memory_space<vmem>>, vector<6x332xbf16>
    %34 = arith.extf %33 : vector<6x332xbf16> to vector<6x332xf32>
    %c66 = arith.constant 66 : index
    %c0_25 = arith.constant 0 : index
    %35 = vector.load %arg4[%c66, %c0_25] : memref<150x332xf32, #tpu.memory_space<vmem>>, vector<6x332xf32>
    tpu.vector_store %arg4[%c66, %c0_25], %34 {strides = array<i32>} : memref<150x332xf32, #tpu.memory_space<vmem>>, vector<6x332xf32>,
    %c0_26 = arith.constant 0 : index
    %c30_27 = arith.constant 30 : index
    %36 = vector.load %arg0[%c0_26, %c30_27] : memref<6x392xbf16, #tpu.memory_space<vmem>>, vector<6x332xbf16>
    %37 = arith.extf %36 : vector<6x332xbf16> to vector<6x332xf32>
    %c72 = arith.constant 72 : index
    %c0_28 = arith.constant 0 : index
    %38 = vector.load %arg4[%c72, %c0_28] : memref<150x332xf32, #tpu.memory_space<vmem>>, vector<6x332xf32>
    tpu.vector_store %arg4[%c72, %c0_28], %37 {strides = array<i32>} : memref<150x332xf32, #tpu.memory_space<vmem>>, vector<6x332xf32>,
    %c0_29 = arith.constant 0 : index
    %c31 = arith.constant 31 : index
    %39 = vector.load %arg0[%c0_29, %c31] : memref<6x392xbf16, #tpu.memory_space<vmem>>, vector<6x332xbf16>
    %40 = arith.extf %39 : vector<6x332xbf16> to vector<6x332xf32>
    %c78 = arith.constant 78 : index
    %c0_30 = arith.constant 0 : index
    %41 = vector.load %arg4[%c78, %c0_30] : memref<150x332xf32, #tpu.memory_space<vmem>>, vector<6x332xf32>
    tpu.vector_store %arg4[%c78, %c0_30], %40 {strides = array<i32>} : memref<150x332xf32, #tpu.memory_space<vmem>>, vector<6x332xf32>,
    %c0_31 = arith.constant 0 : index
    %c32 = arith.constant 32 : index
    %42 = vector.load %arg0[%c0_31, %c32] : memref<6x392xbf16, #tpu.memory_space<vmem>>, vector<6x332xbf16>
    %43 = arith.extf %42 : vector<6x332xbf16> to vector<6x332xf32>
    %c84 = arith.constant 84 : index
    %c0_32 = arith.constant 0 : index
    %44 = vector.load %arg4[%c84, %c0_32] : memref<150x332xf32, #tpu.memory_space<vmem>>, vector<6x332xf32>
    tpu.vector_store %arg4[%c84, %c0_32], %43 {strides = array<i32>} : memref<150x332xf32, #tpu.memory_space<vmem>>, vector<6x332xf32>,
    %c0_33 = arith.constant 0 : index
    %c42_34 = arith.constant 42 : index
    %45 = vector.load %arg0[%c0_33, %c42_34] : memref<6x392xbf16, #tpu.memory_space<vmem>>, vector<6x332xbf16>
    %46 = arith.extf %45 : vector<6x332xbf16> to vector<6x332xf32>
    %c90 = arith.constant 90 : index
    %c0_35 = arith.constant 0 : index
    %47 = vector.load %arg4[%c90, %c0_35] : memref<150x332xf32, #tpu.memory_space<vmem>>, vector<6x332xf32>
    tpu.vector_store %arg4[%c90, %c0_35], %46 {strides = array<i32>} : memref<150x332xf32, #tpu.memory_space<vmem>>, vector<6x332xf32>,
    %c0_36 = arith.constant 0 : index
    %c43 = arith.constant 43 : index
    %48 = vector.load %arg0[%c0_36, %c43] : memref<6x392xbf16, #tpu.memory_space<vmem>>, vector<6x332xbf16>
    %49 = arith.extf %48 : vector<6x332xbf16> to vector<6x332xf32>
    %c96 = arith.constant 96 : index
    %c0_37 = arith.constant 0 : index
    %50 = vector.load %arg4[%c96, %c0_37] : memref<150x332xf32, #tpu.memory_space<vmem>>, vector<6x332xf32>
    tpu.vector_store %arg4[%c96, %c0_37], %49 {strides = array<i32>} : memref<150x332xf32, #tpu.memory_space<vmem>>, vector<6x332xf32>,
    %c0_38 = arith.constant 0 : index
    %c44 = arith.constant 44 : index
    %51 = vector.load %arg0[%c0_38, %c44] : memref<6x392xbf16, #tpu.memory_space<vmem>>, vector<6x332xbf16>
    %52 = arith.extf %51 : vector<6x332xbf16> to vector<6x332xf32>
    %c102 = arith.constant 102 : index
    %c0_39 = arith.constant 0 : index
    %53 = vector.load %arg4[%c102, %c0_39] : memref<150x332xf32, #tpu.memory_space<vmem>>, vector<6x332xf32>
    tpu.vector_store %arg4[%c102, %c0_39], %52 {strides = array<i32>} : memref<150x332xf32, #tpu.memory_space<vmem>>, vector<6x332xf32>,
    %c0_40 = arith.constant 0 : index
    %c45 = arith.constant 45 : index
    %54 = vector.load %arg0[%c0_40, %c45] : memref<6x392xbf16, #tpu.memory_space<vmem>>, vector<6x332xbf16>
    %55 = arith.extf %54 : vector<6x332xbf16> to vector<6x332xf32>
    %c108 = arith.constant 108 : index
    %c0_41 = arith.constant 0 : index
    %56 = vector.load %arg4[%c108, %c0_41] : memref<150x332xf32, #tpu.memory_space<vmem>>, vector<6x332xf32>
    tpu.vector_store %arg4[%c108, %c0_41], %55 {strides = array<i32>} : memref<150x332xf32, #tpu.memory_space<vmem>>, vector<6x332xf32>,
    %c0_42 = arith.constant 0 : index
    %c46 = arith.constant 46 : index
    %57 = vector.load %arg0[%c0_42, %c46] : memref<6x392xbf16, #tpu.memory_space<vmem>>, vector<6x332xbf16>
    %58 = arith.extf %57 : vector<6x332xbf16> to vector<6x332xf32>
    %c114 = arith.constant 114 : index
    %c0_43 = arith.constant 0 : index
    %59 = vector.load %arg4[%c114, %c0_43] : memref<150x332xf32, #tpu.memory_space<vmem>>, vector<6x332xf32>
    tpu.vector_store %arg4[%c114, %c0_43], %58 {strides = array<i32>} : memref<150x332xf32, #tpu.memory_space<vmem>>, vector<6x332xf32>,
    %c0_44 = arith.constant 0 : index
    %c56 = arith.constant 56 : index
    %60 = vector.load %arg0[%c0_44, %c56] : memref<6x392xbf16, #tpu.memory_space<vmem>>, vector<6x332xbf16>
    %61 = arith.extf %60 : vector<6x332xbf16> to vector<6x332xf32>
    %c120 = arith.constant 120 : index
    %c0_45 = arith.constant 0 : index
    %62 = vector.load %arg4[%c120, %c0_45] : memref<150x332xf32, #tpu.memory_space<vmem>>, vector<6x332xf32>
    tpu.vector_store %arg4[%c120, %c0_45], %61 {strides = array<i32>} : memref<150x332xf32, #tpu.memory_space<vmem>>, vector<6x332xf32>,
    %c0_46 = arith.constant 0 : index
    %c57 = arith.constant 57 : index
    %63 = vector.load %arg0[%c0_46, %c57] : memref<6x392xbf16, #tpu.memory_space<vmem>>, vector<6x332xbf16>
    %64 = arith.extf %63 : vector<6x332xbf16> to vector<6x332xf32>
    %c126 = arith.constant 126 : index
    %c0_47 = arith.constant 0 : index
    %65 = vector.load %arg4[%c126, %c0_47] : memref<150x332xf32, #tpu.memory_space<vmem>>, vector<6x332xf32>
    tpu.vector_store %arg4[%c126, %c0_47], %64 {strides = array<i32>} : memref<150x332xf32, #tpu.memory_space<vmem>>, vector<6x332xf32>,
    %c0_48 = arith.constant 0 : index
    %c58 = arith.constant 58 : index
    %66 = vector.load %arg0[%c0_48, %c58] : memref<6x392xbf16, #tpu.memory_space<vmem>>, vector<6x332xbf16>
    %67 = arith.extf %66 : vector<6x332xbf16> to vector<6x332xf32>
    %c132 = arith.constant 132 : index
    %c0_49 = arith.constant 0 : index
    %68 = vector.load %arg4[%c132, %c0_49] : memref<150x332xf32, #tpu.memory_space<vmem>>, vector<6x332xf32>
    tpu.vector_store %arg4[%c132, %c0_49], %67 {strides = array<i32>} : memref<150x332xf32, #tpu.memory_space<vmem>>, vector<6x332xf32>,
    %c0_50 = arith.constant 0 : index
    %c59 = arith.constant 59 : index
    %69 = vector.load %arg0[%c0_50, %c59] : memref<6x392xbf16, #tpu.memory_space<vmem>>, vector<6x332xbf16>
    %70 = arith.extf %69 : vector<6x332xbf16> to vector<6x332xf32>
    %c138 = arith.constant 138 : index
    %c0_51 = arith.constant 0 : index
    %71 = vector.load %arg4[%c138, %c0_51] : memref<150x332xf32, #tpu.memory_space<vmem>>, vector<6x332xf32>
    tpu.vector_store %arg4[%c138, %c0_51], %70 {strides = array<i32>} : memref<150x332xf32, #tpu.memory_space<vmem>>, vector<6x332xf32>,
    %c0_52 = arith.constant 0 : index
    %c60_53 = arith.constant 60 : index
    %72 = vector.load %arg0[%c0_52, %c60_53] : memref<6x392xbf16, #tpu.memory_space<vmem>>, vector<6x332xbf16>
    %73 = arith.extf %72 : vector<6x332xbf16> to vector<6x332xf32>
    %c144 = arith.constant 144 : index
    %c0_54 = arith.constant 0 : index
    %74 = vector.load %arg4[%c144, %c0_54] : memref<150x332xf32, #tpu.memory_space<vmem>>, vector<6x332xf32>
    tpu.vector_store %arg4[%c144, %c0_54], %73 {strides = array<i32>} : memref<150x332xf32, #tpu.memory_space<vmem>>, vector<6x332xf32>,
    %c0_55 = arith.constant 0 : index
    %c0_56 = arith.constant 0 : index
    %75 = vector.load %arg1[%c0_55, %c0_56] : memref<16x150xbf16, #tpu.memory_space<vmem>>, vector<16x150xbf16>
    %c0_57 = arith.constant 0 : index
    %c0_58 = arith.constant 0 : index
    %76 = vector.load %arg4[%c0_57, %c0_58] : memref<150x332xf32, #tpu.memory_space<vmem>>, vector<150x332xf32>
    %77 = arith.truncf %76 : vector<150x332xf32> to vector<150x332xbf16>
    %cst = arith.constant dense<0.000000e+00> : vector<16x332xf32>
    %78 = tpu.matmul %75, %77, %cst {dimension_numbers = #tpu.dot_dimension_numbers<[1], [0], [0], [1], [0, 0, 1, 1], [], []>} : vector<16x150xbf16>, vector<150x332xbf16>, vector<16x332xf32> -> vector<16x332xf32>
    %c0_59 = arith.constant 0 : index
    %c0_60 = arith.constant 0 : index
    %79 = vector.load %arg2[%c0_59, %c0_60] : memref<16x1xf32, #tpu.memory_space<vmem>>, vector<16x1xf32>
    %80 = vector.broadcast %79 : vector<16x1xf32> to vector<16x332xf32>
    %81 = arith.addf %78, %80 : vector<16x332xf32>
    %82 = math.tanh %81 : vector<16x332xf32>
    %83 = vector.extract_strided_slice %82 {offsets = [0, 0], sizes = [16, 317], strides = [1, 1]} : vector<16x332xf32> to vector<16x317xf32>
    %84 = vector.extract_strided_slice %82 {offsets = [0, 1], sizes = [16, 317], strides = [1, 1]} : vector<16x332xf32> to vector<16x317xf32>
    %85 = arith.addf %83, %84 : vector<16x317xf32>
    %86 = vector.extract_strided_slice %82 {offsets = [0, 14], sizes = [16, 317], strides = [1, 1]} : vector<16x332xf32> to vector<16x317xf32>
    %87 = arith.addf %85, %86 : vector<16x317xf32>
    %88 = vector.extract_strided_slice %82 {offsets = [0, 15], sizes = [16, 317], strides = [1, 1]} : vector<16x332xf32> to vector<16x317xf32>
    %89 = arith.addf %87, %88 : vector<16x317xf32>
    %c0_61 = arith.constant 0 : index
    %c0_62 = arith.constant 0 : index
    %90 = vector.load %arg5[%c0_61, %c0_62] : memref<16x317xf32, #tpu.memory_space<vmem>>, vector<16x317xf32>
    tpu.vector_store %arg5[%c0_61, %c0_62], %89 {strides = array<i32>} : memref<16x317xf32, #tpu.memory_space<vmem>>, vector<16x317xf32>,
    %91 = tpu.iota {dimensions = array<i32: 0>} : vector<9x5xi32>
    %92 = tpu.iota {dimensions = array<i32: 1>} : vector<9x5xi32>
    %c2_i32 = arith.constant 2 : i32
    %93 = vector.broadcast %c2_i32 : i32 to vector<9x5xi32>
    %94 = arith.muli %93, %92 : vector<9x5xi32>
    %95 = arith.cmpi eq, %91, %94 : vector<9x5xi32>
    %cst_63 = arith.constant 2.500000e-01 : f32
    %cst_64 = arith.constant 0.000000e+00 : f32
    %96 = vector.broadcast %cst_63 : f32 to vector<9x5xf32>
    %97 = vector.broadcast %cst_64 : f32 to vector<9x5xf32>
    %98 = arith.select %95, %96, %97 : vector<9x5xi1>, vector<9x5xf32>
    %c0_65 = arith.constant 0 : index
    %c0_66 = arith.constant 0 : index
    %99 = vector.load %arg5[%c0_65, %c0_66] : memref<16x317xf32, #tpu.memory_space<vmem>>, vector<16x9xf32>
    %cst_67 = arith.constant dense<0.000000e+00> : vector<16x5xf32>
    %100 = tpu.matmul %99, %98, %cst_67 {dimension_numbers = #tpu.dot_dimension_numbers<[1], [0], [0], [1], [0, 0, 1, 1], [], []>} : vector<16x9xf32>, vector<9x5xf32>, vector<16x5xf32> -> vector<16x5xf32>
    %c0_68 = arith.constant 0 : index
    %c0_69 = arith.constant 0 : index
    %101 = vector.load %arg3[%c0_68, %c0_69] : memref<16x50xf32, #tpu.memory_space<vmem>>, vector<16x5xf32>
    tpu.vector_store %arg3[%c0_68, %c0_69], %100 {strides = array<i32>} : memref<16x50xf32, #tpu.memory_space<vmem>>, vector<16x5xf32>,
    %c0_70 = arith.constant 0 : index
    %c28_71 = arith.constant 28 : index
    %102 = vector.load %arg5[%c0_70, %c28_71] : memref<16x317xf32, #tpu.memory_space<vmem>>, vector<16x9xf32>
    %cst_72 = arith.constant dense<0.000000e+00> : vector<16x5xf32>
    %103 = tpu.matmul %102, %98, %cst_72 {dimension_numbers = #tpu.dot_dimension_numbers<[1], [0], [0], [1], [0, 0, 1, 1], [], []>} : vector<16x9xf32>, vector<9x5xf32>, vector<16x5xf32> -> vector<16x5xf32>
    %c0_73 = arith.constant 0 : index
    %c5 = arith.constant 5 : index
    %104 = vector.load %arg3[%c0_73, %c5] : memref<16x50xf32, #tpu.memory_space<vmem>>, vector<16x5xf32>
    tpu.vector_store %arg3[%c0_73, %c5], %103 {strides = array<i32>} : memref<16x50xf32, #tpu.memory_space<vmem>>, vector<16x5xf32>,
    %c0_74 = arith.constant 0 : index
    %c56_75 = arith.constant 56 : index
    %105 = vector.load %arg5[%c0_74, %c56_75] : memref<16x317xf32, #tpu.memory_space<vmem>>, vector<16x9xf32>
    %cst_76 = arith.constant dense<0.000000e+00> : vector<16x5xf32>
    %106 = tpu.matmul %105, %98, %cst_76 {dimension_numbers = #tpu.dot_dimension_numbers<[1], [0], [0], [1], [0, 0, 1, 1], [], []>} : vector<16x9xf32>, vector<9x5xf32>, vector<16x5xf32> -> vector<16x5xf32>
    %c0_77 = arith.constant 0 : index
    %c10 = arith.constant 10 : index
    %107 = vector.load %arg3[%c0_77, %c10] : memref<16x50xf32, #tpu.memory_space<vmem>>, vector<16x5xf32>
    tpu.vector_store %arg3[%c0_77, %c10], %106 {strides = array<i32>} : memref<16x50xf32, #tpu.memory_space<vmem>>, vector<16x5xf32>,
    %c0_78 = arith.constant 0 : index
    %c84_79 = arith.constant 84 : index
    %108 = vector.load %arg5[%c0_78, %c84_79] : memref<16x317xf32, #tpu.memory_space<vmem>>, vector<16x9xf32>
    %cst_80 = arith.constant dense<0.000000e+00> : vector<16x5xf32>
    %109 = tpu.matmul %108, %98, %cst_80 {dimension_numbers = #tpu.dot_dimension_numbers<[1], [0], [0], [1], [0, 0, 1, 1], [], []>} : vector<16x9xf32>, vector<9x5xf32>, vector<16x5xf32> -> vector<16x5xf32>
    %c0_81 = arith.constant 0 : index
    %c15_82 = arith.constant 15 : index
    %110 = vector.load %arg3[%c0_81, %c15_82] : memref<16x50xf32, #tpu.memory_space<vmem>>, vector<16x5xf32>
    tpu.vector_store %arg3[%c0_81, %c15_82], %109 {strides = array<i32>} : memref<16x50xf32, #tpu.memory_space<vmem>>, vector<16x5xf32>,
    %c0_83 = arith.constant 0 : index
    %c112 = arith.constant 112 : index
    %111 = vector.load %arg5[%c0_83, %c112] : memref<16x317xf32, #tpu.memory_space<vmem>>, vector<16x9xf32>
    %cst_84 = arith.constant dense<0.000000e+00> : vector<16x5xf32>
    %112 = tpu.matmul %111, %98, %cst_84 {dimension_numbers = #tpu.dot_dimension_numbers<[1], [0], [0], [1], [0, 0, 1, 1], [], []>} : vector<16x9xf32>, vector<9x5xf32>, vector<16x5xf32> -> vector<16x5xf32>
    %c0_85 = arith.constant 0 : index
    %c20 = arith.constant 20 : index
    %113 = vector.load %arg3[%c0_85, %c20] : memref<16x50xf32, #tpu.memory_space<vmem>>, vector<16x5xf32>
    tpu.vector_store %arg3[%c0_85, %c20], %112 {strides = array<i32>} : memref<16x50xf32, #tpu.memory_space<vmem>>, vector<16x5xf32>,
    %c0_86 = arith.constant 0 : index
    %c196 = arith.constant 196 : index
    %114 = vector.load %arg5[%c0_86, %c196] : memref<16x317xf32, #tpu.memory_space<vmem>>, vector<16x9xf32>
    %cst_87 = arith.constant dense<0.000000e+00> : vector<16x5xf32>
    %115 = tpu.matmul %114, %98, %cst_87 {dimension_numbers = #tpu.dot_dimension_numbers<[1], [0], [0], [1], [0, 0, 1, 1], [], []>} : vector<16x9xf32>, vector<9x5xf32>, vector<16x5xf32> -> vector<16x5xf32>
    %c0_88 = arith.constant 0 : index
    %c25 = arith.constant 25 : index
    %116 = vector.load %arg3[%c0_88, %c25] : memref<16x50xf32, #tpu.memory_space<vmem>>, vector<16x5xf32>
    tpu.vector_store %arg3[%c0_88, %c25], %115 {strides = array<i32>} : memref<16x50xf32, #tpu.memory_space<vmem>>, vector<16x5xf32>,
    %c0_89 = arith.constant 0 : index
    %c224 = arith.constant 224 : index
    %117 = vector.load %arg5[%c0_89, %c224] : memref<16x317xf32, #tpu.memory_space<vmem>>, vector<16x9xf32>
    %cst_90 = arith.constant dense<0.000000e+00> : vector<16x5xf32>
    %118 = tpu.matmul %117, %98, %cst_90 {dimension_numbers = #tpu.dot_dimension_numbers<[1], [0], [0], [1], [0, 0, 1, 1], [], []>} : vector<16x9xf32>, vector<9x5xf32>, vector<16x5xf32> -> vector<16x5xf32>
    %c0_91 = arith.constant 0 : index
    %c30_92 = arith.constant 30 : index
    %119 = vector.load %arg3[%c0_91, %c30_92] : memref<16x50xf32, #tpu.memory_space<vmem>>, vector<16x5xf32>
    tpu.vector_store %arg3[%c0_91, %c30_92], %118 {strides = array<i32>} : memref<16x50xf32, #tpu.memory_space<vmem>>, vector<16x5xf32>,
    %c0_93 = arith.constant 0 : index
    %c252 = arith.constant 252 : index
    %120 = vector.load %arg5[%c0_93, %c252] : memref<16x317xf32, #tpu.memory_space<vmem>>, vector<16x9xf32>
    %cst_94 = arith.constant dense<0.000000e+00> : vector<16x5xf32>
    %121 = tpu.matmul %120, %98, %cst_94 {dimension_numbers = #tpu.dot_dimension_numbers<[1], [0], [0], [1], [0, 0, 1, 1], [], []>} : vector<16x9xf32>, vector<9x5xf32>, vector<16x5xf32> -> vector<16x5xf32>
    %c0_95 = arith.constant 0 : index
    %c35 = arith.constant 35 : index
    %122 = vector.load %arg3[%c0_95, %c35] : memref<16x50xf32, #tpu.memory_space<vmem>>, vector<16x5xf32>
    tpu.vector_store %arg3[%c0_95, %c35], %121 {strides = array<i32>} : memref<16x50xf32, #tpu.memory_space<vmem>>, vector<16x5xf32>,
    %c0_96 = arith.constant 0 : index
    %c280 = arith.constant 280 : index
    %123 = vector.load %arg5[%c0_96, %c280] : memref<16x317xf32, #tpu.memory_space<vmem>>, vector<16x9xf32>
    %cst_97 = arith.constant dense<0.000000e+00> : vector<16x5xf32>
    %124 = tpu.matmul %123, %98, %cst_97 {dimension_numbers = #tpu.dot_dimension_numbers<[1], [0], [0], [1], [0, 0, 1, 1], [], []>} : vector<16x9xf32>, vector<9x5xf32>, vector<16x5xf32> -> vector<16x5xf32>
    %c0_98 = arith.constant 0 : index
    %c40 = arith.constant 40 : index
    %125 = vector.load %arg3[%c0_98, %c40] : memref<16x50xf32, #tpu.memory_space<vmem>>, vector<16x5xf32>
    tpu.vector_store %arg3[%c0_98, %c40], %124 {strides = array<i32>} : memref<16x50xf32, #tpu.memory_space<vmem>>, vector<16x5xf32>,
    %c0_99 = arith.constant 0 : index
    %c308 = arith.constant 308 : index
    %126 = vector.load %arg5[%c0_99, %c308] : memref<16x317xf32, #tpu.memory_space<vmem>>, vector<16x9xf32>
    %cst_100 = arith.constant dense<0.000000e+00> : vector<16x5xf32>
    %127 = tpu.matmul %126, %98, %cst_100 {dimension_numbers = #tpu.dot_dimension_numbers<[1], [0], [0], [1], [0, 0, 1, 1], [], []>} : vector<16x9xf32>, vector<9x5xf32>, vector<16x5xf32> -> vector<16x5xf32>
    %c0_101 = arith.constant 0 : index
    %c45_102 = arith.constant 45 : index
    %128 = vector.load %arg3[%c0_101, %c45_102] : memref<16x50xf32, #tpu.memory_space<vmem>>, vector<16x5xf32>
    tpu.vector_store %arg3[%c0_101, %c45_102], %127 {strides = array<i32>} : memref<16x50xf32, #tpu.memory_space<vmem>>, vector<16x5xf32>,
    return
  }
}

module attributes {stable_mosaic.version = 11 : i64} {
  func.func @_conv_tanh_pool_kernel(%arg0: memref<1x2048xbf16, #tpu.memory_space<vmem>>, %arg1: memref<6x25xbf16, #tpu.memory_space<vmem>>, %arg2: memref<6x1xf32, #tpu.memory_space<vmem>>, %arg3: memref<6x392xf32, #tpu.memory_space<vmem>>, %arg4: memref<25x1916xf32, #tpu.memory_space<vmem>>, %arg5: memref<6x1883xf32, #tpu.memory_space<vmem>>) attributes {dimension_semantics = [], scalar_prefetch = 0 : i64, scratch_operands = 2 : i64, tpu.core_type = #tpu.core_type<tc>} {
    %c0 = arith.constant 0 : index
    %c0_0 = arith.constant 0 : index
    %0 = vector.load %arg0[%c0, %c0_0] : memref<1x2048xbf16, #tpu.memory_space<vmem>>, vector<1x1916xbf16>
    %1 = arith.extf %0 : vector<1x1916xbf16> to vector<1x1916xf32>
    %c0_1 = arith.constant 0 : index
    %c0_2 = arith.constant 0 : index
    %2 = vector.load %arg4[%c0_1, %c0_2] : memref<25x1916xf32, #tpu.memory_space<vmem>>, vector<1x1916xf32>
    tpu.vector_store %arg4[%c0_1, %c0_2], %1 {strides = array<i32>} : memref<25x1916xf32, #tpu.memory_space<vmem>>, vector<1x1916xf32>,
    %c0_3 = arith.constant 0 : index
    %c1 = arith.constant 1 : index
    %3 = vector.load %arg0[%c0_3, %c1] : memref<1x2048xbf16, #tpu.memory_space<vmem>>, vector<1x1916xbf16>
    %4 = arith.extf %3 : vector<1x1916xbf16> to vector<1x1916xf32>
    %c1_4 = arith.constant 1 : index
    %c0_5 = arith.constant 0 : index
    %5 = vector.load %arg4[%c1_4, %c0_5] : memref<25x1916xf32, #tpu.memory_space<vmem>>, vector<1x1916xf32>
    tpu.vector_store %arg4[%c1_4, %c0_5], %4 {strides = array<i32>} : memref<25x1916xf32, #tpu.memory_space<vmem>>, vector<1x1916xf32>,
    %c0_6 = arith.constant 0 : index
    %c2 = arith.constant 2 : index
    %6 = vector.load %arg0[%c0_6, %c2] : memref<1x2048xbf16, #tpu.memory_space<vmem>>, vector<1x1916xbf16>
    %7 = arith.extf %6 : vector<1x1916xbf16> to vector<1x1916xf32>
    %c2_7 = arith.constant 2 : index
    %c0_8 = arith.constant 0 : index
    %8 = vector.load %arg4[%c2_7, %c0_8] : memref<25x1916xf32, #tpu.memory_space<vmem>>, vector<1x1916xf32>
    tpu.vector_store %arg4[%c2_7, %c0_8], %7 {strides = array<i32>} : memref<25x1916xf32, #tpu.memory_space<vmem>>, vector<1x1916xf32>,
    %c0_9 = arith.constant 0 : index
    %c3 = arith.constant 3 : index
    %9 = vector.load %arg0[%c0_9, %c3] : memref<1x2048xbf16, #tpu.memory_space<vmem>>, vector<1x1916xbf16>
    %10 = arith.extf %9 : vector<1x1916xbf16> to vector<1x1916xf32>
    %c3_10 = arith.constant 3 : index
    %c0_11 = arith.constant 0 : index
    %11 = vector.load %arg4[%c3_10, %c0_11] : memref<25x1916xf32, #tpu.memory_space<vmem>>, vector<1x1916xf32>
    tpu.vector_store %arg4[%c3_10, %c0_11], %10 {strides = array<i32>} : memref<25x1916xf32, #tpu.memory_space<vmem>>, vector<1x1916xf32>,
    %c0_12 = arith.constant 0 : index
    %c4 = arith.constant 4 : index
    %12 = vector.load %arg0[%c0_12, %c4] : memref<1x2048xbf16, #tpu.memory_space<vmem>>, vector<1x1916xbf16>
    %13 = arith.extf %12 : vector<1x1916xbf16> to vector<1x1916xf32>
    %c4_13 = arith.constant 4 : index
    %c0_14 = arith.constant 0 : index
    %14 = vector.load %arg4[%c4_13, %c0_14] : memref<25x1916xf32, #tpu.memory_space<vmem>>, vector<1x1916xf32>
    tpu.vector_store %arg4[%c4_13, %c0_14], %13 {strides = array<i32>} : memref<25x1916xf32, #tpu.memory_space<vmem>>, vector<1x1916xf32>,
    %c0_15 = arith.constant 0 : index
    %c32 = arith.constant 32 : index
    %15 = vector.load %arg0[%c0_15, %c32] : memref<1x2048xbf16, #tpu.memory_space<vmem>>, vector<1x1916xbf16>
    %16 = arith.extf %15 : vector<1x1916xbf16> to vector<1x1916xf32>
    %c5 = arith.constant 5 : index
    %c0_16 = arith.constant 0 : index
    %17 = vector.load %arg4[%c5, %c0_16] : memref<25x1916xf32, #tpu.memory_space<vmem>>, vector<1x1916xf32>
    tpu.vector_store %arg4[%c5, %c0_16], %16 {strides = array<i32>} : memref<25x1916xf32, #tpu.memory_space<vmem>>, vector<1x1916xf32>,
    %c0_17 = arith.constant 0 : index
    %c33 = arith.constant 33 : index
    %18 = vector.load %arg0[%c0_17, %c33] : memref<1x2048xbf16, #tpu.memory_space<vmem>>, vector<1x1916xbf16>
    %19 = arith.extf %18 : vector<1x1916xbf16> to vector<1x1916xf32>
    %c6 = arith.constant 6 : index
    %c0_18 = arith.constant 0 : index
    %20 = vector.load %arg4[%c6, %c0_18] : memref<25x1916xf32, #tpu.memory_space<vmem>>, vector<1x1916xf32>
    tpu.vector_store %arg4[%c6, %c0_18], %19 {strides = array<i32>} : memref<25x1916xf32, #tpu.memory_space<vmem>>, vector<1x1916xf32>,
    %c0_19 = arith.constant 0 : index
    %c34 = arith.constant 34 : index
    %21 = vector.load %arg0[%c0_19, %c34] : memref<1x2048xbf16, #tpu.memory_space<vmem>>, vector<1x1916xbf16>
    %22 = arith.extf %21 : vector<1x1916xbf16> to vector<1x1916xf32>
    %c7 = arith.constant 7 : index
    %c0_20 = arith.constant 0 : index
    %23 = vector.load %arg4[%c7, %c0_20] : memref<25x1916xf32, #tpu.memory_space<vmem>>, vector<1x1916xf32>
    tpu.vector_store %arg4[%c7, %c0_20], %22 {strides = array<i32>} : memref<25x1916xf32, #tpu.memory_space<vmem>>, vector<1x1916xf32>,
    %c0_21 = arith.constant 0 : index
    %c35 = arith.constant 35 : index
    %24 = vector.load %arg0[%c0_21, %c35] : memref<1x2048xbf16, #tpu.memory_space<vmem>>, vector<1x1916xbf16>
    %25 = arith.extf %24 : vector<1x1916xbf16> to vector<1x1916xf32>
    %c8 = arith.constant 8 : index
    %c0_22 = arith.constant 0 : index
    %26 = vector.load %arg4[%c8, %c0_22] : memref<25x1916xf32, #tpu.memory_space<vmem>>, vector<1x1916xf32>
    tpu.vector_store %arg4[%c8, %c0_22], %25 {strides = array<i32>} : memref<25x1916xf32, #tpu.memory_space<vmem>>, vector<1x1916xf32>,
    %c0_23 = arith.constant 0 : index
    %c36 = arith.constant 36 : index
    %27 = vector.load %arg0[%c0_23, %c36] : memref<1x2048xbf16, #tpu.memory_space<vmem>>, vector<1x1916xbf16>
    %28 = arith.extf %27 : vector<1x1916xbf16> to vector<1x1916xf32>
    %c9 = arith.constant 9 : index
    %c0_24 = arith.constant 0 : index
    %29 = vector.load %arg4[%c9, %c0_24] : memref<25x1916xf32, #tpu.memory_space<vmem>>, vector<1x1916xf32>
    tpu.vector_store %arg4[%c9, %c0_24], %28 {strides = array<i32>} : memref<25x1916xf32, #tpu.memory_space<vmem>>, vector<1x1916xf32>,
    %c0_25 = arith.constant 0 : index
    %c64 = arith.constant 64 : index
    %30 = vector.load %arg0[%c0_25, %c64] : memref<1x2048xbf16, #tpu.memory_space<vmem>>, vector<1x1916xbf16>
    %31 = arith.extf %30 : vector<1x1916xbf16> to vector<1x1916xf32>
    %c10 = arith.constant 10 : index
    %c0_26 = arith.constant 0 : index
    %32 = vector.load %arg4[%c10, %c0_26] : memref<25x1916xf32, #tpu.memory_space<vmem>>, vector<1x1916xf32>
    tpu.vector_store %arg4[%c10, %c0_26], %31 {strides = array<i32>} : memref<25x1916xf32, #tpu.memory_space<vmem>>, vector<1x1916xf32>,
    %c0_27 = arith.constant 0 : index
    %c65 = arith.constant 65 : index
    %33 = vector.load %arg0[%c0_27, %c65] : memref<1x2048xbf16, #tpu.memory_space<vmem>>, vector<1x1916xbf16>
    %34 = arith.extf %33 : vector<1x1916xbf16> to vector<1x1916xf32>
    %c11 = arith.constant 11 : index
    %c0_28 = arith.constant 0 : index
    %35 = vector.load %arg4[%c11, %c0_28] : memref<25x1916xf32, #tpu.memory_space<vmem>>, vector<1x1916xf32>
    tpu.vector_store %arg4[%c11, %c0_28], %34 {strides = array<i32>} : memref<25x1916xf32, #tpu.memory_space<vmem>>, vector<1x1916xf32>,
    %c0_29 = arith.constant 0 : index
    %c66 = arith.constant 66 : index
    %36 = vector.load %arg0[%c0_29, %c66] : memref<1x2048xbf16, #tpu.memory_space<vmem>>, vector<1x1916xbf16>
    %37 = arith.extf %36 : vector<1x1916xbf16> to vector<1x1916xf32>
    %c12 = arith.constant 12 : index
    %c0_30 = arith.constant 0 : index
    %38 = vector.load %arg4[%c12, %c0_30] : memref<25x1916xf32, #tpu.memory_space<vmem>>, vector<1x1916xf32>
    tpu.vector_store %arg4[%c12, %c0_30], %37 {strides = array<i32>} : memref<25x1916xf32, #tpu.memory_space<vmem>>, vector<1x1916xf32>,
    %c0_31 = arith.constant 0 : index
    %c67 = arith.constant 67 : index
    %39 = vector.load %arg0[%c0_31, %c67] : memref<1x2048xbf16, #tpu.memory_space<vmem>>, vector<1x1916xbf16>
    %40 = arith.extf %39 : vector<1x1916xbf16> to vector<1x1916xf32>
    %c13 = arith.constant 13 : index
    %c0_32 = arith.constant 0 : index
    %41 = vector.load %arg4[%c13, %c0_32] : memref<25x1916xf32, #tpu.memory_space<vmem>>, vector<1x1916xf32>
    tpu.vector_store %arg4[%c13, %c0_32], %40 {strides = array<i32>} : memref<25x1916xf32, #tpu.memory_space<vmem>>, vector<1x1916xf32>,
    %c0_33 = arith.constant 0 : index
    %c68 = arith.constant 68 : index
    %42 = vector.load %arg0[%c0_33, %c68] : memref<1x2048xbf16, #tpu.memory_space<vmem>>, vector<1x1916xbf16>
    %43 = arith.extf %42 : vector<1x1916xbf16> to vector<1x1916xf32>
    %c14 = arith.constant 14 : index
    %c0_34 = arith.constant 0 : index
    %44 = vector.load %arg4[%c14, %c0_34] : memref<25x1916xf32, #tpu.memory_space<vmem>>, vector<1x1916xf32>
    tpu.vector_store %arg4[%c14, %c0_34], %43 {strides = array<i32>} : memref<25x1916xf32, #tpu.memory_space<vmem>>, vector<1x1916xf32>,
    %c0_35 = arith.constant 0 : index
    %c96 = arith.constant 96 : index
    %45 = vector.load %arg0[%c0_35, %c96] : memref<1x2048xbf16, #tpu.memory_space<vmem>>, vector<1x1916xbf16>
    %46 = arith.extf %45 : vector<1x1916xbf16> to vector<1x1916xf32>
    %c15 = arith.constant 15 : index
    %c0_36 = arith.constant 0 : index
    %47 = vector.load %arg4[%c15, %c0_36] : memref<25x1916xf32, #tpu.memory_space<vmem>>, vector<1x1916xf32>
    tpu.vector_store %arg4[%c15, %c0_36], %46 {strides = array<i32>} : memref<25x1916xf32, #tpu.memory_space<vmem>>, vector<1x1916xf32>,
    %c0_37 = arith.constant 0 : index
    %c97 = arith.constant 97 : index
    %48 = vector.load %arg0[%c0_37, %c97] : memref<1x2048xbf16, #tpu.memory_space<vmem>>, vector<1x1916xbf16>
    %49 = arith.extf %48 : vector<1x1916xbf16> to vector<1x1916xf32>
    %c16 = arith.constant 16 : index
    %c0_38 = arith.constant 0 : index
    %50 = vector.load %arg4[%c16, %c0_38] : memref<25x1916xf32, #tpu.memory_space<vmem>>, vector<1x1916xf32>
    tpu.vector_store %arg4[%c16, %c0_38], %49 {strides = array<i32>} : memref<25x1916xf32, #tpu.memory_space<vmem>>, vector<1x1916xf32>,
    %c0_39 = arith.constant 0 : index
    %c98 = arith.constant 98 : index
    %51 = vector.load %arg0[%c0_39, %c98] : memref<1x2048xbf16, #tpu.memory_space<vmem>>, vector<1x1916xbf16>
    %52 = arith.extf %51 : vector<1x1916xbf16> to vector<1x1916xf32>
    %c17 = arith.constant 17 : index
    %c0_40 = arith.constant 0 : index
    %53 = vector.load %arg4[%c17, %c0_40] : memref<25x1916xf32, #tpu.memory_space<vmem>>, vector<1x1916xf32>
    tpu.vector_store %arg4[%c17, %c0_40], %52 {strides = array<i32>} : memref<25x1916xf32, #tpu.memory_space<vmem>>, vector<1x1916xf32>,
    %c0_41 = arith.constant 0 : index
    %c99 = arith.constant 99 : index
    %54 = vector.load %arg0[%c0_41, %c99] : memref<1x2048xbf16, #tpu.memory_space<vmem>>, vector<1x1916xbf16>
    %55 = arith.extf %54 : vector<1x1916xbf16> to vector<1x1916xf32>
    %c18 = arith.constant 18 : index
    %c0_42 = arith.constant 0 : index
    %56 = vector.load %arg4[%c18, %c0_42] : memref<25x1916xf32, #tpu.memory_space<vmem>>, vector<1x1916xf32>
    tpu.vector_store %arg4[%c18, %c0_42], %55 {strides = array<i32>} : memref<25x1916xf32, #tpu.memory_space<vmem>>, vector<1x1916xf32>,
    %c0_43 = arith.constant 0 : index
    %c100 = arith.constant 100 : index
    %57 = vector.load %arg0[%c0_43, %c100] : memref<1x2048xbf16, #tpu.memory_space<vmem>>, vector<1x1916xbf16>
    %58 = arith.extf %57 : vector<1x1916xbf16> to vector<1x1916xf32>
    %c19 = arith.constant 19 : index
    %c0_44 = arith.constant 0 : index
    %59 = vector.load %arg4[%c19, %c0_44] : memref<25x1916xf32, #tpu.memory_space<vmem>>, vector<1x1916xf32>
    tpu.vector_store %arg4[%c19, %c0_44], %58 {strides = array<i32>} : memref<25x1916xf32, #tpu.memory_space<vmem>>, vector<1x1916xf32>,
    %c0_45 = arith.constant 0 : index
    %c128 = arith.constant 128 : index
    %60 = vector.load %arg0[%c0_45, %c128] : memref<1x2048xbf16, #tpu.memory_space<vmem>>, vector<1x1916xbf16>
    %61 = arith.extf %60 : vector<1x1916xbf16> to vector<1x1916xf32>
    %c20 = arith.constant 20 : index
    %c0_46 = arith.constant 0 : index
    %62 = vector.load %arg4[%c20, %c0_46] : memref<25x1916xf32, #tpu.memory_space<vmem>>, vector<1x1916xf32>
    tpu.vector_store %arg4[%c20, %c0_46], %61 {strides = array<i32>} : memref<25x1916xf32, #tpu.memory_space<vmem>>, vector<1x1916xf32>,
    %c0_47 = arith.constant 0 : index
    %c129 = arith.constant 129 : index
    %63 = vector.load %arg0[%c0_47, %c129] : memref<1x2048xbf16, #tpu.memory_space<vmem>>, vector<1x1916xbf16>
    %64 = arith.extf %63 : vector<1x1916xbf16> to vector<1x1916xf32>
    %c21 = arith.constant 21 : index
    %c0_48 = arith.constant 0 : index
    %65 = vector.load %arg4[%c21, %c0_48] : memref<25x1916xf32, #tpu.memory_space<vmem>>, vector<1x1916xf32>
    tpu.vector_store %arg4[%c21, %c0_48], %64 {strides = array<i32>} : memref<25x1916xf32, #tpu.memory_space<vmem>>, vector<1x1916xf32>,
    %c0_49 = arith.constant 0 : index
    %c130 = arith.constant 130 : index
    %66 = vector.load %arg0[%c0_49, %c130] : memref<1x2048xbf16, #tpu.memory_space<vmem>>, vector<1x1916xbf16>
    %67 = arith.extf %66 : vector<1x1916xbf16> to vector<1x1916xf32>
    %c22 = arith.constant 22 : index
    %c0_50 = arith.constant 0 : index
    %68 = vector.load %arg4[%c22, %c0_50] : memref<25x1916xf32, #tpu.memory_space<vmem>>, vector<1x1916xf32>
    tpu.vector_store %arg4[%c22, %c0_50], %67 {strides = array<i32>} : memref<25x1916xf32, #tpu.memory_space<vmem>>, vector<1x1916xf32>,
    %c0_51 = arith.constant 0 : index
    %c131 = arith.constant 131 : index
    %69 = vector.load %arg0[%c0_51, %c131] : memref<1x2048xbf16, #tpu.memory_space<vmem>>, vector<1x1916xbf16>
    %70 = arith.extf %69 : vector<1x1916xbf16> to vector<1x1916xf32>
    %c23 = arith.constant 23 : index
    %c0_52 = arith.constant 0 : index
    %71 = vector.load %arg4[%c23, %c0_52] : memref<25x1916xf32, #tpu.memory_space<vmem>>, vector<1x1916xf32>
    tpu.vector_store %arg4[%c23, %c0_52], %70 {strides = array<i32>} : memref<25x1916xf32, #tpu.memory_space<vmem>>, vector<1x1916xf32>,
    %c0_53 = arith.constant 0 : index
    %c132 = arith.constant 132 : index
    %72 = vector.load %arg0[%c0_53, %c132] : memref<1x2048xbf16, #tpu.memory_space<vmem>>, vector<1x1916xbf16>
    %73 = arith.extf %72 : vector<1x1916xbf16> to vector<1x1916xf32>
    %c24 = arith.constant 24 : index
    %c0_54 = arith.constant 0 : index
    %74 = vector.load %arg4[%c24, %c0_54] : memref<25x1916xf32, #tpu.memory_space<vmem>>, vector<1x1916xf32>
    tpu.vector_store %arg4[%c24, %c0_54], %73 {strides = array<i32>} : memref<25x1916xf32, #tpu.memory_space<vmem>>, vector<1x1916xf32>,
    %c0_55 = arith.constant 0 : index
    %c0_56 = arith.constant 0 : index
    %75 = vector.load %arg1[%c0_55, %c0_56] : memref<6x25xbf16, #tpu.memory_space<vmem>>, vector<6x25xbf16>
    %c0_57 = arith.constant 0 : index
    %c0_58 = arith.constant 0 : index
    %76 = vector.load %arg4[%c0_57, %c0_58] : memref<25x1916xf32, #tpu.memory_space<vmem>>, vector<25x1916xf32>
    %77 = arith.truncf %76 : vector<25x1916xf32> to vector<25x1916xbf16>
    %cst = arith.constant dense<0.000000e+00> : vector<6x1916xf32>
    %78 = tpu.matmul %75, %77, %cst {dimension_numbers = #tpu.dot_dimension_numbers<[1], [0], [0], [1], [0, 0, 1, 1], [], []>} : vector<6x25xbf16>, vector<25x1916xbf16>, vector<6x1916xf32> -> vector<6x1916xf32>
    %c0_59 = arith.constant 0 : index
    %c0_60 = arith.constant 0 : index
    %79 = vector.load %arg2[%c0_59, %c0_60] : memref<6x1xf32, #tpu.memory_space<vmem>>, vector<6x1xf32>
    %80 = vector.broadcast %79 : vector<6x1xf32> to vector<6x1916xf32>
    %81 = arith.addf %78, %80 : vector<6x1916xf32>
    %82 = math.tanh %81 : vector<6x1916xf32>
    %83 = vector.extract_strided_slice %82 {offsets = [0, 0], sizes = [6, 1883], strides = [1, 1]} : vector<6x1916xf32> to vector<6x1883xf32>
    %84 = vector.extract_strided_slice %82 {offsets = [0, 1], sizes = [6, 1883], strides = [1, 1]} : vector<6x1916xf32> to vector<6x1883xf32>
    %85 = arith.addf %83, %84 : vector<6x1883xf32>
    %86 = vector.extract_strided_slice %82 {offsets = [0, 32], sizes = [6, 1883], strides = [1, 1]} : vector<6x1916xf32> to vector<6x1883xf32>
    %87 = arith.addf %85, %86 : vector<6x1883xf32>
    %88 = vector.extract_strided_slice %82 {offsets = [0, 33], sizes = [6, 1883], strides = [1, 1]} : vector<6x1916xf32> to vector<6x1883xf32>
    %89 = arith.addf %87, %88 : vector<6x1883xf32>
    %c0_61 = arith.constant 0 : index
    %c0_62 = arith.constant 0 : index
    %90 = vector.load %arg5[%c0_61, %c0_62] : memref<6x1883xf32, #tpu.memory_space<vmem>>, vector<6x1883xf32>
    tpu.vector_store %arg5[%c0_61, %c0_62], %89 {strides = array<i32>} : memref<6x1883xf32, #tpu.memory_space<vmem>>, vector<6x1883xf32>,
    %91 = tpu.iota {dimensions = array<i32: 0>} : vector<27x14xi32>
    %92 = tpu.iota {dimensions = array<i32: 1>} : vector<27x14xi32>
    %c2_i32 = arith.constant 2 : i32
    %93 = vector.broadcast %c2_i32 : i32 to vector<27x14xi32>
    %94 = arith.muli %93, %92 : vector<27x14xi32>
    %95 = arith.cmpi eq, %91, %94 : vector<27x14xi32>
    %cst_63 = arith.constant 2.500000e-01 : f32
    %cst_64 = arith.constant 0.000000e+00 : f32
    %96 = vector.broadcast %cst_63 : f32 to vector<27x14xf32>
    %97 = vector.broadcast %cst_64 : f32 to vector<27x14xf32>
    %98 = arith.select %95, %96, %97 : vector<27x14xi1>, vector<27x14xf32>
    %c0_65 = arith.constant 0 : index
    %c0_66 = arith.constant 0 : index
    %99 = vector.load %arg5[%c0_65, %c0_66] : memref<6x1883xf32, #tpu.memory_space<vmem>>, vector<6x27xf32>
    %cst_67 = arith.constant dense<0.000000e+00> : vector<6x14xf32>
    %100 = tpu.matmul %99, %98, %cst_67 {dimension_numbers = #tpu.dot_dimension_numbers<[1], [0], [0], [1], [0, 0, 1, 1], [], []>} : vector<6x27xf32>, vector<27x14xf32>, vector<6x14xf32> -> vector<6x14xf32>
    %c0_68 = arith.constant 0 : index
    %c0_69 = arith.constant 0 : index
    %101 = vector.load %arg3[%c0_68, %c0_69] : memref<6x392xf32, #tpu.memory_space<vmem>>, vector<6x14xf32>
    tpu.vector_store %arg3[%c0_68, %c0_69], %100 {strides = array<i32>} : memref<6x392xf32, #tpu.memory_space<vmem>>, vector<6x14xf32>,
    %c0_70 = arith.constant 0 : index
    %c64_71 = arith.constant 64 : index
    %102 = vector.load %arg5[%c0_70, %c64_71] : memref<6x1883xf32, #tpu.memory_space<vmem>>, vector<6x27xf32>
    %cst_72 = arith.constant dense<0.000000e+00> : vector<6x14xf32>
    %103 = tpu.matmul %102, %98, %cst_72 {dimension_numbers = #tpu.dot_dimension_numbers<[1], [0], [0], [1], [0, 0, 1, 1], [], []>} : vector<6x27xf32>, vector<27x14xf32>, vector<6x14xf32> -> vector<6x14xf32>
    %c0_73 = arith.constant 0 : index
    %c14_74 = arith.constant 14 : index
    %104 = vector.load %arg3[%c0_73, %c14_74] : memref<6x392xf32, #tpu.memory_space<vmem>>, vector<6x14xf32>
    tpu.vector_store %arg3[%c0_73, %c14_74], %103 {strides = array<i32>} : memref<6x392xf32, #tpu.memory_space<vmem>>, vector<6x14xf32>,
    %c0_75 = arith.constant 0 : index
    %c128_76 = arith.constant 128 : index
    %105 = vector.load %arg5[%c0_75, %c128_76] : memref<6x1883xf32, #tpu.memory_space<vmem>>, vector<6x27xf32>
    %cst_77 = arith.constant dense<0.000000e+00> : vector<6x14xf32>
    %106 = tpu.matmul %105, %98, %cst_77 {dimension_numbers = #tpu.dot_dimension_numbers<[1], [0], [0], [1], [0, 0, 1, 1], [], []>} : vector<6x27xf32>, vector<27x14xf32>, vector<6x14xf32> -> vector<6x14xf32>
    %c0_78 = arith.constant 0 : index
    %c28 = arith.constant 28 : index
    %107 = vector.load %arg3[%c0_78, %c28] : memref<6x392xf32, #tpu.memory_space<vmem>>, vector<6x14xf32>
    tpu.vector_store %arg3[%c0_78, %c28], %106 {strides = array<i32>} : memref<6x392xf32, #tpu.memory_space<vmem>>, vector<6x14xf32>,
    %c0_79 = arith.constant 0 : index
    %c192 = arith.constant 192 : index
    %108 = vector.load %arg5[%c0_79, %c192] : memref<6x1883xf32, #tpu.memory_space<vmem>>, vector<6x27xf32>
    %cst_80 = arith.constant dense<0.000000e+00> : vector<6x14xf32>
    %109 = tpu.matmul %108, %98, %cst_80 {dimension_numbers = #tpu.dot_dimension_numbers<[1], [0], [0], [1], [0, 0, 1, 1], [], []>} : vector<6x27xf32>, vector<27x14xf32>, vector<6x14xf32> -> vector<6x14xf32>
    %c0_81 = arith.constant 0 : index
    %c42 = arith.constant 42 : index
    %110 = vector.load %arg3[%c0_81, %c42] : memref<6x392xf32, #tpu.memory_space<vmem>>, vector<6x14xf32>
    tpu.vector_store %arg3[%c0_81, %c42], %109 {strides = array<i32>} : memref<6x392xf32, #tpu.memory_space<vmem>>, vector<6x14xf32>,
    %c0_82 = arith.constant 0 : index
    %c256 = arith.constant 256 : index
    %111 = vector.load %arg5[%c0_82, %c256] : memref<6x1883xf32, #tpu.memory_space<vmem>>, vector<6x27xf32>
    %cst_83 = arith.constant dense<0.000000e+00> : vector<6x14xf32>
    %112 = tpu.matmul %111, %98, %cst_83 {dimension_numbers = #tpu.dot_dimension_numbers<[1], [0], [0], [1], [0, 0, 1, 1], [], []>} : vector<6x27xf32>, vector<27x14xf32>, vector<6x14xf32> -> vector<6x14xf32>
    %c0_84 = arith.constant 0 : index
    %c56 = arith.constant 56 : index
    %113 = vector.load %arg3[%c0_84, %c56] : memref<6x392xf32, #tpu.memory_space<vmem>>, vector<6x14xf32>
    tpu.vector_store %arg3[%c0_84, %c56], %112 {strides = array<i32>} : memref<6x392xf32, #tpu.memory_space<vmem>>, vector<6x14xf32>,
    %c0_85 = arith.constant 0 : index
    %c320 = arith.constant 320 : index
    %114 = vector.load %arg5[%c0_85, %c320] : memref<6x1883xf32, #tpu.memory_space<vmem>>, vector<6x27xf32>
    %cst_86 = arith.constant dense<0.000000e+00> : vector<6x14xf32>
    %115 = tpu.matmul %114, %98, %cst_86 {dimension_numbers = #tpu.dot_dimension_numbers<[1], [0], [0], [1], [0, 0, 1, 1], [], []>} : vector<6x27xf32>, vector<27x14xf32>, vector<6x14xf32> -> vector<6x14xf32>
    %c0_87 = arith.constant 0 : index
    %c70 = arith.constant 70 : index
    %116 = vector.load %arg3[%c0_87, %c70] : memref<6x392xf32, #tpu.memory_space<vmem>>, vector<6x14xf32>
    tpu.vector_store %arg3[%c0_87, %c70], %115 {strides = array<i32>} : memref<6x392xf32, #tpu.memory_space<vmem>>, vector<6x14xf32>,
    %c0_88 = arith.constant 0 : index
    %c384 = arith.constant 384 : index
    %117 = vector.load %arg5[%c0_88, %c384] : memref<6x1883xf32, #tpu.memory_space<vmem>>, vector<6x27xf32>
    %cst_89 = arith.constant dense<0.000000e+00> : vector<6x14xf32>
    %118 = tpu.matmul %117, %98, %cst_89 {dimension_numbers = #tpu.dot_dimension_numbers<[1], [0], [0], [1], [0, 0, 1, 1], [], []>} : vector<6x27xf32>, vector<27x14xf32>, vector<6x14xf32> -> vector<6x14xf32>
    %c0_90 = arith.constant 0 : index
    %c84 = arith.constant 84 : index
    %119 = vector.load %arg3[%c0_90, %c84] : memref<6x392xf32, #tpu.memory_space<vmem>>, vector<6x14xf32>
    tpu.vector_store %arg3[%c0_90, %c84], %118 {strides = array<i32>} : memref<6x392xf32, #tpu.memory_space<vmem>>, vector<6x14xf32>,
    %c0_91 = arith.constant 0 : index
    %c448 = arith.constant 448 : index
    %120 = vector.load %arg5[%c0_91, %c448] : memref<6x1883xf32, #tpu.memory_space<vmem>>, vector<6x27xf32>
    %cst_92 = arith.constant dense<0.000000e+00> : vector<6x14xf32>
    %121 = tpu.matmul %120, %98, %cst_92 {dimension_numbers = #tpu.dot_dimension_numbers<[1], [0], [0], [1], [0, 0, 1, 1], [], []>} : vector<6x27xf32>, vector<27x14xf32>, vector<6x14xf32> -> vector<6x14xf32>
    %c0_93 = arith.constant 0 : index
    %c98_94 = arith.constant 98 : index
    %122 = vector.load %arg3[%c0_93, %c98_94] : memref<6x392xf32, #tpu.memory_space<vmem>>, vector<6x14xf32>
    tpu.vector_store %arg3[%c0_93, %c98_94], %121 {strides = array<i32>} : memref<6x392xf32, #tpu.memory_space<vmem>>, vector<6x14xf32>,
    %c0_95 = arith.constant 0 : index
    %c512 = arith.constant 512 : index
    %123 = vector.load %arg5[%c0_95, %c512] : memref<6x1883xf32, #tpu.memory_space<vmem>>, vector<6x27xf32>
    %cst_96 = arith.constant dense<0.000000e+00> : vector<6x14xf32>
    %124 = tpu.matmul %123, %98, %cst_96 {dimension_numbers = #tpu.dot_dimension_numbers<[1], [0], [0], [1], [0, 0, 1, 1], [], []>} : vector<6x27xf32>, vector<27x14xf32>, vector<6x14xf32> -> vector<6x14xf32>
    %c0_97 = arith.constant 0 : index
    %c112 = arith.constant 112 : index
    %125 = vector.load %arg3[%c0_97, %c112] : memref<6x392xf32, #tpu.memory_space<vmem>>, vector<6x14xf32>
    tpu.vector_store %arg3[%c0_97, %c112], %124 {strides = array<i32>} : memref<6x392xf32, #tpu.memory_space<vmem>>, vector<6x14xf32>,
    %c0_98 = arith.constant 0 : index
    %c576 = arith.constant 576 : index
    %126 = vector.load %arg5[%c0_98, %c576] : memref<6x1883xf32, #tpu.memory_space<vmem>>, vector<6x27xf32>
    %cst_99 = arith.constant dense<0.000000e+00> : vector<6x14xf32>
    %127 = tpu.matmul %126, %98, %cst_99 {dimension_numbers = #tpu.dot_dimension_numbers<[1], [0], [0], [1], [0, 0, 1, 1], [], []>} : vector<6x27xf32>, vector<27x14xf32>, vector<6x14xf32> -> vector<6x14xf32>
    %c0_100 = arith.constant 0 : index
    %c126 = arith.constant 126 : index
    %128 = vector.load %arg3[%c0_100, %c126] : memref<6x392xf32, #tpu.memory_space<vmem>>, vector<6x14xf32>
    tpu.vector_store %arg3[%c0_100, %c126], %127 {strides = array<i32>} : memref<6x392xf32, #tpu.memory_space<vmem>>, vector<6x14xf32>,
    %c0_101 = arith.constant 0 : index
    %c640 = arith.constant 640 : index
    %129 = vector.load %arg5[%c0_101, %c640] : memref<6x1883xf32, #tpu.memory_space<vmem>>, vector<6x27xf32>
    %cst_102 = arith.constant dense<0.000000e+00> : vector<6x14xf32>
    %130 = tpu.matmul %129, %98, %cst_102 {dimension_numbers = #tpu.dot_dimension_numbers<[1], [0], [0], [1], [0, 0, 1, 1], [], []>} : vector<6x27xf32>, vector<27x14xf32>, vector<6x14xf32> -> vector<6x14xf32>
    %c0_103 = arith.constant 0 : index
    %c140 = arith.constant 140 : index
    %131 = vector.load %arg3[%c0_103, %c140] : memref<6x392xf32, #tpu.memory_space<vmem>>, vector<6x14xf32>
    tpu.vector_store %arg3[%c0_103, %c140], %130 {strides = array<i32>} : memref<6x392xf32, #tpu.memory_space<vmem>>, vector<6x14xf32>,
    %c0_104 = arith.constant 0 : index
    %c704 = arith.constant 704 : index
    %132 = vector.load %arg5[%c0_104, %c704] : memref<6x1883xf32, #tpu.memory_space<vmem>>, vector<6x27xf32>
    %cst_105 = arith.constant dense<0.000000e+00> : vector<6x14xf32>
    %133 = tpu.matmul %132, %98, %cst_105 {dimension_numbers = #tpu.dot_dimension_numbers<[1], [0], [0], [1], [0, 0, 1, 1], [], []>} : vector<6x27xf32>, vector<27x14xf32>, vector<6x14xf32> -> vector<6x14xf32>
    %c0_106 = arith.constant 0 : index
    %c154 = arith.constant 154 : index
    %134 = vector.load %arg3[%c0_106, %c154] : memref<6x392xf32, #tpu.memory_space<vmem>>, vector<6x14xf32>
    tpu.vector_store %arg3[%c0_106, %c154], %133 {strides = array<i32>} : memref<6x392xf32, #tpu.memory_space<vmem>>, vector<6x14xf32>,
    %c0_107 = arith.constant 0 : index
    %c768 = arith.constant 768 : index
    %135 = vector.load %arg5[%c0_107, %c768] : memref<6x1883xf32, #tpu.memory_space<vmem>>, vector<6x27xf32>
    %cst_108 = arith.constant dense<0.000000e+00> : vector<6x14xf32>
    %136 = tpu.matmul %135, %98, %cst_108 {dimension_numbers = #tpu.dot_dimension_numbers<[1], [0], [0], [1], [0, 0, 1, 1], [], []>} : vector<6x27xf32>, vector<27x14xf32>, vector<6x14xf32> -> vector<6x14xf32>
    %c0_109 = arith.constant 0 : index
    %c168 = arith.constant 168 : index
    %137 = vector.load %arg3[%c0_109, %c168] : memref<6x392xf32, #tpu.memory_space<vmem>>, vector<6x14xf32>
    tpu.vector_store %arg3[%c0_109, %c168], %136 {strides = array<i32>} : memref<6x392xf32, #tpu.memory_space<vmem>>, vector<6x14xf32>,
    %c0_110 = arith.constant 0 : index
    %c832 = arith.constant 832 : index
    %138 = vector.load %arg5[%c0_110, %c832] : memref<6x1883xf32, #tpu.memory_space<vmem>>, vector<6x27xf32>
    %cst_111 = arith.constant dense<0.000000e+00> : vector<6x14xf32>
    %139 = tpu.matmul %138, %98, %cst_111 {dimension_numbers = #tpu.dot_dimension_numbers<[1], [0], [0], [1], [0, 0, 1, 1], [], []>} : vector<6x27xf32>, vector<27x14xf32>, vector<6x14xf32> -> vector<6x14xf32>
    %c0_112 = arith.constant 0 : index
    %c182 = arith.constant 182 : index
    %140 = vector.load %arg3[%c0_112, %c182] : memref<6x392xf32, #tpu.memory_space<vmem>>, vector<6x14xf32>
    tpu.vector_store %arg3[%c0_112, %c182], %139 {strides = array<i32>} : memref<6x392xf32, #tpu.memory_space<vmem>>, vector<6x14xf32>,
    %c0_113 = arith.constant 0 : index
    %c1024 = arith.constant 1024 : index
    %141 = vector.load %arg5[%c0_113, %c1024] : memref<6x1883xf32, #tpu.memory_space<vmem>>, vector<6x27xf32>
    %cst_114 = arith.constant dense<0.000000e+00> : vector<6x14xf32>
    %142 = tpu.matmul %141, %98, %cst_114 {dimension_numbers = #tpu.dot_dimension_numbers<[1], [0], [0], [1], [0, 0, 1, 1], [], []>} : vector<6x27xf32>, vector<27x14xf32>, vector<6x14xf32> -> vector<6x14xf32>
    %c0_115 = arith.constant 0 : index
    %c196 = arith.constant 196 : index
    %143 = vector.load %arg3[%c0_115, %c196] : memref<6x392xf32, #tpu.memory_space<vmem>>, vector<6x14xf32>
    tpu.vector_store %arg3[%c0_115, %c196], %142 {strides = array<i32>} : memref<6x392xf32, #tpu.memory_space<vmem>>, vector<6x14xf32>,
    %c0_116 = arith.constant 0 : index
    %c1088 = arith.constant 1088 : index
    %144 = vector.load %arg5[%c0_116, %c1088] : memref<6x1883xf32, #tpu.memory_space<vmem>>, vector<6x27xf32>
    %cst_117 = arith.constant dense<0.000000e+00> : vector<6x14xf32>
    %145 = tpu.matmul %144, %98, %cst_117 {dimension_numbers = #tpu.dot_dimension_numbers<[1], [0], [0], [1], [0, 0, 1, 1], [], []>} : vector<6x27xf32>, vector<27x14xf32>, vector<6x14xf32> -> vector<6x14xf32>
    %c0_118 = arith.constant 0 : index
    %c210 = arith.constant 210 : index
    %146 = vector.load %arg3[%c0_118, %c210] : memref<6x392xf32, #tpu.memory_space<vmem>>, vector<6x14xf32>
    tpu.vector_store %arg3[%c0_118, %c210], %145 {strides = array<i32>} : memref<6x392xf32, #tpu.memory_space<vmem>>, vector<6x14xf32>,
    %c0_119 = arith.constant 0 : index
    %c1152 = arith.constant 1152 : index
    %147 = vector.load %arg5[%c0_119, %c1152] : memref<6x1883xf32, #tpu.memory_space<vmem>>, vector<6x27xf32>
    %cst_120 = arith.constant dense<0.000000e+00> : vector<6x14xf32>
    %148 = tpu.matmul %147, %98, %cst_120 {dimension_numbers = #tpu.dot_dimension_numbers<[1], [0], [0], [1], [0, 0, 1, 1], [], []>} : vector<6x27xf32>, vector<27x14xf32>, vector<6x14xf32> -> vector<6x14xf32>
    %c0_121 = arith.constant 0 : index
    %c224 = arith.constant 224 : index
    %149 = vector.load %arg3[%c0_121, %c224] : memref<6x392xf32, #tpu.memory_space<vmem>>, vector<6x14xf32>
    tpu.vector_store %arg3[%c0_121, %c224], %148 {strides = array<i32>} : memref<6x392xf32, #tpu.memory_space<vmem>>, vector<6x14xf32>,
    %c0_122 = arith.constant 0 : index
    %c1216 = arith.constant 1216 : index
    %150 = vector.load %arg5[%c0_122, %c1216] : memref<6x1883xf32, #tpu.memory_space<vmem>>, vector<6x27xf32>
    %cst_123 = arith.constant dense<0.000000e+00> : vector<6x14xf32>
    %151 = tpu.matmul %150, %98, %cst_123 {dimension_numbers = #tpu.dot_dimension_numbers<[1], [0], [0], [1], [0, 0, 1, 1], [], []>} : vector<6x27xf32>, vector<27x14xf32>, vector<6x14xf32> -> vector<6x14xf32>
    %c0_124 = arith.constant 0 : index
    %c238 = arith.constant 238 : index
    %152 = vector.load %arg3[%c0_124, %c238] : memref<6x392xf32, #tpu.memory_space<vmem>>, vector<6x14xf32>
    tpu.vector_store %arg3[%c0_124, %c238], %151 {strides = array<i32>} : memref<6x392xf32, #tpu.memory_space<vmem>>, vector<6x14xf32>,
    %c0_125 = arith.constant 0 : index
    %c1280 = arith.constant 1280 : index
    %153 = vector.load %arg5[%c0_125, %c1280] : memref<6x1883xf32, #tpu.memory_space<vmem>>, vector<6x27xf32>
    %cst_126 = arith.constant dense<0.000000e+00> : vector<6x14xf32>
    %154 = tpu.matmul %153, %98, %cst_126 {dimension_numbers = #tpu.dot_dimension_numbers<[1], [0], [0], [1], [0, 0, 1, 1], [], []>} : vector<6x27xf32>, vector<27x14xf32>, vector<6x14xf32> -> vector<6x14xf32>
    %c0_127 = arith.constant 0 : index
    %c252 = arith.constant 252 : index
    %155 = vector.load %arg3[%c0_127, %c252] : memref<6x392xf32, #tpu.memory_space<vmem>>, vector<6x14xf32>
    tpu.vector_store %arg3[%c0_127, %c252], %154 {strides = array<i32>} : memref<6x392xf32, #tpu.memory_space<vmem>>, vector<6x14xf32>,
    %c0_128 = arith.constant 0 : index
    %c1344 = arith.constant 1344 : index
    %156 = vector.load %arg5[%c0_128, %c1344] : memref<6x1883xf32, #tpu.memory_space<vmem>>, vector<6x27xf32>
    %cst_129 = arith.constant dense<0.000000e+00> : vector<6x14xf32>
    %157 = tpu.matmul %156, %98, %cst_129 {dimension_numbers = #tpu.dot_dimension_numbers<[1], [0], [0], [1], [0, 0, 1, 1], [], []>} : vector<6x27xf32>, vector<27x14xf32>, vector<6x14xf32> -> vector<6x14xf32>
    %c0_130 = arith.constant 0 : index
    %c266 = arith.constant 266 : index
    %158 = vector.load %arg3[%c0_130, %c266] : memref<6x392xf32, #tpu.memory_space<vmem>>, vector<6x14xf32>
    tpu.vector_store %arg3[%c0_130, %c266], %157 {strides = array<i32>} : memref<6x392xf32, #tpu.memory_space<vmem>>, vector<6x14xf32>,
    %c0_131 = arith.constant 0 : index
    %c1408 = arith.constant 1408 : index
    %159 = vector.load %arg5[%c0_131, %c1408] : memref<6x1883xf32, #tpu.memory_space<vmem>>, vector<6x27xf32>
    %cst_132 = arith.constant dense<0.000000e+00> : vector<6x14xf32>
    %160 = tpu.matmul %159, %98, %cst_132 {dimension_numbers = #tpu.dot_dimension_numbers<[1], [0], [0], [1], [0, 0, 1, 1], [], []>} : vector<6x27xf32>, vector<27x14xf32>, vector<6x14xf32> -> vector<6x14xf32>
    %c0_133 = arith.constant 0 : index
    %c280 = arith.constant 280 : index
    %161 = vector.load %arg3[%c0_133, %c280] : memref<6x392xf32, #tpu.memory_space<vmem>>, vector<6x14xf32>
    tpu.vector_store %arg3[%c0_133, %c280], %160 {strides = array<i32>} : memref<6x392xf32, #tpu.memory_space<vmem>>, vector<6x14xf32>,
    %c0_134 = arith.constant 0 : index
    %c1472 = arith.constant 1472 : index
    %162 = vector.load %arg5[%c0_134, %c1472] : memref<6x1883xf32, #tpu.memory_space<vmem>>, vector<6x27xf32>
    %cst_135 = arith.constant dense<0.000000e+00> : vector<6x14xf32>
    %163 = tpu.matmul %162, %98, %cst_135 {dimension_numbers = #tpu.dot_dimension_numbers<[1], [0], [0], [1], [0, 0, 1, 1], [], []>} : vector<6x27xf32>, vector<27x14xf32>, vector<6x14xf32> -> vector<6x14xf32>
    %c0_136 = arith.constant 0 : index
    %c294 = arith.constant 294 : index
    %164 = vector.load %arg3[%c0_136, %c294] : memref<6x392xf32, #tpu.memory_space<vmem>>, vector<6x14xf32>
    tpu.vector_store %arg3[%c0_136, %c294], %163 {strides = array<i32>} : memref<6x392xf32, #tpu.memory_space<vmem>>, vector<6x14xf32>,
    %c0_137 = arith.constant 0 : index
    %c1536 = arith.constant 1536 : index
    %165 = vector.load %arg5[%c0_137, %c1536] : memref<6x1883xf32, #tpu.memory_space<vmem>>, vector<6x27xf32>
    %cst_138 = arith.constant dense<0.000000e+00> : vector<6x14xf32>
    %166 = tpu.matmul %165, %98, %cst_138 {dimension_numbers = #tpu.dot_dimension_numbers<[1], [0], [0], [1], [0, 0, 1, 1], [], []>} : vector<6x27xf32>, vector<27x14xf32>, vector<6x14xf32> -> vector<6x14xf32>
    %c0_139 = arith.constant 0 : index
    %c308 = arith.constant 308 : index
    %167 = vector.load %arg3[%c0_139, %c308] : memref<6x392xf32, #tpu.memory_space<vmem>>, vector<6x14xf32>
    tpu.vector_store %arg3[%c0_139, %c308], %166 {strides = array<i32>} : memref<6x392xf32, #tpu.memory_space<vmem>>, vector<6x14xf32>,
    %c0_140 = arith.constant 0 : index
    %c1600 = arith.constant 1600 : index
    %168 = vector.load %arg5[%c0_140, %c1600] : memref<6x1883xf32, #tpu.memory_space<vmem>>, vector<6x27xf32>
    %cst_141 = arith.constant dense<0.000000e+00> : vector<6x14xf32>
    %169 = tpu.matmul %168, %98, %cst_141 {dimension_numbers = #tpu.dot_dimension_numbers<[1], [0], [0], [1], [0, 0, 1, 1], [], []>} : vector<6x27xf32>, vector<27x14xf32>, vector<6x14xf32> -> vector<6x14xf32>
    %c0_142 = arith.constant 0 : index
    %c322 = arith.constant 322 : index
    %170 = vector.load %arg3[%c0_142, %c322] : memref<6x392xf32, #tpu.memory_space<vmem>>, vector<6x14xf32>
    tpu.vector_store %arg3[%c0_142, %c322], %169 {strides = array<i32>} : memref<6x392xf32, #tpu.memory_space<vmem>>, vector<6x14xf32>,
    %c0_143 = arith.constant 0 : index
    %c1664 = arith.constant 1664 : index
    %171 = vector.load %arg5[%c0_143, %c1664] : memref<6x1883xf32, #tpu.memory_space<vmem>>, vector<6x27xf32>
    %cst_144 = arith.constant dense<0.000000e+00> : vector<6x14xf32>
    %172 = tpu.matmul %171, %98, %cst_144 {dimension_numbers = #tpu.dot_dimension_numbers<[1], [0], [0], [1], [0, 0, 1, 1], [], []>} : vector<6x27xf32>, vector<27x14xf32>, vector<6x14xf32> -> vector<6x14xf32>
    %c0_145 = arith.constant 0 : index
    %c336 = arith.constant 336 : index
    %173 = vector.load %arg3[%c0_145, %c336] : memref<6x392xf32, #tpu.memory_space<vmem>>, vector<6x14xf32>
    tpu.vector_store %arg3[%c0_145, %c336], %172 {strides = array<i32>} : memref<6x392xf32, #tpu.memory_space<vmem>>, vector<6x14xf32>,
    %c0_146 = arith.constant 0 : index
    %c1728 = arith.constant 1728 : index
    %174 = vector.load %arg5[%c0_146, %c1728] : memref<6x1883xf32, #tpu.memory_space<vmem>>, vector<6x27xf32>
    %cst_147 = arith.constant dense<0.000000e+00> : vector<6x14xf32>
    %175 = tpu.matmul %174, %98, %cst_147 {dimension_numbers = #tpu.dot_dimension_numbers<[1], [0], [0], [1], [0, 0, 1, 1], [], []>} : vector<6x27xf32>, vector<27x14xf32>, vector<6x14xf32> -> vector<6x14xf32>
    %c0_148 = arith.constant 0 : index
    %c350 = arith.constant 350 : index
    %176 = vector.load %arg3[%c0_148, %c350] : memref<6x392xf32, #tpu.memory_space<vmem>>, vector<6x14xf32>
    tpu.vector_store %arg3[%c0_148, %c350], %175 {strides = array<i32>} : memref<6x392xf32, #tpu.memory_space<vmem>>, vector<6x14xf32>,
    %c0_149 = arith.constant 0 : index
    %c1792 = arith.constant 1792 : index
    %177 = vector.load %arg5[%c0_149, %c1792] : memref<6x1883xf32, #tpu.memory_space<vmem>>, vector<6x27xf32>
    %cst_150 = arith.constant dense<0.000000e+00> : vector<6x14xf32>
    %178 = tpu.matmul %177, %98, %cst_150 {dimension_numbers = #tpu.dot_dimension_numbers<[1], [0], [0], [1], [0, 0, 1, 1], [], []>} : vector<6x27xf32>, vector<27x14xf32>, vector<6x14xf32> -> vector<6x14xf32>
    %c0_151 = arith.constant 0 : index
    %c364 = arith.constant 364 : index
    %179 = vector.load %arg3[%c0_151, %c364] : memref<6x392xf32, #tpu.memory_space<vmem>>, vector<6x14xf32>
    tpu.vector_store %arg3[%c0_151, %c364], %178 {strides = array<i32>} : memref<6x392xf32, #tpu.memory_space<vmem>>, vector<6x14xf32>,
    %c0_152 = arith.constant 0 : index
    %c1856 = arith.constant 1856 : index
    %180 = vector.load %arg5[%c0_152, %c1856] : memref<6x1883xf32, #tpu.memory_space<vmem>>, vector<6x27xf32>
    %cst_153 = arith.constant dense<0.000000e+00> : vector<6x14xf32>
    %181 = tpu.matmul %180, %98, %cst_153 {dimension_numbers = #tpu.dot_dimension_numbers<[1], [0], [0], [1], [0, 0, 1, 1], [], []>} : vector<6x27xf32>, vector<27x14xf32>, vector<6x14xf32> -> vector<6x14xf32>
    %c0_154 = arith.constant 0 : index
    %c378 = arith.constant 378 : index
    %182 = vector.load %arg3[%c0_154, %c378] : memref<6x392xf32, #tpu.memory_space<vmem>>, vector<6x14xf32>
    tpu.vector_store %arg3[%c0_154, %c378], %181 {strides = array<i32>} : memref<6x392xf32, #tpu.memory_space<vmem>>, vector<6x14xf32>,
    return
  }
}

module attributes {stable_mosaic.version = 11 : i64} {
  func.func @_fc_stack_kernel(%arg0: memref<2x400xbf16, #tpu.memory_space<vmem>>, %arg1: memref<400x120xbf16, #tpu.memory_space<vmem>>, %arg2: memref<1x120xf32, #tpu.memory_space<vmem>>, %arg3: memref<120x84xbf16, #tpu.memory_space<vmem>>, %arg4: memref<1x84xf32, #tpu.memory_space<vmem>>, %arg5: memref<84x10xbf16, #tpu.memory_space<vmem>>, %arg6: memref<1x10xf32, #tpu.memory_space<vmem>>, %arg7: memref<2x10xf32, #tpu.memory_space<vmem>>) attributes {dimension_semantics = [], scalar_prefetch = 0 : i64, scratch_operands = 0 : i64, tpu.core_type = #tpu.core_type<tc>} {
    %c0 = arith.constant 0 : index
    %c0_0 = arith.constant 0 : index
    %0 = vector.load %arg0[%c0, %c0_0] : memref<2x400xbf16, #tpu.memory_space<vmem>>, vector<2x400xbf16>
    %c0_1 = arith.constant 0 : index
    %c0_2 = arith.constant 0 : index
    %1 = vector.load %arg1[%c0_1, %c0_2] : memref<400x120xbf16, #tpu.memory_space<vmem>>, vector<400x120xbf16>
    %cst = arith.constant dense<0.000000e+00> : vector<2x120xf32>
    %2 = tpu.matmul %0, %1, %cst {dimension_numbers = #tpu.dot_dimension_numbers<[1], [0], [0], [1], [0, 0, 1, 1], [], []>} : vector<2x400xbf16>, vector<400x120xbf16>, vector<2x120xf32> -> vector<2x120xf32>
    %c0_3 = arith.constant 0 : index
    %c0_4 = arith.constant 0 : index
    %3 = vector.load %arg2[%c0_3, %c0_4] : memref<1x120xf32, #tpu.memory_space<vmem>>, vector<1x120xf32>
    %4 = vector.broadcast %3 : vector<1x120xf32> to vector<2x120xf32>
    %5 = arith.addf %2, %4 : vector<2x120xf32>
    %6 = math.tanh %5 : vector<2x120xf32>
    %7 = arith.truncf %6 : vector<2x120xf32> to vector<2x120xbf16>
    %c0_5 = arith.constant 0 : index
    %c0_6 = arith.constant 0 : index
    %8 = vector.load %arg3[%c0_5, %c0_6] : memref<120x84xbf16, #tpu.memory_space<vmem>>, vector<120x84xbf16>
    %cst_7 = arith.constant dense<0.000000e+00> : vector<2x84xf32>
    %9 = tpu.matmul %7, %8, %cst_7 {dimension_numbers = #tpu.dot_dimension_numbers<[1], [0], [0], [1], [0, 0, 1, 1], [], []>} : vector<2x120xbf16>, vector<120x84xbf16>, vector<2x84xf32> -> vector<2x84xf32>
    %c0_8 = arith.constant 0 : index
    %c0_9 = arith.constant 0 : index
    %10 = vector.load %arg4[%c0_8, %c0_9] : memref<1x84xf32, #tpu.memory_space<vmem>>, vector<1x84xf32>
    %11 = vector.broadcast %10 : vector<1x84xf32> to vector<2x84xf32>
    %12 = arith.addf %9, %11 : vector<2x84xf32>
    %13 = math.tanh %12 : vector<2x84xf32>
    %14 = arith.truncf %13 : vector<2x84xf32> to vector<2x84xbf16>
    %c0_10 = arith.constant 0 : index
    %c0_11 = arith.constant 0 : index
    %15 = vector.load %arg5[%c0_10, %c0_11] : memref<84x10xbf16, #tpu.memory_space<vmem>>, vector<84x10xbf16>
    %cst_12 = arith.constant dense<0.000000e+00> : vector<2x10xf32>
    %16 = tpu.matmul %14, %15, %cst_12 {dimension_numbers = #tpu.dot_dimension_numbers<[1], [0], [0], [1], [0, 0, 1, 1], [], []>} : vector<2x84xbf16>, vector<84x10xbf16>, vector<2x10xf32> -> vector<2x10xf32>
    %c0_13 = arith.constant 0 : index
    %c0_14 = arith.constant 0 : index
    %17 = vector.load %arg6[%c0_13, %c0_14] : memref<1x10xf32, #tpu.memory_space<vmem>>, vector<1x10xf32>
    %18 = vector.broadcast %17 : vector<1x10xf32> to vector<2x10xf32>
    %19 = arith.addf %16, %18 : vector<2x10xf32>
    %c0_15 = arith.constant 0 : index
    %c0_16 = arith.constant 0 : index
    %20 = vector.load %arg7[%c0_15, %c0_16] : memref<2x10xf32, #tpu.memory_space<vmem>>, vector<2x10xf32>
    tpu.vector_store %arg7[%c0_15, %c0_16], %19 {strides = array<i32>} : memref<2x10xf32, #tpu.memory_space<vmem>>, vector<2x10xf32>,
    return
  }
}

</mosaic_0001>

<bundles_post_ra>
// kernel: lenet5_forward.5
= control target key start
LH: loop header
LB: loop body
LE: loop exit
PB: predicated region body
PF: predicated region fallthrough
CT: control target
= control target key end

     0   :  { %vm367_vm0 = vcmask 1043456   ;;  %s868_s0 = inlined_call_operand.vmem [shape: bf16[2,400], index: 0, kind: input, shape index: {}]   ;;  %s869_s1 = inlined_call_operand.vmem [shape: bf16[400,120], index: 1, kind: input, shape index: {}]   ;;  %s870_s2 = inlined_call_operand.vmem [shape: f32[1,120], index: 2, kind: input, shape index: {}]   ;;  %s871_s3 = inlined_call_operand.vmem [shape: bf16[120,84], index: 3, kind: input, shape index: {}]   ;;  %s872_s4 = inlined_call_operand.vmem [shape: f32[1,84], index: 4, kind: input, shape index: {}]   ;;  %s873_s5 = inlined_call_operand.vmem [shape: bf16[84,10], index: 5, kind: input, shape index: {}]   ;;  %s874_s6 = inlined_call_operand.vmem [shape: f32[1,10], index: 6, kind: input, shape index: {}]   ;;  %s875_s7 = inlined_call_operand.hbm [shape: f32[2,10], index: 7, kind: output, shape index: {}]  }
   0x1   :  { %v631_v0 = vld [vmem:[%s869_s1 + $0x38] sm:$0xff]  ;;  %v630_v3 = vld [vmem:[%s869_s1 + $0x30] sm:$0xff]  ;;  %v629_v6 = vld [vmem:[%s869_s1 + $0x28] sm:$0xff] }
   0x2   :  { %v639_v1 = vld [vmem:[%s869_s1 + $0x78] sm:$0xff]  ;;  %245 = vmatpush.bf16.msra.mxu0 %v631_v0  ;;  %v638_v4 = vld [vmem:[%s869_s1 + $0x70] sm:$0xff]  ;;  %v637_v7 = vld [vmem:[%s869_s1 + $0x68] sm:$0xff] }
   0x3   :  { %v647_v2 = vld [vmem:[%s869_s1 + $0xb8] sm:$0xff]  ;;  %258 = vmatpush.bf16.msra.mxu1 %v639_v1  ;;  %v646_v5 = vld [vmem:[%s869_s1 + $0xb0] sm:$0xff]  ;;  %v648_v8 = vld [vmem:[%s869_s1 + $0xc0] sm:$0xff] }
   0x4   :  { %271 = vmatpush.bf16.msra.mxu2 %v647_v2  ;;  %v645_v9 = vld [vmem:[%s869_s1 + $0xa8] sm:$0xff]  ;;  %v28_v10 = vld [vmem:[%s868_s0] sm:$0xf]  ;;  %291 = vmatpush.bf16.msra.mxu3 %v648_v8  ;;  %v313_v11 = vld [vmem:[%s871_s3 + $0x38] sm:$0xf] }
   0x5   :  { %84 = vst [vmem:[#allocation1] ss:$9 sm:$0xff] %v28_v10  ;;  %v628_v12 = vld [vmem:[%s869_s1 + $0x20] sm:$0xff]  ;;  %v347_v13 = vunpack.c.l.b16 %v313_v11 }
   0x6   :  { %246 = vmatpush.bf16.msra.mxu0 %v630_v3  ;;  %v636_v14 = vld [vmem:[%s869_s1 + $0x60] sm:$0xff] }
   0x7   :  { %259 = vmatpush.bf16.msra.mxu1 %v638_v4  ;;  %v644_v15 = vld [vmem:[%s869_s1 + $0xa0] sm:$0xff]  ;;  %v355_v16 = vpack.c.b16 %v347_v13, %v347_v13 }
   0x8   :  { %272 = vmatpush.bf16.msra.mxu2 %v646_v5 }
   0xa   :  { %247 = vmatpush.bf16.msra.mxu0 %v629_v6 }
   0xb   :  { %260 = vmatpush.bf16.msra.mxu1 %v637_v7 }
   0xc   :  { %273 = vmatpush.bf16.msra.mxu2 %v645_v9 }
   0xd   :  { %12 = vsyncpa [#allocation3], 0  ;;  %vm242_vm1 = vcmask 130048   ;;  %v369_v17 = vsel %vm367_vm0, %v355_v16, 0  ;;  %v627_v18 = vld [vmem:[%s869_s1 + $0x18] sm:$0xff]  ;;  %v655_v22 = vld [vmem:[%s871_s3 + $0x30] sm:$0xff] }
   0xe   :  { %248 = vmatpush.bf16.msra.mxu0 %v628_v12  ;;  %v635_v19 = vld [vmem:[%s869_s1 + $0x58] sm:$0xff]  ;;  %371 = vmatpush.bf16.msrb.mxu3 %v369_v17  ;;  %v626_v23 = vld [vmem:[%s869_s1 + $0x10] sm:$0xff]  ;;  %v654_v26 = vld [vmem:[%s871_s3 + $0x28] sm:$0xff]  ;;  %vm438_vm2 = vcmask 1041408   ;;  %vm363_vm3 = vcmask 982016   ;;  %vm434_vm4 = vcmask 687104  }
   0xf   :  { %261 = vmatpush.bf16.msra.mxu1 %v636_v14  ;;  %v643_v20 = vld [vmem:[%s869_s1 + $0x98] sm:$0xff]  ;;  %v634_v24 = vld [vmem:[%s869_s1 + $0x50] sm:$0xff]  ;;  %v625_v27 = vld [vmem:[%s869_s1 + $0x8] sm:$0xff]  ;;  %s695_s12 = smov [#allocation2]   ;;  %vm455_vm5 = vcmask 74752  }
  0x10   :  { %274 = vmatpush.bf16.msra.mxu2 %v644_v15  ;;  %v88_v21 = vld [vmem:[#allocation1 + $0x1b] sm:$0xff]  ;;  %v642_v25 = vld [vmem:[%s869_s1 + $0x90] sm:$0xff]  ;;  %v633_v28 = vld [vmem:[%s869_s1 + $0x48] sm:$0xff]  ;;  %s462_s13 = sshll.u32 %s695_s12, 4  ;;  %s463_s13 = int_to_ptr.vmem [resolvable:$true] %s462_s13 }
  0x11   :  { %573 = vmatmul.msk.bf16.vlgmr.msra.gmra.mxu3 %vm242_vm1, %v88_v21  ;;  %v641_v29 = vld [vmem:[%s869_s1 + $0x88] sm:$0xff]  ;;  %v624_v30 = vld [vmem:[%s869_s1] sm:$0xff]  ;;  %v87_v35 = vld [vmem:[#allocation1 + $0x12] sm:$0xff] }
  0x12   :  { %249 = vmatpush.bf16.msra.mxu0 %v627_v18  ;;  %372 = vmatpush.bf16.msrb.mxu3 %v655_v22  ;;  %v632_v31 = vld [vmem:[%s869_s1 + $0x40] sm:$0xff]  ;;  %v86_v34 = vld [vmem:[#allocation1 + $0x9] sm:$0xff]  ;;  %v652_v37 = vld [vmem:[%s871_s3 + $0x18] sm:$0xff] }
  0x13   :  { %262 = vmatpush.bf16.msra.mxu1 %v635_v19  ;;  %v640_v32 = vld [vmem:[%s869_s1 + $0x80] sm:$0xff]  ;;  %v651_v38 = vld [vmem:[%s871_s3 + $0x10] sm:$0xff]  ;;  %v650_v39 = vld [vmem:[%s871_s3 + $0x8] sm:$0xff]  ;;  %s464_s1 = sshll.u32 %s875_s7, 4  ;;  %s465_s1 = int_to_ptr.hbm [resolvable:$true] %s464_s1 }
  0x14   :  { %275 = vmatpush.bf16.msra.mxu2 %v643_v20  ;;  %v85_v33 = vld [vmem:[#allocation1] sm:$0xff]  ;;  %v396_v42 = vld [vmem:[%s873_s5 + $0x28] sm:$0x3]  ;;  %v659_v49 = vld [vmem:[%s873_s5 + $0x18] sm:$0xff] }
  0x15   :  { %v653_v36 = vld [vmem:[%s871_s3 + $0x20] sm:$0xff]  ;;  %v422_v43 = vunpack.c.l.b16 %v396_v42  ;;  %v658_v62 = vld [vmem:[%s873_s5 + $0x10] sm:$0xff]  ;;  %v657_v63 = vld [vmem:[%s873_s5 + $0x8] sm:$0xff] }
  0x16   :  { %250 = vmatpush.bf16.msra.mxu0 %v626_v23  ;;  %373 = vmatpush.bf16.msrb.mxu3 %v654_v26  ;;  %v649_v40 = vld [vmem:[%s871_s3] sm:$0xff] }
  0x17   :  { %263 = vmatpush.bf16.msra.mxu1 %v634_v24  ;;  %v428_v44 = vpack.c.b16 %v422_v43, %v422_v43  ;;  %v660_v46 = vld [vmem:[%s873_s5 + $0x20] sm:$0xff] }
  0x18   :  { %276 = vmatpush.bf16.msra.mxu2 %v642_v25  ;;  %v662_v47 = vld [vmem:[%s870_s2] ss:$0 sm:$0xff] }
  0x19   :  { %v440_v45 = vsel %vm438_vm2, %v428_v44, 0  ;;  %v656_v0 = vld [vmem:[%s873_s5] sm:$0xff] }
  0x1a   :  { %251 = vmatpush.bf16.msra.mxu0 %v625_v27  ;;  %374 = vmatpush.bf16.msrb.mxu3 %v653_v36  ;;  %v663_v1 = vld [vmem:[%s872_s4] ss:$0 sm:$0xff] }
  0x1b   :  { %264 = vmatpush.bf16.msra.mxu1 %v633_v28  ;;  %v664_v7 = vld [vmem:[%s874_s6] ss:$0 sm:$0xff] }
  0x1c   :  { %277 = vmatpush.bf16.msra.mxu2 %v641_v29 }
  0x1e   :  { %252 = vmatpush.bf16.msra.mxu0 %v624_v30  ;;  %375 = vmatpush.bf16.msrb.mxu3 %v652_v37 }
  0x1f   :  { %265 = vmatpush.bf16.msra.mxu1 %v632_v31 }
  0x20   :  { %278 = vmatpush.bf16.msra.mxu2 %v640_v32 }
  0x21   :  { %253 = vmatmul.bf16.vlgmr.msra.gmra.mxu0 %v85_v33 }
  0x22   :  { %266 = vmatmul.bf16.vlgmr.msra.gmra.mxu1 %v86_v34  ;;  %376 = vmatpush.bf16.msrb.mxu3 %v651_v38 }
  0x23   :  { %279 = vmatmul.bf16.vlgmr.msra.gmra.mxu2 %v87_v35  ;;  %444 = vmatpush.bf16.msrb.mxu0 %v440_v45 }
  0x26   :  { %377 = vmatpush.bf16.msrb.mxu3 %v650_v39 }
  0x27   :  { %445 = vmatpush.bf16.msrb.mxu0 %v660_v46 }
  0x2a   :  { %378 = vmatpush.bf16.msrb.mxu3 %v649_v40 }
  0x2b   :  { %446 = vmatpush.bf16.msrb.mxu0 %v659_v49 }
  0x2f   :  { %447 = vmatpush.bf16.msrb.mxu0 %v658_v62 }
  0x33   :  { %448 = vmatpush.bf16.msrb.mxu0 %v657_v63 }
  0x37   :  { %449 = vmatpush.bf16.msrb.mxu0 %v656_v0 }
  0x94   :  { %v293_v41 = vpop.f32.mrf.mxu3 }
  0x9c   :  { %v295_v48 = vpop.f32.mrf.mxu3 }
  0x9e   :  { %v254_v50 = vpop.f32.mrf.mxu0 }
  0x9f   :  { %v267_v51 = vpop.f32.mrf.mxu1  ;;  %v255_v52 = vadd.f32 %v662_v47, %v254_v50 }
  0xa1   :  { %v268_v53 = vadd.f32 %v267_v51, %v255_v52 }
  0xa6   :  { %v280_v54 = vpop.f32.mrf.mxu2  ;;  %v256_v56 = vpop.f32.mrf.mxu0 }
  0xa7   :  { %v281_v55 = vadd.f32 %v280_v54, %v268_v53  ;;  %v269_v57 = vpop.f32.mrf.mxu1 }
  0xa9   :  { %v294_v58 = vadd.f32 %v293_v41, %v281_v55 }
  0xab   :  { %665 = vtanh.f32 %v294_v58 }
  0xae   :  { %v282_v59 = vpop.f32.mrf.mxu2 }
  0xb1   :  { %v666_v60 = vpop.eup %665 }
  0xb2   :  { %v298_v61 = vpack.c.bf16 %v666_v60, %v666_v60 }
  0xb4   :  { %602 = vmatmul.msk.bf16.vlgmr.msrb.gmra.mxu3 %vm363_vm3, %v298_v61 }
 0x137   :  { %v380_v2 = vpop.f32.mrf.mxu3 }
 0x138   :  { %v381_v3 = vadd.f32 %v663_v1, %v380_v2 }
 0x13a   :  { %667 = vtanh.f32 %v381_v3 }
 0x13f   :  { %v382_v4 = vpop.f32.mrf.mxu3 }
 0x140   :  { %v668_v5 = vpop.eup %667 }
 0x141   :  { %v385_v6 = vpack.c.bf16 %v668_v5, %v668_v5 }
 0x143   :  { %623 = vmatmul.msk.bf16.vlgmr.msrb.gmra.mxu0 %vm434_vm4, %v385_v6 }
 0x1c0   :  { %v451_v8 = vpop.f32.mrf.mxu0 }
 0x1c1   :  { %v452_v9 = vadd.f32 %v664_v7, %v451_v8 }
 0x1c3   :  { %456 = vst.msk [vmem:[#allocation2] sm:$0x3] %vm455_vm5, %v452_v9 }
 0x1c4   :  { %467 = dma.vmem_to_hbm [thread:$0]  %s463_s13, 32, %s465_s1, [#allocation3]  }
 0x1c8   :  { %v453_v10 = vpop.f32.mrf.mxu0 }
 0x1c9   :  { %693 = dma.done.wait [#allocation3], 32  }
 0x1ca   :  { %694 = vsyncadd [#allocation3], 4294967264 }
 0x1cb   :  { %472 = vsyncpa [#allocation3], 1 }

// kernel: lenet5_forward.4
= control target key start
LH: loop header
LB: loop body
LE: loop exit
PB: predicated region body
PF: predicated region fallthrough
CT: control target
= control target key end

     0   :  { %s1720_s9 = smov 72   ;;  %s1721_s10 = smov 85   ;;  %vm22_vm0 = vcmask 619520   ;;  %vm448_vm1 = vcmask 695296   ;;  %vm49_vm2 = vcmask 621574   ;;  %vm53_vm3 = vcmask 617472   ;;  %s2564_s0 = inlined_call_operand.vmem [shape: bf16[6,392], index: 0, kind: input, shape index: {}]   ;;  %s2565_s1 = inlined_call_operand.vmem [shape: bf16[16,150], index: 1, kind: input, shape index: {}]   ;;  %s2566_s2 = inlined_call_operand.vmem [shape: f32[16,1], index: 2, kind: input, shape index: {}]   ;;  %s2567_s3 = inlined_call_operand.vmem [shape: f32[16,50], index: 3, kind: output, shape index: {}]  }
   0x1   :  { %v1786_v0 = vld [vmem:[%s2564_s0] sm:$0x77]  ;;  %v1791_v1 = vld [vmem:[%s2564_s0 + $0x8] sm:$0x77]  ;;  %s1722_s11 = smov 83   ;;  %s1723_s12 = smov 71  }
   0x2   :  { %v1796_v2 = vld [vmem:[%s2564_s0] sm:$0x77]  ;;  %v544_v3 = vunpack.c.h.bf16 %v1786_v0  ;;  %v545_v4 = vunpack.c.l.bf16 %v1791_v1  ;;  %v435_v5 = vld [vmem:[%s2564_s0 + $0x8] sm:$0x7]  ;;  %s1724_s13 = smov 84   ;;  %s1725_s22 = smov 82   ;;  %v543_v47 = vunpack.c.l.bf16 %v1786_v0 }
   0x3   :  { %v437_v6 = vunpack.c.h.bf16 %v1796_v2  ;;  %v486_v7 = vld [vmem:[%s2564_s0] sm:$0x77]  ;;  %v487_v8 = vld [vmem:[%s2564_s0 + $0x8] sm:$0x7]  ;;  %v438_v9 = vunpack.c.l.bf16 %v435_v5  ;;  %s1726_s27 = smov 97   ;;  %s1727_s28 = smov 96  }
   0x4   :  { %v489_v10 = vunpack.c.h.bf16 %v486_v7  ;;  %v490_v11 = vunpack.c.l.bf16 %v487_v8  ;;  %v1813_v12 = vld [vmem:[%s2564_s0] sm:$0x77]  ;;  %v1818_v13 = vld [vmem:[%s2564_s0 + $0x8] sm:$0x77]  ;;  %v1596_v14 = vpack.i.bf16 %v545_v4, %v544_v3  ;;  %v488_v43 = vunpack.c.l.bf16 %v486_v7  ;;  %s1728_s18 = smov 86   ;;  %s1729_s19 = smov 99  }
   0x5   :  { %v572_v15 = vunpack.c.h.bf16 %v1813_v12  ;;  %v573_v16 = vunpack.c.l.bf16 %v1818_v13  ;;  %v1825_v17 = vld [vmem:[%s2564_s0] sm:$0x77]  ;;  %v458_v18 = vld [vmem:[%s2564_s0 + $0x8] sm:$0x7]  ;;  %v1606_v19 = vpack.i.bf16 %v438_v9, %v437_v6  ;;  %v571_v55 = vunpack.c.l.bf16 %v1813_v12  ;;  %s1731_s23 = smov 100   ;;  %s1733_s14 = smov 111  }
   0x6   :  { %v495_v20 = vrot.slane %v489_v10, 4  ;;  %v496_v21 = vrot.slane %v490_v11, 4  ;;  %v460_v22 = vunpack.c.h.bf16 %v1825_v17  ;;  %v515_v23 = vld [vmem:[%s2564_s0] sm:$0x77]  ;;  %v516_v24 = vld [vmem:[%s2564_s0 + $0x8] sm:$0x7]  ;;  %1597 = vrot.lane.b32.xlu1 %v1596_v14, %s1720_s9  ;;  %v461_v27 = vunpack.c.l.bf16 %v458_v18 }
   0x7   :  { %v580_v25 = vrot.slane %v572_v15, 2  ;;  %v581_v26 = vrot.slane %v573_v16, 2  ;;  %v518_v28 = vunpack.c.h.bf16 %v515_v23  ;;  %1607 = vrot.lane.b32.xlu2 %v1606_v19, %s1721_s10  ;;  %v519_v31 = vunpack.c.l.bf16 %v516_v24  ;;  %v1845_v39 = vld [vmem:[%s2564_s0] sm:$0x77]  ;;  %v351_v40 = vld [vmem:[%s2564_s0 + $0x8] sm:$0x7] }
   0x8   :  { %v1586_v29 = vpack.i.bf16 %v496_v21, %v495_v20  ;;  %v466_v30 = vrot.slane %v460_v22, 2  ;;  %v467_v32 = vrot.slane %v461_v27, 2  ;;  %v517_v38 = vunpack.c.l.bf16 %v515_v23  ;;  %v1853_v41 = vld [vmem:[%s2564_s0] sm:$0x77]  ;;  %v380_v42 = vld [vmem:[%s2564_s0 + $0x8] sm:$0x7] }
   0x9   :  { %v524_v33 = vrot.slane %v518_v28, 6  ;;  %v525_v34 = vrot.slane %v519_v31, 6  ;;  %v1601_v35 = vpack.i.bf16 %v581_v26, %v580_v25  ;;  %v353_v45 = vunpack.c.h.bf16 %v1845_v39  ;;  %v408_v57 = vld [vmem:[%s2564_s0] sm:$0x77]  ;;  %v409_v58 = vld [vmem:[%s2564_s0 + $0x8] sm:$0x7] }
   0xa   :  { %1587 = vrot.lane.b32.xlu0 %v1586_v29, %s1722_s11  ;;  %v1611_v36 = vpack.i.bf16 %v467_v32, %v466_v30  ;;  %v523_v44 = vrot.slane %v517_v38, 6  ;;  %v354_v46 = vunpack.c.l.bf16 %v351_v40  ;;  %v382_v48 = vunpack.c.h.bf16 %v1853_v41  ;;  %v1876_v0 = vld [vmem:[%s2564_s0] sm:$0x77]  ;;  %v302_v3 = vld [vmem:[%s2564_s0 + $0x8] sm:$0x7]  ;;  %s1734_s21 = smov 114  }
   0xb   :  { %v1591_v37 = vpack.i.bf16 %v525_v34, %v524_v33  ;;  %v383_v49 = vunpack.c.l.bf16 %v380_v42  ;;  %v494_v50 = vrot.slane %v488_v43, 4  ;;  %v359_v51 = vrot.slane %v353_v45, 2  ;;  %v272_v9 = vld [vmem:[%s2564_s0] sm:$0x77]  ;;  %v273_v10 = vld [vmem:[%s2564_s0 + $0x8] sm:$0x7] }
   0xc   :  { %v360_v52 = vrot.slane %v354_v46, 2  ;;  %v388_v53 = vrot.slane %v382_v48, 4  ;;  %v579_v60 = vrot.slane %v571_v55, 2  ;;  %v411_v61 = vunpack.c.h.bf16 %v408_v57  ;;  %v1893_v12 = vld [vmem:[%s2564_s0] sm:$0x77]  ;;  %s1735_s5 = smov 112  }
   0xd   :  { %v389_v54 = vrot.slane %v383_v49, 4  ;;  %v412_v62 = vunpack.c.l.bf16 %v409_v58  ;;  %v459_v63 = vunpack.c.l.bf16 %v1825_v17  ;;  %v436_v6 = vunpack.c.l.bf16 %v1796_v2  ;;  %v328_v2 = vld [vmem:[%s2564_s0 + $0x8] sm:$0x7]  ;;  %v1907_v28 = vld [vmem:[%s2564_s0] sm:$0x77]  ;;  %s1739_s25 = smov 68  }
   0xe   :  { %1602 = vrot.lane.b32.xlu1 %v1601_v35, %s1723_s12  ;;  %v1616_v56 = vpack.i.bf16 %v360_v52, %v359_v51  ;;  %v417_v4 = vrot.slane %v411_v61, 6  ;;  %v304_v7 = vunpack.c.h.bf16 %v1876_v0  ;;  %v305_v8 = vunpack.c.l.bf16 %v302_v3  ;;  %v244_v29 = vld [vmem:[%s2564_s0 + $0x8] sm:$0x7]  ;;  %v220_v38 = vld [vmem:[%s2564_s0] sm:$0x77]  ;;  %s1741_s26 = smov 127  }
   0xf   :  { %1612 = vrot.lane.b32.xlu2 %v1611_v36, %s1724_s13  ;;  %v1621_v59 = vpack.i.bf16 %v389_v54, %v388_v53  ;;  %v418_v5 = vrot.slane %v412_v62, 6  ;;  %v465_v11 = vrot.slane %v459_v63, 2  ;;  %v275_v15 = vunpack.c.h.bf16 %v272_v9  ;;  %v221_v40 = vld [vmem:[%s2564_s0 + $0x8] sm:$0x7]  ;;  %v1937_v52 = vld [vmem:[%s2564_s0] sm:$0x77] }
  0x10   :  { %v276_v16 = vunpack.c.l.bf16 %v273_v10  ;;  %v310_v17 = vrot.slane %v304_v7, 6  ;;  %v311_v18 = vrot.slane %v305_v8, 6  ;;  %v330_v19 = vunpack.c.h.bf16 %v1893_v12  ;;  %v137_v42 = vld [vmem:[%s2564_s0 + $0x8] sm:$0x7]  ;;  %v1949_v58 = vld [vmem:[%s2564_s0] sm:$0x77] }
  0x11   :  { %v1626_v14 = vpack.i.bf16 %v418_v5, %v417_v4  ;;  %v331_v20 = vunpack.c.l.bf16 %v328_v2  ;;  %v281_v21 = vrot.slane %v275_v15, 4  ;;  %v381_v26 = vunpack.c.l.bf16 %v1853_v41  ;;  %v1925_v41 = vld [vmem:[%s2564_s0] sm:$0x77]  ;;  %v195_v53 = vld [vmem:[%s2564_s0 + $0x8] sm:$0x7]  ;;  %s1752_s29 = smov 32  }
  0x12   :  { %1592 = vrot.lane.b32.xlu0 %v1591_v37, %s1725_s22  ;;  %v282_v22 = vrot.slane %v276_v16, 4  ;;  %v1636_v23 = vpack.i.bf16 %v311_v18, %v310_v17  ;;  %v410_v27 = vunpack.c.l.bf16 %v408_v57  ;;  %v352_v30 = vunpack.c.l.bf16 %v1845_v39  ;;  %v16_v61 = vld [vmem:[%s2564_s0 + $0x8] sm:$0x7]  ;;  %v1972_v8 = vld [vmem:[%s2564_s0] sm:$0x77]  ;;  %s1753_s30 = smov 76  }
  0x13   :  { %v1641_v24 = vpack.i.bf16 %v331_v20, %v330_v19  ;;  %v387_v31 = vrot.slane %v381_v26, 4  ;;  %v246_v32 = vunpack.c.h.bf16 %v1907_v28  ;;  %v247_v33 = vunpack.c.l.bf16 %v244_v29  ;;  %v56_v7 = vld [vmem:[%s2564_s0 + $0x8] sm:$0x7]  ;;  %v1987_v26 = vld [vmem:[%s2564_s0] sm:$0x77]  ;;  %s1754_s6 = smov 5  }
  0x14   :  { %v1631_v25 = vpack.i.bf16 %v282_v22, %v281_v21  ;;  %v416_v34 = vrot.slane %v410_v27, 6  ;;  %v358_v35 = vrot.slane %v352_v30, 2  ;;  %v274_v39 = vunpack.c.l.bf16 %v272_v9  ;;  %v87_v9 = vld [vmem:[%s2564_s0 + $0x8] sm:$0x7]  ;;  %s1755_s7 = smov 15   ;;  %s1756_s8 = smov 20  }
  0x15   :  { %v252_v36 = vrot.slane %v246_v32, 2  ;;  %v253_v37 = vrot.slane %v247_v33, 2  ;;  %v223_v43 = vunpack.c.h.bf16 %v220_v38  ;;  %v140_v48 = vunpack.c.l.bf16 %v137_v42  ;;  %v1992_v27 = vld [vmem:[%s2564_s0 + $0x8] sm:$0x77]  ;;  %s1762_s15 = smov 45  }
  0x16   :  { %526 = vrot.lane.b32.xlu1 %v523_v44, %s1725_s22  ;;  %v224_v44 = vunpack.c.l.bf16 %v221_v40  ;;  %v280_v46 = vrot.slane %v274_v39, 4  ;;  %v303_v54 = vunpack.c.l.bf16 %v1876_v0  ;;  %v329_v55 = vunpack.c.l.bf16 %v1893_v12  ;;  %v114_v32 = vld [vmem:[%s2564_s0 + $0x8] sm:$0x7] }
  0x17   :  { %551 = vrot.lane.b32.xlu2 %v543_v47, %s1720_s9  ;;  %v1651_v45 = vpack.i.bf16 %v253_v37, %v252_v36  ;;  %v139_v47 = vunpack.c.h.bf16 %v1925_v41  ;;  %v146_v51 = vrot.slane %v140_v48, 2  ;;  %v198_v57 = vunpack.c.l.bf16 %v195_v53 }
  0x18   :  { %v1646_v49 = vpack.i.bf16 %v224_v44, %v223_v43  ;;  %v309_v62 = vrot.slane %v303_v54, 6  ;;  %v168_v63 = vunpack.c.h.bf16 %v1949_v58  ;;  %v19_v3 = vunpack.c.l.bf16 %v16_v61 }
  0x19   :  { %v204_v5 = vrot.slane %v198_v57, 6  ;;  %v222_v15 = vunpack.c.l.bf16 %v220_v38  ;;  %v89_v16 = vunpack.c.h.bf16 %v1972_v8  ;;  %v90_v17 = vunpack.c.l.bf16 %v87_v9 }
  0x1a   :  { %497 = vrot.lane.b32.xlu0 %v494_v50, %s1722_s11  ;;  %v145_v50 = vrot.slane %v139_v47, 2  ;;  %23 = vst.msk [vmem:[#allocation2 + $0x10] sm:$0x3f] %vm22_vm0, %v19_v3  ;;  %v174_v10 = vrot.slane %v168_v63, 4  ;;  %s1737_s11 = smov 126   ;;  %v674_v30 = vunpack.c.h.bf16 %v1987_v26  ;;  %v138_v33 = vunpack.c.l.bf16 %v1925_v41 }
  0x1b   :  { %v95_v21 = vrot.slane %v89_v16, 6  ;;  %v96_v22 = vrot.slane %v90_v17, 6  ;;  %v117_v37 = vunpack.c.l.bf16 %v114_v32  ;;  %v196_v43 = vunpack.c.l.bf16 %v1937_v52  ;;  %v2060_v3 = vld [vmem:[%s2564_s0 + $0x8] sm:$0x77] }
  0x1c   :  { %v144_v40 = vrot.slane %v138_v33, 2  ;;  %v167_v47 = vunpack.c.l.bf16 %v1949_v58  ;;  %v88_v54 = vunpack.c.l.bf16 %v1972_v8  ;;  %vm474_vm4 = vcmask 687104  }
  0x1d   :  { %v608_v8 = vunpack.c.l.bf16 %v2060_v3  ;;  %vm559_vm5 = vcmask 588800   ;;  %vm396_vm6 = vcmask 785408   ;;  %vm80_vm7 = vcmask 621572  }
  0x1e   :  { %1617 = vrot.lane.b32.xlu1 %v1616_v56, %s1726_s27  ;;  %v197_v56 = vunpack.c.h.bf16 %v1937_v52  ;;  %v173_v53 = vrot.slane %v167_v47, 4  ;;  %v94_v58 = vrot.slane %v88_v54, 6  ;;  %vm84_vm8 = vcmask 615424  }
  0x1f   :  { %1622 = vrot.lane.b32.xlu2 %v1621_v59, %s1727_s28  ;;  %v166_v59 = vld [vmem:[%s2564_s0 + $0x8] sm:$0x7]  ;;  %vm591_vm9 = vcmask 580608   ;;  %vm532_vm10 = vcmask 670720   ;;  %vm111_vm11 = vcmask 621570   ;;  %vm503_vm12 = vcmask 678912  }
  0x20   :  { %v169_v0 = vunpack.c.l.bf16 %v166_v59  ;;  %v203_v4 = vrot.slane %v197_v56, 6  ;;  %v2042_v56 = vld [vmem:[%s2564_s0 + $0x8] sm:$0x77]  ;;  %vm341_vm13 = vcmask 801792   ;;  %v609_v54 = vunpack.c.h.bf16 %v2060_v3 }
  0x21   :  { %v643_v63 = vunpack.c.l.bf16 %v2042_v56  ;;  %vm367_vm14 = vcmask 793600   ;;  %vm425_vm15 = vcmask 703488  }
  0x22   :  { %583 = vrot.lane.b32.xlu0 %v579_v60, %s1723_s12  ;;  %v1656_v60 = vpack.i.bf16 %v146_v51, %v145_v50  ;;  %v1666_v12 = vpack.i.bf16 %v204_v5, %v203_v4  ;;  %v202_v50 = vrot.slane %v196_v43, 6 }
  0x26   :  { %442 = vrot.lane.b32.xlu1 %v436_v6, %s1721_s10  ;;  %s1730_s10 = smov 98   ;;  %v1963_v6 = vld [vmem:[%s2564_s0] sm:$0x77] }
  0x27   :  { %468 = vrot.lane.b32.xlu2 %v465_v11, %s1724_s13  ;;  %v175_v11 = vrot.slane %v169_v0, 4  ;;  %v58_v2 = vunpack.c.h.bf16 %v1963_v6  ;;  %v57_v59 = vunpack.c.l.bf16 %v1963_v6  ;;  %v2055_v0 = vld [vmem:[%s2564_s0] sm:$0x77] }
  0x29   :  { %v1661_v18 = vpack.i.bf16 %v175_v11, %v174_v10  ;;  %v64_v19 = vrot.slane %v58_v2, 4  ;;  %v63_v6 = vrot.slane %v57_v59, 4  ;;  %v651_v10 = vrot.slane %v643_v63, 6 }
  0x2a   :  { %1627 = vrot.lane.b32.xlu0 %v1626_v14, %s1728_s18  ;;  %v59_v14 = vunpack.c.l.bf16 %v56_v7  ;;  %v607_v7 = vunpack.c.h.bf16 %v2055_v0  ;;  %v616_v2 = vrot.slane %v608_v8, 4 }
  0x2c   :  { %v65_v20 = vrot.slane %v59_v14, 4 }
  0x2e   :  { %1637 = vrot.lane.b32.xlu1 %v1636_v23, %s1729_s19  ;;  %v245_v23 = vunpack.c.l.bf16 %v1907_v28  ;;  %v675_v28 = vunpack.c.l.bf16 %v1992_v27 }
  0x2f   :  { %1642 = vrot.lane.b32.xlu2 %v1641_v24, %s1730_s10  ;;  %v1671_v24 = vpack.i.bf16 %v65_v20, %v64_v19 }
  0x30   :  { %v251_v29 = vrot.slane %v245_v23, 2  ;;  %v1686_v38 = vpack.i.bf16 %v675_v28, %v674_v30 }
  0x32   :  { %1632 = vrot.lane.b32.xlu0 %v1631_v25, %s1731_s23  ;;  %v1676_v25 = vpack.i.bf16 %v96_v22, %v95_v21 }
  0x36   :  { %390 = vrot.lane.b32.xlu1 %v387_v31, %s1727_s28  ;;  %s1732_s28 = smov 110   ;;  %v2000_v31 = vld [vmem:[%s2564_s0] sm:$0x77] }
  0x37   :  { %419 = vrot.lane.b32.xlu2 %v416_v34, %s1728_s18  ;;  %s1738_s18 = smov 125   ;;  %v2010_v34 = vld [vmem:[%s2564_s0] sm:$0x77]  ;;  %v116_v36 = vunpack.c.h.bf16 %v2000_v31  ;;  %v115_v4 = vunpack.c.l.bf16 %v2000_v31 }
  0x38   :  { %v27_v39 = vunpack.c.h.bf16 %v2010_v34  ;;  %v26_v17 = vunpack.c.l.bf16 %v2010_v34 }
  0x39   :  { %v1681_v41 = vpack.i.bf16 %v117_v37, %v116_v36  ;;  %v606_v37 = vunpack.c.l.bf16 %v2055_v0 }
  0x3a   :  { %361 = vrot.lane.b32.xlu0 %v358_v35, %s1726_s27  ;;  %v25_v35 = vld [vmem:[%s2564_s0 + $0x8] sm:$0x7]  ;;  %v33_v44 = vrot.slane %v27_v39, 2  ;;  %s1742_s27 = smov 69   ;;  %v32_v28 = vrot.slane %v26_v17, 2 }
  0x3b   :  { %v28_v42 = vunpack.c.l.bf16 %v25_v35  ;;  %v614_v47 = vrot.slane %v606_v37, 4 }
  0x3e   :  { %1652 = vrot.lane.b32.xlu1 %v1651_v45, %s1732_s28  ;;  %v34_v45 = vrot.slane %v28_v42, 2 }
  0x3f   :  { %283 = vrot.lane.b32.xlu2 %v280_v46, %s1731_s23 }
  0x40   :  { %v1691_v51 = vpack.i.bf16 %v34_v45, %v33_v44 }
  0x42   :  { %1647 = vrot.lane.b32.xlu0 %v1646_v49, %s1733_s14 }
  0x46   :  { %335 = vrot.lane.b32.xlu1 %v329_v55, %s1730_s10  ;;  %v2037_v55 = vld [vmem:[%s2564_s0] sm:$0x77] }
  0x47   :  { %1657 = vrot.lane.b32.xlu2 %v1656_v60, %s1734_s21  ;;  %v641_v32 = vunpack.c.l.bf16 %v2037_v55 }
  0x4a   :  { %312 = vrot.lane.b32.xlu0 %v309_v62, %s1729_s19  ;;  %s1736_s19 = smov 113   ;;  %v642_v62 = vunpack.c.h.bf16 %v2037_v55 }
  0x4c   :  { %v650_v9 = vrot.slane %v642_v62, 6 }
  0x4e   :  { %1667 = vrot.lane.b32.xlu1 %v1666_v12, %s1735_s5  ;;  %v615_v12 = vrot.slane %v607_v7, 4  ;;  %v1701_v14 = vpack.i.bf16 %v651_v10, %v650_v9 }
  0x4f   :  { %228 = vrot.lane.b32.xlu2 %v222_v15, %s1733_s14  ;;  %v546_v15 = vunpack.c.h.bf16 %v1791_v1  ;;  %v574_v1 = vunpack.c.h.bf16 %v1818_v13  ;;  %s1760_s14 = smov 40  }
  0x50   :  { %v1696_v16 = vpack.i.bf16 %v616_v2, %v615_v12 }
  0x51   :  { %v582_v31 = vrot.slane %v574_v1, 2 }
  0x52   :  { %1662 = vrot.lane.b32.xlu0 %v1661_v18, %s1736_s19 }
  0x56   :  { %1672 = vrot.lane.b32.xlu1 %v1671_v24, %s1737_s11  ;;  %v673_v24 = vunpack.c.l.bf16 %v1987_v26 }
  0x57   :  { %1677 = vrot.lane.b32.xlu2 %v1676_v25, %s1738_s18 }
  0x5a   :  { %254 = vrot.lane.b32.xlu0 %v251_v29, %s1732_s28  ;;  %s1740_s28 = smov 124  }
  0x5e   :  { %1687 = vrot.lane.b32.xlu1 %v1686_v38, %s1739_s25  ;;  %v649_v38 = vrot.slane %v641_v32, 6 }
  0x5f   :  { %147 = vrot.lane.b32.xlu2 %v144_v40, %s1734_s21 }
  0x61   :  { %v2021_v46 = vpop.permute.xlu2 %1607 }
  0x62   :  { %1682 = vrot.lane.b32.xlu0 %v1681_v41, %s1740_s28  ;;  %v1610_v48 = vunpack.i.h.bf16 %v2021_v46  ;;  %v1609_v49 = vunpack.i.l.bf16 %v2021_v46  ;;  %v676_v41 = vunpack.c.h.bf16 %v1992_v27 }
  0x64   :  { %456 = vst.msk [vmem:[#allocation2 + $0x130] sm:$0x3f] %vm22_vm0, %v1610_v48  ;;  %v450_v52 = vsel %vm448_vm1, %v1609_v49, %v1610_v48 }
  0x65   :  { %455 = vst [vmem:[#allocation2 + $0x128] sm:$0x3f] %v450_v52 }
  0x66   :  { %205 = vrot.lane.b32.xlu1 %v202_v50, %s1735_s5  ;;  %v644_v50 = vunpack.c.h.bf16 %v2042_v56 }
  0x67   :  { %1692 = vrot.lane.b32.xlu2 %v1691_v51, %s1741_s26 }
  0x69   :  { %v2044_v57 = vpop.permute.xlu2 %1612 }
  0x6a   :  { %176 = vrot.lane.b32.xlu0 %v173_v53, %s1736_s19  ;;  %v1615_v60 = vunpack.i.h.bf16 %v2044_v57  ;;  %v1614_v61 = vunpack.i.l.bf16 %v2044_v57  ;;  %v652_v57 = vrot.slane %v644_v50, 6 }
  0x6c   :  { %482 = vst.msk [vmem:[#allocation2 + $0x130] sm:$0xc0] %vm49_vm2, %v1615_v60  ;;  %v476_v5 = vsel %vm474_vm4, %v1614_v61, %v1615_v60 }
  0x6d   :  { %485 = vst.msk [vmem:[#allocation2 + $0x148] sm:$0xf] %vm53_vm3, %v1615_v60 }
  0x6e   :  { %97 = vrot.lane.b32.xlu1 %v94_v58, %s1738_s18  ;;  %481 = vst [vmem:[#allocation2 + $0x128] sm:$0xc0] %v476_v5 }
  0x6f   :  { %121 = vrot.lane.b32.xlu2 %v115_v4, %s1740_s28  ;;  %484 = vst [vmem:[#allocation2 + $0x140] sm:$0xf] %v476_v5 }
  0x71   :  { %v552_v11 = vpop.permute.xlu2 %551 }
  0x72   :  { %66 = vrot.lane.b32.xlu0 %v63_v6, %s1737_s11  ;;  %s1743_s11 = smov 70  }
  0x75   :  { %v738_v10 = vld [vmem:[#allocation2 + $0x128] sm:$0xff] }
  0x76   :  { %1702 = vrot.lane.b32.xlu1 %v1701_v14, %s1742_s27 }
  0x77   :  { %557 = vrot.lane.b32.xlu2 %v546_v15, %s1720_s9 }
  0x78   :  { %v2077_v18 = vpop.permute.xlu1 %1597 }
  0x79   :  { %v1600_v19 = vunpack.i.h.bf16 %v2077_v18  ;;  %v1599_v20 = vunpack.i.l.bf16 %v2077_v18  ;;  %v2081_v21 = vpop.permute.xlu2 %1622 }
  0x7a   :  { %1697 = vrot.lane.b32.xlu0 %v1696_v16, %s1743_s11  ;;  %v1625_v22 = vunpack.i.h.bf16 %v2081_v21  ;;  %v1624_v23 = vunpack.i.l.bf16 %v2081_v21 }
  0x7b   :  { %v560_v25 = vsel %vm559_vm5, %v552_v11, %v1599_v20  ;;  %v561_v29 = vsel %vm559_vm5, %v1599_v20, %v1600_v19 }
  0x7c   :  { %v2092_v30 = vpop.permute.xlu0 %1587  ;;  %566 = vst [vmem:[#allocation2 + $0x168] sm:$0x3f] %v560_v25  ;;  %v398_v13 = vsel %vm396_vm6, %v1624_v23, %v1625_v22 }
  0x7d   :  { %567 = vst [vmem:[#allocation2 + $0x170] sm:$0x3f] %v561_v29  ;;  %v1590_v26 = vunpack.i.h.bf16 %v2092_v30  ;;  %v1589_v43 = vunpack.i.l.bf16 %v2092_v30 }
  0x7e   :  { %404 = vst.msk [vmem:[#allocation2 + $0x100] sm:$0xf0] %vm80_vm7, %v1625_v22  ;;  %681 = vrot.lane.b32.xlu1 %v673_v24, %s1739_s25 }
  0x7f   :  { %407 = vst.msk [vmem:[#allocation2 + $0x118] sm:$0x3] %vm84_vm8, %v1625_v22  ;;  %35 = vrot.lane.b32.xlu2 %v32_v28, %s1741_s26  ;;  %v505_v51 = vsel %vm503_vm12, %v1589_v43, %v1590_v26 }
  0x80   :  { %403 = vst [vmem:[#allocation2 + $0xf8] sm:$0xf0] %v398_v13  ;;  %v2103_v33 = vpop.permute.xlu1 %1602 }
  0x81   :  { %406 = vst [vmem:[#allocation2 + $0x110] sm:$0x3] %v398_v13  ;;  %v1605_v34 = vunpack.i.h.bf16 %v2103_v33  ;;  %v1604_v35 = vunpack.i.l.bf16 %v2103_v33  ;;  %v469_v36 = vpop.permute.xlu2 %468 }
  0x82   :  { %589 = vrot.lane.b32.xlu0 %v582_v31, %s1723_s12  ;;  %511 = vst.msk [vmem:[#allocation2 + $0x148] sm:$0xf0] %vm80_vm7, %v1590_v26  ;;  %v475_v39 = vsel %vm474_vm4, %v469_v36, %v1614_v61  ;;  %v617_v61 = vrot.slane %v609_v54, 4  ;;  %vm318_vm4 = vcmask 809984   ;;  %s1759_s12 = smov 10  }
  0x83   :  { %514 = vst.msk [vmem:[#allocation2 + $0x160] sm:$0x3] %vm84_vm8, %v1590_v26  ;;  %v593_v40 = vsel %vm591_vm9, %v1604_v35, %v1605_v34 }
  0x84   :  { %v1593_v42 = vpop.permute.xlu0 %1592  ;;  %599 = vst [vmem:[#allocation2 + $0x170] sm:$0xc0] %v593_v40 }
  0x85   :  { %v1595_v44 = vunpack.i.h.bf16 %v1593_v42  ;;  %v1594_v45 = vunpack.i.l.bf16 %v1593_v42  ;;  %602 = vst [vmem:[#allocation2 + $0x188] sm:$0xf] %v593_v40 }
  0x86   :  { %480 = vst [vmem:[#allocation2 + $0x120] sm:$0xc0] %v475_v39  ;;  %653 = vrot.lane.b32.xlu1 %v649_v38, %s1742_s27 }
  0x87   :  { %v534_v48 = vsel %vm532_vm10, %v1594_v45, %v1595_v44  ;;  %483 = vst [vmem:[#allocation2 + $0x138] sm:$0xf] %v475_v39  ;;  %687 = vrot.lane.b32.xlu2 %v676_v41, %s1739_s25 }
  0x88   :  { %540 = vst.msk [vmem:[#allocation2 + $0x160] sm:$0xfc] %vm111_vm11, %v1595_v44  ;;  %v527_v27 = vpop.permute.xlu1 %526 }
  0x89   :  { %v533_v52 = vsel %vm532_vm10, %v527_v27, %v1594_v45  ;;  %539 = vst [vmem:[#allocation2 + $0x158] sm:$0xfc] %v534_v48  ;;  %v2126_v53 = vpop.permute.xlu2 %1642  ;;  %vm289_vm10 = vcmask 818176  }
  0x8a   :  { %618 = vrot.lane.b32.xlu0 %v614_v47, %s1743_s11  ;;  %538 = vst [vmem:[#allocation2 + $0x150] sm:$0xfc] %v533_v52  ;;  %v1645_v55 = vunpack.i.h.bf16 %v2126_v53  ;;  %v1644_v56 = vunpack.i.l.bf16 %v2126_v53 }
  0x8b   :  { %510 = vst [vmem:[#allocation2 + $0x140] sm:$0xf0] %v505_v51  ;;  %v747_v8 = vld [vmem:[#allocation2 + $0x170] sm:$0xff] }
  0x8c   :  { %v498_v58 = vpop.permute.xlu0 %497  ;;  %349 = vst.msk [vmem:[#allocation2 + $0xe8] sm:$0x3f] %vm22_vm0, %v1645_v55  ;;  %v343_v59 = vsel %vm341_vm13, %v1644_v56, %v1645_v55 }
  0x8d   :  { %v504_v60 = vsel %vm503_vm12, %v498_v58, %v1589_v43  ;;  %348 = vst [vmem:[#allocation2 + $0xe0] sm:$0x3f] %v343_v59  ;;  %vm260_vm12 = vcmask 900096  }
  0x8e   :  { %513 = vst [vmem:[#allocation2 + $0x158] sm:$0x3] %v505_v51  ;;  %659 = vrot.lane.b32.xlu1 %v652_v57, %s1742_s27  ;;  %s1757_s27 = smov 25  }
  0x8f   :  { %509 = vst [vmem:[#allocation2 + $0x138] sm:$0xf0] %v504_v60 }
  0x90   :  { %512 = vst [vmem:[#allocation2 + $0x150] sm:$0x3] %v504_v60  ;;  %v2138_v62 = vpop.permute.xlu1 %1617 }
  0x91   :  { %v1620_v63 = vunpack.i.h.bf16 %v2138_v62  ;;  %v1619_v0 = vunpack.i.l.bf16 %v2138_v62  ;;  %v420_v3 = vpop.permute.xlu2 %419 }
  0x92   :  { %624 = vrot.lane.b32.xlu0 %v617_v61, %s1743_s11  ;;  %v741_v11 = vld [vmem:[#allocation2 + $0x140] sm:$0xff]  ;;  %s1758_s11 = smov 35  }
  0x93   :  { %375 = vst.msk [vmem:[#allocation2 + $0xe8] sm:$0xc0] %vm49_vm2, %v1620_v63  ;;  %v369_v4 = vsel %vm367_vm14, %v1619_v0, %v1620_v63  ;;  %v777_v15 = vpack.c.bf16 %v741_v11, %v738_v10 }
  0x94   :  { %v584_v5 = vpop.permute.xlu0 %583  ;;  %378 = vst.msk [vmem:[#allocation2 + $0x100] sm:$0xf] %vm53_vm3, %v1620_v63 }
  0x95   :  { %v592_v6 = vsel %vm591_vm9, %v584_v5, %v1604_v35  ;;  %v744_v7 = vld [vmem:[#allocation2 + $0x158] sm:$0xff]  ;;  %374 = vst [vmem:[#allocation2 + $0xe0] sm:$0xc0] %v369_v4 }
  0x96   :  { %v780_v9 = vpack.c.bf16 %v747_v8, %v744_v7  ;;  %377 = vst [vmem:[#allocation2 + $0xf8] sm:$0xf] %v369_v4  ;;  %v740_v31 = vld [vmem:[#allocation2 + $0x138] sm:$0xff] }
  0x97   :  { %598 = vst [vmem:[#allocation2 + $0x168] sm:$0xc0] %v592_v6  ;;  %v743_v24 = vld [vmem:[#allocation2 + $0x150] sm:$0xff] }
  0x98   :  { %851 = vmatpush.bf16.msra.mxu2 %v780_v9  ;;  %601 = vst [vmem:[#allocation2 + $0x180] sm:$0xf] %v592_v6  ;;  %v443_v12 = vpop.permute.xlu1 %442 }
  0x99   :  { %v449_v2 = vsel %vm448_vm1, %v443_v12, %v1609_v49  ;;  %v284_v14 = vpop.permute.xlu2 %283  ;;  %vm153_vm1 = vcmask 932864  }
  0x9a   :  { %454 = vst [vmem:[#allocation2 + $0x120] sm:$0x3f] %v449_v2  ;;  %v2202_v2 = vld [vmem:[%s2564_s0] sm:$0x77]  ;;  %s1761_s0 = smov 30  }
  0x9c   :  { %v1628_v16 = vpop.permute.xlu0 %1627  ;;  %852 = vmatpush.bf16.msra.mxu2 %v777_v15  ;;  %v729_v62 = vld [vmem:[#allocation2 + $0xe0] sm:$0xff] }
  0x9d   :  { %v1630_v17 = vunpack.i.h.bf16 %v1628_v16  ;;  %v1629_v20 = vunpack.i.l.bf16 %v1628_v16  ;;  %v732_v42 = vld [vmem:[#allocation2 + $0xf8] sm:$0xff] }
  0x9e   :  { %v746_v25 = vld [vmem:[#allocation2 + $0x168] sm:$0xff] }
  0x9f   :  { %433 = vst.msk [vmem:[#allocation2 + $0x118] sm:$0xfc] %vm111_vm11, %v1630_v17  ;;  %v426_v1 = vsel %vm425_vm15, %v420_v3, %v1629_v20  ;;  %v427_v22 = vsel %vm425_vm15, %v1629_v20, %v1630_v17  ;;  %v779_v29 = vpack.c.bf16 %v746_v25, %v743_v24  ;;  %vm41_vm15 = vcmask 1039360  }
  0xa0   :  { %431 = vst [vmem:[#allocation2 + $0x108] sm:$0xfc] %v426_v1  ;;  %v2153_v46 = vpop.permute.xlu1 %1637 }
  0xa1   :  { %432 = vst [vmem:[#allocation2 + $0x110] sm:$0xfc] %v427_v22  ;;  %823 = vmatpush.bf16.msra.mxu0 %v779_v29  ;;  %v1640_v49 = vunpack.i.h.bf16 %v2153_v46  ;;  %v1639_v30 = vunpack.i.l.bf16 %v2153_v46  ;;  %v2157_v28 = vpop.permute.xlu2 %1657  ;;  %v737_v13 = vld [vmem:[#allocation2 + $0x120] sm:$0xff] }
  0xa2   :  { %v1660_v26 = vunpack.i.h.bf16 %v2157_v28  ;;  %v1659_v32 = vunpack.i.l.bf16 %v2157_v28  ;;  %v776_v35 = vpack.c.bf16 %v740_v31, %v737_v13 }
  0xa3   :  { %326 = vst.msk [vmem:[#allocation2 + $0xd0] sm:$0xfc] %vm111_vm11, %v1640_v49  ;;  %v320_v36 = vsel %vm318_vm4, %v1639_v30, %v1640_v49 }
  0xa4   :  { %v1633_v37 = vpop.permute.xlu0 %1632  ;;  %325 = vst [vmem:[#allocation2 + $0xc8] sm:$0xfc] %v320_v36  ;;  %v155_v38 = vsel %vm153_vm1, %v1659_v32, %v1660_v26 }
  0xa5   :  { %v1634_v40 = vunpack.i.l.bf16 %v1633_v37  ;;  %161 = vst.msk [vmem:[#allocation2 + $0x58] sm:$0xc0] %vm49_vm2, %v1660_v26  ;;  %v1635_v39 = vunpack.i.h.bf16 %v1633_v37  ;;  %824 = vmatpush.bf16.msra.mxu0 %v776_v35 }
  0xa6   :  { %164 = vst.msk [vmem:[#allocation2 + $0x70] sm:$0xf] %vm53_vm3, %v1660_v26 }
  0xa7   :  { %160 = vst [vmem:[#allocation2 + $0x50] sm:$0xc0] %v155_v38  ;;  %v290_v43 = vsel %vm289_vm10, %v284_v14, %v1634_v40  ;;  %v291_v47 = vsel %vm289_vm10, %v1634_v40, %v1635_v39  ;;  %vm72_vm10 = vcmask 1031168  }
  0xa8   :  { %v735_v41 = vld [vmem:[#allocation2 + $0x110] sm:$0xff]  ;;  %163 = vst [vmem:[#allocation2 + $0x68] sm:$0xf] %v155_v38  ;;  %v391_v45 = vpop.permute.xlu1 %390 }
  0xa9   :  { %v774_v44 = vpack.c.bf16 %v735_v41, %v732_v42  ;;  %297 = vst.msk [vmem:[#allocation2 + $0xb8] sm:$0xf0] %vm80_vm7, %v1635_v39  ;;  %v229_v48 = vpop.permute.xlu2 %228  ;;  %v397_v27 = vsel %vm396_vm6, %v391_v45, %v1624_v23  ;;  %vm234_vm6 = vcmask 908288  }
  0xaa   :  { %300 = vst.msk [vmem:[#allocation2 + $0xd0] sm:$0x3] %vm84_vm8, %v1635_v39 }
  0xab   :  { %853 = vmatpush.bf16.msra.mxu2 %v774_v44  ;;  %295 = vst [vmem:[#allocation2 + $0xa8] sm:$0xf0] %v290_v43 }
  0xac   :  { %v362_v50 = vpop.permute.xlu0 %361  ;;  %296 = vst [vmem:[#allocation2 + $0xb0] sm:$0xf0] %v291_v47 }
  0xad   :  { %298 = vst [vmem:[#allocation2 + $0xc0] sm:$0x3] %v290_v43  ;;  %v368_v51 = vsel %vm367_vm14, %v362_v50, %v1619_v0  ;;  %vm211_vm14 = vcmask 916480  }
  0xae   :  { %299 = vst [vmem:[#allocation2 + $0xc8] sm:$0x3] %v291_v47 }
  0xaf   :  { %402 = vst [vmem:[#allocation2 + $0xf0] sm:$0xf0] %v397_v27 }
  0xb0   :  { %405 = vst [vmem:[#allocation2 + $0x108] sm:$0x3] %v397_v27  ;;  %v2178_v52 = vpop.permute.xlu1 %1652  ;;  %v17_v27 = vunpack.c.l.bf16 %v2202_v2 }
  0xb1   :  { %373 = vst [vmem:[#allocation2 + $0xd8] sm:$0xc0] %v368_v51  ;;  %v1655_v54 = vunpack.i.h.bf16 %v2178_v52  ;;  %v1654_v55 = vunpack.i.l.bf16 %v2178_v52  ;;  %v2182_v57 = vpop.permute.xlu2 %1677 }
  0xb2   :  { %376 = vst [vmem:[#allocation2 + $0xf0] sm:$0xf] %v368_v51  ;;  %v1680_v23 = vunpack.i.h.bf16 %v2182_v57  ;;  %v1679_v5 = vunpack.i.l.bf16 %v2182_v57 }
  0xb3   :  { %268 = vst.msk [vmem:[#allocation2 + $0xa0] sm:$0xc0] %vm49_vm2, %v1655_v54  ;;  %v262_v21 = vsel %vm260_vm12, %v1654_v55, %v1655_v54 }
  0xb4   :  { %v1648_v58 = vpop.permute.xlu0 %1647  ;;  %271 = vst.msk [vmem:[#allocation2 + $0xb8] sm:$0xf] %vm53_vm3, %v1655_v54 }
  0xb5   :  { %v1650_v59 = vunpack.i.h.bf16 %v1648_v58  ;;  %v1649_v60 = vunpack.i.l.bf16 %v1648_v58  ;;  %v726_v61 = vld [vmem:[#allocation2 + $0xc8] sm:$0xff]  ;;  %267 = vst [vmem:[#allocation2 + $0x98] sm:$0xc0] %v262_v21 }
  0xb6   :  { %v771_v63 = vpack.c.bf16 %v729_v62, %v726_v61  ;;  %270 = vst [vmem:[#allocation2 + $0xb0] sm:$0xf] %v262_v21 }
  0xb7   :  { %v235_v0 = vsel %vm234_vm6, %v229_v48, %v1649_v60  ;;  %112 = vst.msk [vmem:[#allocation2 + $0x40] sm:$0xfc] %vm111_vm11, %v1680_v23  ;;  %v236_v3 = vsel %vm234_vm6, %v1649_v60, %v1650_v59  ;;  %v734_v7 = vld [vmem:[#allocation2 + $0x108] sm:$0xff]  ;;  %vm689_vm6 = vcmask 556032  }
  0xb8   :  { %854 = vmatpush.bf16.msra.mxu2 %v771_v63  ;;  %242 = vst.msk [vmem:[#allocation2 + $0xa0] sm:$0x3f] %vm22_vm0, %v1650_v59  ;;  %v336_v4 = vpop.permute.xlu1 %335 }
  0xb9   :  { %240 = vst [vmem:[#allocation2 + $0x90] sm:$0x3f] %v235_v0  ;;  %v731_v6 = vld [vmem:[#allocation2 + $0xf0] sm:$0xff]  ;;  %v342_v8 = vsel %vm341_vm13, %v336_v4, %v1644_v56  ;;  %v148_v9 = vpop.permute.xlu2 %147  ;;  %vm103_vm13 = vcmask 1022976   ;;  %v18_v56 = vunpack.c.h.bf16 %v2202_v2 }
  0xba   :  { %241 = vst [vmem:[#allocation2 + $0x98] sm:$0x3f] %v236_v3  ;;  %v773_v10 = vpack.c.bf16 %v734_v7, %v731_v6  ;;  %v154_v11 = vsel %vm153_vm1, %v148_v9, %v1659_v32  ;;  %v105_v14 = vsel %vm103_vm13, %v1679_v5, %v1680_v23 }
  0xbb   :  { %347 = vst [vmem:[#allocation2 + $0xd8] sm:$0x3f] %v342_v8 }
  0xbc   :  { %v313_v12 = vpop.permute.xlu0 %312  ;;  %825 = vmatpush.bf16.msra.mxu0 %v773_v10  ;;  %159 = vst [vmem:[#allocation2 + $0x48] sm:$0xc0] %v154_v11 }
  0xbd   :  { %v319_v53 = vsel %vm318_vm4, %v313_v12, %v1639_v30  ;;  %162 = vst [vmem:[#allocation2 + $0x60] sm:$0xf] %v154_v11  ;;  %v723_v17 = vld [vmem:[#allocation2 + $0xb0] sm:$0xff]  ;;  %vm182_vm4 = vcmask 924672  }
  0xbe   :  { %324 = vst [vmem:[#allocation2 + $0xc0] sm:$0xfc] %v319_v53 }
  0xbf   :  { %110 = vst [vmem:[#allocation2 + $0x38] sm:$0xfc] %v105_v14 }
  0xc0   :  { %v2211_v15 = vpop.permute.xlu1 %1667  ;;  %21 = vst [vmem:[#allocation2 + $0x8] sm:$0x3f] %v18_v56 }
  0xc1   :  { %v720_v16 = vld [vmem:[#allocation2 + $0x98] sm:$0xff]  ;;  %v1670_v20 = vunpack.i.h.bf16 %v2211_v15  ;;  %v1669_v1 = vunpack.i.l.bf16 %v2211_v15  ;;  %v2215_v22 = vpop.permute.xlu2 %1692  ;;  %20 = vst [vmem:[#allocation2] sm:$0x3f] %v17_v27  ;;  %v1539_v27 = vld [vmem:[%s2565_s1 + $0x4] sm:$0xf] }
  0xc2   :  { %v768_v24 = vpack.c.bf16 %v723_v17, %v720_v16  ;;  %v1695_v25 = vunpack.i.h.bf16 %v2215_v22  ;;  %v1694_v29 = vunpack.i.l.bf16 %v2215_v22  ;;  %v728_v26 = vld [vmem:[#allocation2 + $0xd8] sm:$0xff]  ;;  %v1490_v16 = vld [vmem:[%s2565_s1] sm:$0xf]  ;;  %v1540_v17 = vld [vmem:[%s2565_s1 + $0x4] sm:$0xf0] }
  0xc3   :  { %219 = vst.msk [vmem:[#allocation2 + $0x88] sm:$0xfc] %vm111_vm11, %v1670_v20  ;;  %v213_v46 = vsel %vm211_vm14, %v1669_v1, %v1670_v20 }
  0xc4   :  { %v2223_v49 = vpop.permute.xlu0 %1662  ;;  %855 = vmatpush.bf16.msra.mxu2 %v768_v24  ;;  %218 = vst [vmem:[#allocation2 + $0x80] sm:$0xfc] %v213_v46  ;;  %v43_v30 = vsel %vm41_vm15, %v1694_v29, %v1695_v25  ;;  %v2286_v24 = vor.u32 %v1540_v17, %v1490_v16  ;;  %v727_v17 = vld [vmem:[#allocation2 + $0xd0] sm:$0xff] }
  0xc5   :  { %v1665_v28 = vunpack.i.h.bf16 %v2223_v49  ;;  %v1664_v13 = vunpack.i.l.bf16 %v2223_v49  ;;  %50 = vst.msk [vmem:[#allocation2 + $0x10] sm:$0xc0] %vm49_vm2, %v1695_v25  ;;  %v725_v31 = vld [vmem:[#allocation2 + $0xc0] sm:$0xff] }
  0xc6   :  { %54 = vst.msk [vmem:[#allocation2 + $0x28] sm:$0xf] %vm53_vm3, %v1695_v25  ;;  %v770_v32 = vpack.c.bf16 %v728_v26, %v725_v31  ;;  %v788_v31 = vld [vmem:[%s2566_s2] sm:$0xff] }
  0xc7   :  { %48 = vst [vmem:[#allocation2 + $0x8] sm:$0xc0] %v43_v30  ;;  %v184_v35 = vsel %vm182_vm4, %v1664_v13, %v1665_v28 }
  0xc8   :  { %52 = vst [vmem:[#allocation2 + $0x20] sm:$0xf] %v43_v30  ;;  %826 = vmatpush.bf16.msra.mxu0 %v770_v32  ;;  %v2235_v36 = vpop.permute.xlu1 %1672  ;;  %v1744_v30 = vmov 0  }
  0xc9   :  { %190 = vst.msk [vmem:[#allocation2 + $0x70] sm:$0xf0] %vm80_vm7, %v1665_v28  ;;  %v1675_v37 = vunpack.i.h.bf16 %v2235_v36  ;;  %v1674_v38 = vunpack.i.l.bf16 %v2235_v36  ;;  %v122_v40 = vpop.permute.xlu2 %121  ;;  %1707 = vset.pattern.permute.xlu0 %v1744_v30  ;;  %1706 = vset.pattern.permute.xlu2 %v1744_v30 }
  0xca   :  { %193 = vst.msk [vmem:[#allocation2 + $0x88] sm:$0x3] %vm84_vm8, %v1665_v28  ;;  %792 = vperm.xlu0 %1707, %v788_v31  }
  0xcb   :  { %189 = vst [vmem:[#allocation2 + $0x68] sm:$0xf0] %v184_v35  ;;  %v74_v42 = vsel %vm72_vm10, %v1674_v38, %v1675_v37 }
  0xcc   :  { %v255_v39 = vpop.permute.xlu0 %254  ;;  %192 = vst [vmem:[#allocation2 + $0x80] sm:$0x3] %v184_v35 }
  0xcd   :  { %81 = vst.msk [vmem:[#allocation2 + $0x28] sm:$0xf0] %vm80_vm7, %v1675_v37  ;;  %v261_v41 = vsel %vm260_vm12, %v255_v39, %v1654_v55  ;;  %vm127_vm12 = vcmask 1014784  }
  0xce   :  { %85 = vst.msk [vmem:[#allocation2 + $0x40] sm:$0x3] %vm84_vm8, %v1675_v37  ;;  %v702_v56 = vld [vmem:[#allocation2 + $0x8] sm:$0xff] }
  0xcf   :  { %79 = vst [vmem:[#allocation2 + $0x20] sm:$0xf0] %v74_v42 }
  0xd0   :  { %83 = vst [vmem:[#allocation2 + $0x38] sm:$0x3] %v74_v42  ;;  %v2249_v43 = vpop.permute.xlu1 %1687 }
  0xd1   :  { %266 = vst [vmem:[#allocation2 + $0x90] sm:$0xc0] %v261_v41  ;;  %v1690_v44 = vunpack.i.h.bf16 %v2249_v43  ;;  %v1689_v45 = vunpack.i.l.bf16 %v2249_v43  ;;  %v558_v47 = vpop.permute.xlu2 %557 }
  0xd2   :  { %269 = vst [vmem:[#allocation2 + $0xa8] sm:$0xf] %v261_v41  ;;  %v714_v48 = vld [vmem:[#allocation2 + $0x68] sm:$0xff]  ;;  %v562_v50 = vsel %vm559_vm5, %v1600_v19, %v558_v47  ;;  %vm813_vm5 = vcmask 1042432  }
  0xd3   :  { %v717_v51 = vld [vmem:[#allocation2 + $0x80] sm:$0xff]  ;;  %568 = vst.msk [vmem:[#allocation2 + $0x178] sm:$0x3f] %vm22_vm0, %v562_v50  ;;  %v691_v54 = vsel %vm689_vm6, %v1689_v45, %v1690_v44 }
  0xd4   :  { %v1683_v52 = vpop.permute.xlu0 %1682  ;;  %v765_v55 = vpack.c.bf16 %v717_v51, %v714_v48  ;;  %697 = vst [vmem:[#allocation2 + $0x1b8] sm:$0x3f] %v691_v54  ;;  %v706_v31 = vld [vmem:[#allocation2 + $0x28] sm:$0xff] }
  0xd5   :  { %v1685_v21 = vunpack.i.h.bf16 %v1683_v52  ;;  %v1684_v23 = vunpack.i.l.bf16 %v1683_v52  ;;  %v709_v30 = vld [vmem:[#allocation2 + $0x40] sm:$0xff] }
  0xd6   :  { %856 = vmatpush.bf16.msra.mxu2 %v765_v55  ;;  %v705_v14 = vld [vmem:[#allocation2 + $0x20] sm:$0xff] }
  0xd7   :  { %135 = vst.msk [vmem:[#allocation2 + $0x58] sm:$0x3f] %vm22_vm0, %v1685_v21  ;;  %v128_v18 = vsel %vm127_vm12, %v122_v40, %v1684_v23  ;;  %v129_v19 = vsel %vm127_vm12, %v1684_v23, %v1685_v21  ;;  %v708_v9 = vld [vmem:[#allocation2 + $0x38] sm:$0xff]  ;;  %v759_v20 = vpack.c.bf16 %v705_v14, %v702_v56  ;;  %vm1286_vm12 = vcmask 244936  }
  0xd8   :  { %133 = vst [vmem:[#allocation2 + $0x48] sm:$0x3f] %v128_v18  ;;  %v719_v58 = vld [vmem:[#allocation2 + $0x90] sm:$0xff]  ;;  %v206_v59 = vpop.permute.xlu1 %205 }
  0xd9   :  { %134 = vst [vmem:[#allocation2 + $0x50] sm:$0x3f] %v129_v19  ;;  %v722_v60 = vld [vmem:[#allocation2 + $0xa8] sm:$0xff]  ;;  %v212_v61 = vsel %vm211_vm14, %v206_v59, %v1669_v1  ;;  %v36_v62 = vpop.permute.xlu2 %35  ;;  %vm1351_vm14 = vcmask 31744  }
  0xda   :  { %v767_v63 = vpack.c.bf16 %v722_v60, %v719_v58  ;;  %217 = vst [vmem:[#allocation2 + $0x78] sm:$0xfc] %v212_v61  ;;  %v42_v0 = vsel %vm41_vm15, %v36_v62, %v1694_v29 }
  0xdb   :  { %47 = vst [vmem:[#allocation2] sm:$0xc0] %v42_v0  ;;  %v756_v4 = vld [vmem:[#allocation2 + $0x1b8] sm:$0x3f] }
  0xdc   :  { %v177_v3 = vpop.permute.xlu0 %176  ;;  %827 = vmatpush.bf16.msra.mxu0 %v767_v63  ;;  %51 = vst [vmem:[#allocation2 + $0x18] sm:$0xf] %v42_v0  ;;  %v786_v7 = vpack.c.bf16 %v756_v4, %v756_v4 }
  0xdd   :  { %v183_v6 = vsel %vm182_vm4, %v177_v3, %v1664_v13 }
  0xde   :  { %188 = vst [vmem:[#allocation2 + $0x60] sm:$0xf0] %v183_v6  ;;  %v818_v8 = vsel %vm813_vm5, %v786_v7, 0  ;;  %v745_v7 = vld [vmem:[#allocation2 + $0x160] sm:$0xff] }
  0xdf   :  { %191 = vst [vmem:[#allocation2 + $0x78] sm:$0x3] %v183_v6  ;;  %871 = vmatpush.bf16.msra.mxu3 %v818_v8  ;;  %v710_v36 = vld [vmem:[#allocation2 + $0x48] sm:$0xff] }
  0xe0   :  { %v711_v10 = vld [vmem:[#allocation2 + $0x50] sm:$0xff]  ;;  %v98_v11 = vpop.permute.xlu1 %97 }
  0xe1   :  { %v762_v12 = vpack.c.bf16 %v711_v10, %v708_v9  ;;  %v104_v2 = vsel %vm103_vm13, %v98_v11, %v1679_v5  ;;  %v688_v53 = vpop.permute.xlu2 %687  ;;  %vm661_vm13 = vcmask 564224   ;;  %v739_v9 = vld [vmem:[#allocation2 + $0x130] sm:$0xff]  ;;  %v742_v10 = vld [vmem:[#allocation2 + $0x148] sm:$0xff] }
  0xe2   :  { %109 = vst [vmem:[#allocation2 + $0x30] sm:$0xfc] %v104_v2  ;;  %v692_v15 = vsel %vm689_vm6, %v1690_v44, %v688_v53  ;;  %v701_v40 = vld [vmem:[#allocation2] sm:$0xff]  ;;  %v789_v11 = vld [vmem:[%s2566_s2 + $0x8] sm:$0xff]  ;;  %v736_v53 = vld [vmem:[#allocation2 + $0x118] sm:$0xff]  ;;  %s1747_s2 = smov 16  }
  0xe3   :  { %857 = vmatpush.bf16.msra.mxu2 %v762_v12  ;;  %698 = vst.msk [vmem:[#allocation2 + $0x1c0] sm:$0x3f] %vm22_vm0, %v692_v15  ;;  %vm626_vm0 = vcmask 572416   ;;  %797 = vperm.xlu2 %1706, %v789_v11   ;;  %v778_v12 = vpack.c.bf16 %v742_v10, %v739_v9  ;;  %v733_v15 = vld [vmem:[#allocation2 + $0x100] sm:$0xff] }
  0xe4   :  { %v67_v57 = vpop.permute.xlu0 %66  ;;  %v775_v16 = vpack.c.bf16 %v736_v53, %v733_v15  ;;  %v1745_v53 = vmov 0.0  }
  0xe5   :  { %v73_v5 = vsel %vm72_vm10, %v67_v57, %v1674_v38  ;;  %v713_v1 = vld [vmem:[#allocation2 + $0x60] sm:$0xff]  ;;  %v730_v57 = vld [vmem:[#allocation2 + $0xe8] sm:$0xff]  ;;  %vm1194_vm10 = vcmask 162936  }
  0xe6   :  { %78 = vst [vmem:[#allocation2 + $0x18] sm:$0xf0] %v73_v5  ;;  %v716_v22 = vld [vmem:[#allocation2 + $0x78] sm:$0xff] }
  0xe7   :  { %82 = vst [vmem:[#allocation2 + $0x30] sm:$0x3] %v73_v5  ;;  %858 = vmatpush.bf16.msra.mxu2 %v759_v20  ;;  %v764_v25 = vpack.c.bf16 %v716_v22, %v713_v1  ;;  %v772_v5 = vpack.c.bf16 %v730_v57, %v727_v17  ;;  %v721_v20 = vld [vmem:[#allocation2 + $0xa0] sm:$0xff]  ;;  %v724_v1 = vld [vmem:[#allocation2 + $0xb8] sm:$0xff] }
  0xe8   :  { %v2288_v29 = vpop.permute.xlu1 %1702  ;;  %v769_v22 = vpack.c.bf16 %v724_v1, %v721_v20 }
  0xe9   :  { %828 = vmatpush.bf16.msra.mxu0 %v764_v25  ;;  %v1705_v46 = vunpack.i.h.bf16 %v2288_v29  ;;  %v1704_v49 = vunpack.i.l.bf16 %v2288_v29  ;;  %v715_v25 = vld [vmem:[#allocation2 + $0x70] sm:$0xff]  ;;  %v718_v29 = vld [vmem:[#allocation2 + $0x88] sm:$0xff] }
  0xea   :  { %859 = vmatmul.bf16.vlgmr.msra.gmra.mxu2 %v2286_v24  ;;  %v757_v48 = vld [vmem:[#allocation2 + $0x1c0] sm:$0x3f] }
  0xeb   :  { %v663_v13 = vsel %vm661_vm13, %v1704_v49, %v1705_v46  ;;  %v787_v51 = vpack.c.bf16 %v757_v48, %v757_v48 }
  0xec   :  { %v1698_v28 = vpop.permute.xlu0 %1697  ;;  %669 = vst [vmem:[#allocation2 + $0x1a0] sm:$0xfc] %v663_v13  ;;  %v703_v13 = vld [vmem:[#allocation2 + $0x10] sm:$0xff] }
  0xed   :  { %v1700_v26 = vunpack.i.h.bf16 %v1698_v28  ;;  %v1699_v32 = vunpack.i.l.bf16 %v1698_v28  ;;  %v704_v39 = vld [vmem:[#allocation2 + $0x18] sm:$0xff]  ;;  %v821_v23 = vsel %vm813_vm5, %v787_v51, 0 }
  0xee   :  { %v707_v35 = vld [vmem:[#allocation2 + $0x30] sm:$0xff]  ;;  %v758_v44 = vpack.c.bf16 %v704_v39, %v701_v40 }
  0xef   :  { %v628_v37 = vsel %vm626_vm0, %v1699_v32, %v1700_v26  ;;  %v761_v38 = vpack.c.bf16 %v710_v36, %v707_v35 }
  0xf0   :  { %634 = vst [vmem:[#allocation2 + $0x188] sm:$0xf0] %v628_v37  ;;  %v682_v42 = vpop.permute.xlu1 %681 }
  0xf1   :  { %637 = vst [vmem:[#allocation2 + $0x1a0] sm:$0x3] %v628_v37  ;;  %829 = vmatpush.bf16.msra.mxu0 %v761_v38  ;;  %v690_v41 = vsel %vm689_vm6, %v682_v42, %v1689_v45  ;;  %v1492_v45 = vld [vmem:[%s2565_s1 + $0x8] sm:$0xf0]  ;;  %vm1240_vm6 = vcmask 203936  }
  0xf2   :  { %696 = vst [vmem:[#allocation2 + $0x1b0] sm:$0x3f] %v690_v41  ;;  %v1495_v55 = vor.u32 %v1539_v27, %v1492_v45 }
  0xf4   :  { %v590_v47 = vpop.permute.xlu0 %589 }
  0xf5   :  { %v594_v50 = vsel %vm591_vm9, %v1605_v34, %v590_v47  ;;  %830 = vmatpush.bf16.msra.mxu0 %v758_v44  ;;  %vm1022_vm9 = vcmask 72704  }
  0xf6   :  { %600 = vst.msk [vmem:[#allocation2 + $0x178] sm:$0xc0] %vm49_vm2, %v594_v50  ;;  %vm809_vm2 = vcmask 179200  }
  0xf7   :  { %603 = vst.msk [vmem:[#allocation2 + $0x190] sm:$0xf] %vm53_vm3, %v594_v50  ;;  %v750_v43 = vld [vmem:[#allocation2 + $0x188] sm:$0xff]  ;;  %vm1029_vm3 = vcmask 1040384  }
  0xf8   :  { %v753_v52 = vld [vmem:[#allocation2 + $0x1a0] sm:$0xff]  ;;  %831 = vmatmul.bf16.vlgmr.msra.gmra.mxu0 %v2286_v24  ;;  %v654_v33 = vpop.permute.xlu1 %653 }
  0xf9   :  { %v783_v34 = vpack.c.bf16 %v753_v52, %v750_v43  ;;  %v662_v54 = vsel %vm661_vm13, %v654_v33, %v1704_v49  ;;  %v755_v21 = vld [vmem:[#allocation2 + $0x1b0] sm:$0x3f]  ;;  %v712_v49 = vld [vmem:[#allocation2 + $0x58] sm:$0xff] }
  0xfa   :  { %668 = vst [vmem:[#allocation2 + $0x198] sm:$0xfc] %v662_v54  ;;  %v785_v18 = vpack.c.bf16 %v755_v21, %v755_v21  ;;  %v763_v28 = vpack.c.bf16 %v712_v49, %v709_v30 }
  0xfb   :  { %872 = vmatpush.bf16.msra.mxu3 %v783_v34 }
  0xfc   :  { %v619_v19 = vpop.permute.xlu0 %618  ;;  %v815_v59 = vsel %vm813_vm5, %v785_v18, 0  ;;  %vm1332_vm5 = vcmask 285936  }
  0xfd   :  { %v627_v58 = vsel %vm626_vm0, %v619_v19, %v1699_v32  ;;  %843 = vmatpush.bf16.msra.mxu1 %v815_v59  ;;  %v748_v3 = vld [vmem:[#allocation2 + $0x178] sm:$0xff] }
  0xfe   :  { %633 = vst [vmem:[#allocation2 + $0x180] sm:$0xf0] %v627_v58  ;;  %1497 = vmatmul.msk.bf16.vlgmr.msra.gmra.mxu3 %vm809_vm2, %v1495_v55  ;;  %v781_v8 = vpack.c.bf16 %v748_v3, %v745_v7 }
  0xff   :  { %899 = vmatpush.bf16.msrb.mxu3 %v821_v23  ;;  %636 = vst [vmem:[#allocation2 + $0x198] sm:$0x3] %v627_v58 }
 0x100   :  { %v660_v60 = vpop.permute.xlu1 %659 }
 0x101   :  { %v664_v61 = vsel %vm661_vm13, %v1705_v46, %v660_v60  ;;  %v766_v46 = vpack.c.bf16 %v718_v29, %v715_v25  ;;  %vm1389_vm13 = vcmask 326936  }
 0x102   :  { %670 = vst.msk [vmem:[#allocation2 + $0x1a8] sm:$0xfc] %vm111_vm11, %v664_v61  ;;  %vm1005_vm11 = vcmask 498688  }
 0x104   :  { %v625_v62 = vpop.permute.xlu0 %624 }
 0x105   :  { %v629_v63 = vsel %vm626_vm0, %v1700_v26, %v625_v62  ;;  %v749_v0 = vld [vmem:[#allocation2 + $0x180] sm:$0xff]  ;;  %v760_v26 = vpack.c.bf16 %v706_v31, %v703_v13  ;;  %vm1435_vm0 = vcmask 367936  }
 0x106   :  { %635 = vst.msk [vmem:[#allocation2 + $0x190] sm:$0xf0] %vm80_vm7, %v629_v63  ;;  %v752_v4 = vld [vmem:[#allocation2 + $0x198] sm:$0xff] }
 0x107   :  { %638 = vst.msk [vmem:[#allocation2 + $0x1a8] sm:$0x3] %vm84_vm8, %v629_v63  ;;  %v782_v6 = vpack.c.bf16 %v752_v4, %v749_v0 }
 0x109   :  { %844 = vmatpush.bf16.msra.mxu1 %v782_v6  ;;  %v1010_v6 = vlaneseq }
 0x10b   :  { %v1014_v9 = vand.u32 127, %v1010_v6 }
 0x10c   :  { %1496 = vmatmul.msk.bf16.vlgmr.msra.gmra.mxu1 %vm809_vm2, %v1495_v55 }
 0x10d   :  { %879 = vmatpush.bf16.msrb.mxu1 %v781_v8  ;;  %v751_v2 = vld [vmem:[#allocation2 + $0x190] sm:$0xff]  ;;  %v1011_v8 = vshrl.u32 %v1010_v6, 7 }
 0x10e   :  { %v754_v56 = vld [vmem:[#allocation2 + $0x1a8] sm:$0xff] }
 0x10f   :  { %v784_v14 = vpack.c.bf16 %v754_v56, %v751_v2  ;;  %v1012_v11 = vadd.s32 8, %v1011_v8 }
 0x111   :  { %880 = vmatpush.bf16.msrb.mxu1 %v778_v12  ;;  %900 = vmatpush.bf16.msrb.mxu3 %v784_v14  ;;  %v1015_v12 = vmul.u32 2, %v1014_v9 }
 0x113   :  { %vm1017_vm7 = vcmp.eq.s32.totalorder %v1012_v11, %v1015_v12  ;;  %vm2383_vm8 = vcmp.eq.s32.totalorder %v1011_v8, %v1015_v12 }
 0x114   :  { %1498 = vmatmul.msk.bf16.vlgmr.msrb.gmra.mxu3 %vm809_vm2, %v1495_v55  ;;  %v2381_v56 = vsel %vm1017_vm7, 0.25, %v1745_v53  ;;  %vm1481_vm2 = vcmask 408936  }
 0x115   :  { %881 = vmatpush.bf16.msrb.mxu1 %v775_v16  ;;  %1499 = vmatpush.msk.msra.mxu3 %vm1029_vm3, %v2381_v56  ;;  %v1746_v16 = vmov 0.25  }
 0x116   :  { %1541 = vmatpush.msk.msrb.mxu2 %vm1029_vm3, %v2381_v56  ;;  %1503 = vmatpush.msk.msrb.mxu0 %vm1029_vm3, %v2381_v56 }
 0x117   :  { %1500 = vmatpush.msk.msra.mxu3 %vm2383_vm8, %v1746_v16 }
 0x118   :  { %1542 = vmatpush.msk.msrb.mxu2 %vm2383_vm8, %v1746_v16  ;;  %1504 = vmatpush.msk.msrb.mxu0 %vm2383_vm8, %v1746_v16 }
 0x119   :  { %882 = vmatpush.bf16.msrb.mxu1 %v772_v5  ;;  %1515 = vmatpush.msk.msrb.mxu3 %vm1029_vm3, %v2381_v56 }
 0x11a   :  { %1507 = vmatpush.msk.msra.mxu2 %vm1029_vm3, %v2381_v56  ;;  %1519 = vmatpush.msk.msra.mxu0 %vm1029_vm3, %v2381_v56 }
 0x11b   :  { %1516 = vmatpush.msk.msrb.mxu3 %vm2383_vm8, %v1746_v16 }
 0x11c   :  { %1508 = vmatpush.msk.msra.mxu2 %vm2383_vm8, %v1746_v16  ;;  %1520 = vmatpush.msk.msra.mxu0 %vm2383_vm8, %v1746_v16 }
 0x11d   :  { %883 = vmatpush.bf16.msrb.mxu1 %v769_v22 }
 0x121   :  { %884 = vmatpush.bf16.msrb.mxu1 %v766_v46 }
 0x125   :  { %885 = vmatpush.bf16.msrb.mxu1 %v763_v28 }
 0x129   :  { %886 = vmatpush.bf16.msrb.mxu1 %v760_v26 }
 0x12c   :  { %887 = vmatmul.bf16.vlgmr.msrb.gmra.mxu1 %v2286_v24 }
 0x12d   :  { %1511 = vmatpush.msk.msra.mxu1 %vm1029_vm3, %v2381_v56 }
 0x12f   :  { %1512 = vmatpush.msk.msra.mxu1 %vm2383_vm8, %v1746_v16 }
 0x131   :  { %1527 = vmatpush.msk.msrb.mxu1 %vm1029_vm3, %v2381_v56 }
 0x133   :  { %1528 = vmatpush.msk.msrb.mxu1 %vm2383_vm8, %v1746_v16 }
 0x13c   :  { %v793_v32 = vpop.permute.xlu0 %792 }
 0x13d   :  { %v798_v47 = vpop.permute.xlu2 %797 }
 0x16d   :  { %v860_v35 = vpop.f32.mrf.mxu2 }
 0x16e   :  { %v861_v36 = vadd.f32 %v860_v35, %v793_v32 }
 0x175   :  { %v832_v40 = vpop.f32.mrf.mxu0  ;;  %v862_v42 = vpop.f32.mrf.mxu2 }
 0x176   :  { %v833_v39 = vadd.f32 %v832_v40, %v793_v32  ;;  %v863_v50 = vadd.f32 %v862_v42, %v798_v47 }
 0x17d   :  { %v834_v27 = vpop.f32.mrf.mxu0 }
 0x17e   :  { %v835_v51 = vadd.f32 %v834_v27, %v798_v47 }
 0x181   :  { %v874_v37 = vpop.f32.mrf.mxu3 }
 0x182   :  { %v875_v38 = vadd.f32 %v874_v37, %v861_v36 }
 0x184   :  { %1708 = vtanh.f32 %v875_v38 }
 0x189   :  { %v846_v41 = vpop.f32.mrf.mxu1  ;;  %v876_v24 = vpop.f32.mrf.mxu3 }
 0x18a   :  { %v2329_v44 = vpop.eup %1708  ;;  %v847_v48 = vadd.f32 %v846_v41, %v833_v39  ;;  %v877_v43 = vadd.f32 %v876_v24, %v863_v50 }
 0x18b   :  { %921 = vrot.lane.b32.xlu0 %v2329_v44, %s1741_s26 }
 0x18c   :  { %1710 = vtanh.f32 %v847_v48 }
 0x18d   :  { %1712 = vtanh.f32 %v877_v43 }
 0x191   :  { %v848_v45 = vpop.f32.mrf.mxu1 }
 0x192   :  { %v2333_v52 = vpop.eup %1710  ;;  %v849_v33 = vadd.f32 %v848_v45, %v835_v51 }
 0x193   :  { %947 = vrot.lane.b32.xlu1 %v2333_v52, %s1734_s21  ;;  %919 = vrot.lane.b32.xlu2 %v2333_v52, %s1741_s26  ;;  %v2339_v34 = vpop.eup %1712 }
 0x194   :  { %1714 = vtanh.f32 %v849_v33 }
 0x197   :  { %v902_v55 = vpop.f32.mrf.mxu3 }
 0x19a   :  { %v2341_v54 = vpop.eup %1714 }
 0x19b   :  { %981 = vrot.lane.b32.xlu0 %v2341_v54, %s1736_s19  ;;  %925 = vrot.lane.b32.xlu1 %v2341_v54, %s1741_s26 }
 0x19c   :  { %927 = vrot.lane.b32.xlu2 %v2339_v34, %s1741_s26 }
 0x19f   :  { %v904_v58 = vpop.f32.mrf.mxu3 }
 0x1a3   :  { %975 = vrot.lane.b32.xlu0 %v2333_v52, %s1736_s19  ;;  %953 = vrot.lane.b32.xlu1 %v2341_v54, %s1734_s21 }
 0x1a4   :  { %955 = vrot.lane.b32.xlu2 %v2339_v34, %s1734_s21 }
 0x1a9   :  { %v888_v21 = vpop.f32.mrf.mxu1 }
 0x1aa   :  { %v889_v23 = vadd.f32 %v888_v21, %v793_v32 }
 0x1ab   :  { %983 = vrot.lane.b32.xlu1 %v2339_v34, %s1736_s19 }
 0x1ac   :  { %v903_v18 = vadd.f32 %v902_v55, %v889_v23  ;;  %949 = vrot.lane.b32.xlu2 %v2329_v44, %s1734_s21 }
 0x1ae   :  { %1716 = vtanh.f32 %v903_v18 }
 0x1b1   :  { %v890_v19 = vpop.f32.mrf.mxu1 }
 0x1b2   :  { %v891_v59 = vadd.f32 %v890_v19, %v798_v47 }
 0x1b3   :  { %977 = vrot.lane.b32.xlu1 %v2329_v44, %s1736_s19 }
 0x1b4   :  { %v2359_v60 = vpop.eup %1716  ;;  %v905_v61 = vadd.f32 %v904_v58, %v891_v59 }
 0x1b5   :  { %951 = vrot.lane.b32.xlu0 %v2359_v60, %s1734_s21  ;;  %923 = vrot.lane.b32.xlu2 %v2359_v60, %s1741_s26 }
 0x1b6   :  { %1718 = vtanh.f32 %v905_v61 }
 0x1bb   :  { %979 = vrot.lane.b32.xlu1 %v2359_v60, %s1736_s19 }
 0x1bc   :  { %v2367_v62 = vpop.eup %1718 }
 0x1bd   :  { %957 = vrot.lane.b32.xlu0 %v2367_v62, %s1734_s21  ;;  %929 = vrot.lane.b32.xlu2 %v2367_v62, %s1741_s26  ;;  %s1748_s21 = smov 44   ;;  %s1751_s26 = smov 60  }
 0x1c3   :  { %985 = vrot.lane.b32.xlu1 %v2367_v62, %s1736_s19  ;;  %s1750_s19 = smov 4  }
 0x1ed   :  { %v920_v63 = vpop.permute.xlu2 %919 }
 0x1f6   :  { %v2377_v0 = vpop.permute.xlu2 %927 }
 0x1fd   :  { %v922_v4 = vpop.permute.xlu0 %921 }
 0x1fe   :  { %v2379_v10 = vpop.permute.xlu2 %955  ;;  %v931_v49 = vsel %vm41_vm15, %v920_v63, %v922_v4 }
 0x1ff   :  { %v941_v28 = vadd.f32 %v2333_v52, %v931_v49 }
 0x205   :  { %v948_v3 = vpop.permute.xlu1 %947 }
 0x206   :  { %v950_v57 = vpop.permute.xlu2 %949 }
 0x207   :  { %v959_v30 = vsel %vm153_vm1, %v948_v3, %v950_v57 }
 0x208   :  { %v969_v31 = vadd.f32 %v959_v30, %v941_v28 }
 0x20d   :  { %v926_v7 = vpop.permute.xlu1 %925  ;;  %v982_v2 = vpop.permute.xlu0 %981 }
 0x20e   :  { %v933_v17 = vsel %vm41_vm15, %v926_v7, %v2377_v0 }
 0x20f   :  { %v944_v20 = vadd.f32 %v2341_v54, %v933_v17  ;;  %v924_v13 = vpop.permute.xlu2 %923 }
 0x210   :  { %v932_v37 = vsel %vm41_vm15, %v922_v4, %v924_v13  ;;  %v943_v38 = vadd.f32 %v2359_v60, %v924_v13 }
 0x211   :  { %v942_v39 = vadd.f32 %v2329_v44, %v932_v37 }
 0x215   :  { %v954_v15 = vpop.permute.xlu1 %953  ;;  %v976_v1 = vpop.permute.xlu0 %975 }
 0x216   :  { %v961_v5 = vsel %vm153_vm1, %v954_v15, %v2379_v10 }
 0x217   :  { %v972_v22 = vadd.f32 %v961_v5, %v944_v20  ;;  %v930_v41 = vpop.permute.xlu2 %929 }
 0x218   :  { %v934_v44 = vsel %vm41_vm15, %v2377_v0, %v930_v41  ;;  %v946_v51 = vadd.f32 %v2367_v62, %v930_v41  ;;  %vm1102_vm15 = vcmask 80936  }
 0x219   :  { %v945_v52 = vadd.f32 %v2339_v34, %v934_v44 }
 0x21d   :  { %v984_v25 = vpop.permute.xlu1 %983 }
 0x21e   :  { %v989_v29 = vsel %vm182_vm4, %v982_v2, %v984_v25 }
 0x21f   :  { %v1000_v46 = vadd.f32 %v989_v29, %v972_v22 }
 0x225   :  { %v978_v32 = vpop.permute.xlu1 %977 }
 0x226   :  { %v987_v35 = vsel %vm182_vm4, %v976_v1, %v978_v32 }
 0x227   :  { %v952_v26 = vpop.permute.xlu0 %951  ;;  %v997_v36 = vadd.f32 %v987_v35, %v969_v31 }
 0x228   :  { %v960_v40 = vsel %vm153_vm1, %v950_v57, %v952_v26  ;;  %v971_v42 = vadd.f32 %v952_v26, %v943_v38 }
 0x229   :  { %1201 = vrot.lane.b32.xlu2 %v997_v36, %s1747_s2  ;;  %1109 = vrot.lane.b32.xlu0 %v997_v36, %s1720_s9  ;;  %v970_v47 = vadd.f32 %v960_v40, %v942_v39 }
 0x22a   :  { %1063 = vrot.lane.b32.xlu1 %v997_v36, %s1731_s23  ;;  %1501 = vmatmul.msk.f32.vlgmr.msra.gmra.mxu3 %vm1022_vm9, %v997_v36 }
 0x22b   :  { %1531 = vmatpush.msk.msra.mxu3 %vm1029_vm3, %v2381_v56 }
 0x22d   :  { %v980_v48 = vpop.permute.xlu1 %979  ;;  %1532 = vmatpush.msk.msra.mxu3 %vm2383_vm8, %v1746_v16 }
 0x22e   :  { %v988_v50 = vsel %vm182_vm4, %v978_v32, %v980_v48  ;;  %v999_v24 = vadd.f32 %v980_v48, %v971_v42 }
 0x22f   :  { %v958_v27 = vpop.permute.xlu0 %957  ;;  %v998_v43 = vadd.f32 %v988_v50, %v970_v47 }
 0x230   :  { %1006 = vst.msk [vmem:[#allocation3 + $0x10] sm:$0xff] %vm1005_vm11, %v999_v24  ;;  %v962_v45 = vsel %vm153_vm1, %v2379_v10, %v958_v27  ;;  %v974_v33 = vadd.f32 %v958_v27, %v946_v51  ;;  %vm1056_vm1 = vcmask 39936  }
 0x231   :  { %1065 = vrot.lane.b32.xlu2 %v1000_v46, %s1731_s23  ;;  %1155 = vrot.lane.b32.xlu0 %v997_v36, %s1748_s21  ;;  %v973_v54 = vadd.f32 %v962_v45, %v945_v52  ;;  %s1749_s23 = smov 104  }
 0x232   :  { %1502 = vmatmul.msk.f32.gmra.mxu3 %vm1022_vm9, %v1000_v46 }
 0x235   :  { %v986_v55 = vpop.permute.xlu1 %985 }
 0x236   :  { %v990_v21 = vsel %vm182_vm4, %v984_v25, %v986_v55  ;;  %v1002_v23 = vadd.f32 %v986_v55, %v974_v33  ;;  %vm1148_vm4 = vcmask 121936  }
 0x237   :  { %v1001_v18 = vadd.f32 %v990_v21, %v973_v54  ;;  %v1392_v19 = vld [vmem:[#allocation3 + $0x10] sm:$0xff] }
 0x238   :  { %1009 = vst.msk [vmem:[#allocation3 + $0x28] sm:$0xff] %vm1005_vm11, %v1002_v23  ;;  %1396 = vrot.lane.b32.xlu1 %v1392_v19, %s1749_s23 }
 0x239   :  { %1345 = vrot.lane.b32.xlu0 %v1392_v19, %s1750_s19  ;;  %1247 = vrot.lane.b32.xlu2 %v998_v43, %s1751_s26 }
 0x23f   :  { %v1393_v34 = vld [vmem:[#allocation3 + $0x28] sm:$0xff] }
 0x240   :  { %1111 = vrot.lane.b32.xlu1 %v1000_v46, %s1720_s9 }
 0x241   :  { %1203 = vrot.lane.b32.xlu0 %v1000_v46, %s1747_s2  ;;  %1293 = vrot.lane.b32.xlu2 %v998_v43, %s1752_s29 }
 0x248   :  { %1157 = vrot.lane.b32.xlu1 %v1000_v46, %s1748_s21 }
 0x249   :  { %1343 = vrot.lane.b32.xlu2 %v998_v43, %s1750_s19  ;;  %1249 = vrot.lane.b32.xlu0 %v1001_v18, %s1751_s26 }
 0x250   :  { %1295 = vrot.lane.b32.xlu1 %v1001_v18, %s1752_s29 }
 0x251   :  { %1442 = vrot.lane.b32.xlu2 %v1392_v19, %s1753_s30  ;;  %1398 = vrot.lane.b32.xlu0 %v1393_v34, %s1749_s23 }
 0x258   :  { %1347 = vrot.lane.b32.xlu1 %v1001_v18, %s1750_s19 }
 0x259   :  { %1349 = vrot.lane.b32.xlu2 %v1393_v34, %s1750_s19  ;;  %1444 = vrot.lane.b32.xlu0 %v1393_v34, %s1753_s30 }
 0x283   :  { %v1202_v58 = vpop.permute.xlu2 %1201 }
 0x284   :  { %1517 = vmatmul.msk.f32.vlgmr.msrb.gmra.mxu3 %vm1022_vm9, %v1202_v58 }
 0x28b   :  { %v1066_v59 = vpop.permute.xlu2 %1065 }
 0x28c   :  { %1506 = vmatmul.msk.f32.vlgmr.msrb.gmra.mxu2 %vm1022_vm9, %v1066_v59 }
 0x28d   :  { %1523 = vmatpush.msk.msrb.mxu2 %vm1029_vm3, %v2381_v56 }
 0x28f   :  { %1524 = vmatpush.msk.msrb.mxu2 %vm2383_vm8, %v1746_v16 }
 0x293   :  { %v1248_v62 = vpop.permute.xlu2 %1247 }
 0x29b   :  { %v1110_v60 = vpop.permute.xlu0 %1109  ;;  %v1294_v4 = vpop.permute.xlu2 %1293 }
 0x29c   :  { %v1064_v61 = vpop.permute.xlu1 %1063  ;;  %1509 = vmatmul.msk.f32.vlgmr.msra.gmra.mxu2 %vm1022_vm9, %v1110_v60 }
 0x29d   :  { %1505 = vmatmul.msk.f32.vlgmr.msrb.gmra.mxu0 %vm1022_vm9, %v1064_v61 }
 0x29e   :  { %1535 = vmatpush.msk.msrb.mxu0 %vm1029_vm3, %v2381_v56 }
 0x2a0   :  { %1536 = vmatpush.msk.msrb.mxu0 %vm2383_vm8, %v1746_v16 }
 0x2a3   :  { %v1156_v63 = vpop.permute.xlu0 %1155  ;;  %v1344_v10 = vpop.permute.xlu2 %1343 }
 0x2a4   :  { %1513 = vmatmul.msk.f32.vlgmr.msra.gmra.mxu1 %vm1022_vm9, %v1156_v63 }
 0x2a5   :  { %1521 = vmatmul.msk.f32.vlgmr.msra.gmra.mxu0 %vm1022_vm9, %v1248_v62 }
 0x2aa   :  { %v1397_v0 = vpop.permute.xlu1 %1396 }
 0x2ab   :  { %v1346_v3 = vpop.permute.xlu0 %1345  ;;  %v1443_v2 = vpop.permute.xlu2 %1442 }
 0x2ac   :  { %v1352_v53 = vsel %vm1351_vm14, %v1344_v10, %v1346_v3 }
 0x2ad   :  { %v1050_v6 = vpop.f32.mrf.mxu3 }
 0x2ae   :  { %1057 = vst.msk [vmem:[%s2567_s3] sm:$0xff] %vm1056_vm1, %v1050_v6 }
 0x2b2   :  { %v1112_v7 = vpop.permute.xlu1 %1111 }
 0x2b3   :  { %1510 = vmatmul.msk.f32.gmra.mxu2 %vm1022_vm9, %v1112_v7  ;;  %v1204_v8 = vpop.permute.xlu0 %1203  ;;  %v1350_v15 = vpop.permute.xlu2 %1349 }
 0x2b4   :  { %1518 = vmatmul.msk.f32.gmra.mxu3 %vm1022_vm9, %v1204_v8 }
 0x2b5   :  { %v1053_v9 = vpop.f32.mrf.mxu3 }
 0x2b6   :  { %1058 = vst.msk [vmem:[%s2567_s3 + $0x8] sm:$0xff] %vm1056_vm1, %v1053_v9 }
 0x2ba   :  { %v1158_v11 = vpop.permute.xlu1 %1157 }
 0x2bb   :  { %1514 = vmatmul.msk.f32.gmra.mxu1 %vm1022_vm9, %v1158_v11  ;;  %1525 = vmatmul.msk.f32.vlgmr.msrb.gmra.mxu2 %vm1022_vm9, %v1294_v4  ;;  %v1250_v12 = vpop.permute.xlu0 %1249 }
 0x2bc   :  { %1522 = vmatmul.msk.f32.gmra.mxu0 %vm1022_vm9, %v1250_v12  ;;  %1533 = vmatmul.msk.f32.vlgmr.msra.gmra.mxu3 %vm1022_vm9, %v1397_v0 }
 0x2c2   :  { %v1296_v56 = vpop.permute.xlu1 %1295 }
 0x2c3   :  { %1526 = vmatmul.msk.f32.gmra.mxu2 %vm1022_vm9, %v1296_v56  ;;  %1529 = vmatmul.msk.f32.vlgmr.msrb.gmra.mxu1 %vm1022_vm9, %v1352_v53  ;;  %v1399_v14 = vpop.permute.xlu0 %1398 }
 0x2c4   :  { %1534 = vmatmul.msk.f32.gmra.mxu3 %vm1022_vm9, %v1399_v14  ;;  %1537 = vmatmul.msk.f32.vlgmr.msrb.gmra.mxu0 %vm1022_vm9, %v1443_v2 }
 0x2ca   :  { %v1348_v16 = vpop.permute.xlu1 %1347 }
 0x2cb   :  { %v1353_v17 = vsel %vm1351_vm14, %v1348_v16, %v1350_v15  ;;  %v1445_v57 = vpop.permute.xlu0 %1444 }
 0x2cc   :  { %1530 = vmatmul.msk.f32.gmra.mxu1 %vm1022_vm9, %v1353_v17  ;;  %1538 = vmatmul.msk.f32.gmra.mxu0 %vm1022_vm9, %v1445_v57 }
 0x307   :  { %v1226_v1 = vpop.f32.mrf.mxu3 }
 0x30f   :  { %v1091_v22 = vpop.f32.mrf.mxu2 }
 0x31a   :  { %v1088_v5 = vpop.f32.mrf.mxu0 }
 0x31b   :  { %1096 = vrot.lane.b32.xlu1 %v1088_v5, %s1754_s6 }
 0x31f   :  { %v1134_v30 = vpop.f32.mrf.mxu2 }
 0x321   :  { %v1180_v20 = vpop.f32.mrf.mxu1 }
 0x322   :  { %1188 = vrot.lane.b32.xlu2 %v1180_v20, %s1755_s7  ;;  %v1272_v25 = vpop.f32.mrf.mxu0 }
 0x323   :  { %1234 = vrot.lane.b32.xlu1 %v1226_v1, %s1756_s8 }
 0x32a   :  { %1098 = vrot.lane.b32.xlu2 %v1091_v22, %s1754_s6 }
 0x336   :  { %v1137_v13 = vpop.f32.mrf.mxu2 }
 0x337   :  { %v1229_v29 = vpop.f32.mrf.mxu3 }
 0x338   :  { %v1183_v46 = vpop.f32.mrf.mxu1  ;;  %1236 = vrot.lane.b32.xlu2 %v1229_v29, %s1756_s8 }
 0x339   :  { %1190 = vrot.lane.b32.xlu0 %v1183_v46, %s1755_s7  ;;  %v1275_v49 = vpop.f32.mrf.mxu0 }
 0x33a   :  { %1282 = vrot.lane.b32.xlu1 %v1275_v49, %s1757_s27 }
 0x33e   :  { %v1318_v32 = vpop.f32.mrf.mxu2 }
 0x33f   :  { %v1421_v31 = vpop.f32.mrf.mxu3 }
 0x340   :  { %v1375_v28 = vpop.f32.mrf.mxu1 }
 0x341   :  { %1280 = vrot.lane.b32.xlu0 %v1272_v25, %s1757_s27  ;;  %v1467_v36 = vpop.f32.mrf.mxu0 }
 0x342   :  { %1383 = vrot.lane.b32.xlu1 %v1375_v28, %s1758_s11 }
 0x346   :  { %v1321_v37 = vpop.f32.mrf.mxu2 }
 0x347   :  { %v1424_v35 = vpop.f32.mrf.mxu3 }
 0x349   :  { %1142 = vrot.lane.b32.xlu0 %v1134_v30, %s1759_s12  ;;  %v1378_v26 = vpop.f32.mrf.mxu1  ;;  %v1470_v38 = vpop.f32.mrf.mxu0 }
 0x34a   :  { %1385 = vrot.lane.b32.xlu2 %v1378_v26, %s1758_s11  ;;  %1144 = vrot.lane.b32.xlu1 %v1137_v13, %s1759_s12 }
 0x351   :  { %1429 = vrot.lane.b32.xlu0 %v1421_v31, %s1760_s14 }
 0x352   :  { %1326 = vrot.lane.b32.xlu2 %v1318_v32, %s1761_s0  ;;  %1431 = vrot.lane.b32.xlu1 %v1424_v35, %s1760_s14 }
 0x359   :  { %1328 = vrot.lane.b32.xlu0 %v1321_v37, %s1761_s0 }
 0x35a   :  { %1475 = vrot.lane.b32.xlu2 %v1467_v36, %s1762_s15 }
 0x361   :  { %1477 = vrot.lane.b32.xlu0 %v1470_v38, %s1762_s15 }
 0x37c   :  { %v1189_v40 = vpop.permute.xlu2 %1188 }
 0x384   :  { %v1099_v39 = vpop.permute.xlu2 %1098 }
 0x385   :  { %1104 = vst.msk [vmem:[%s2567_s3 + $0x8] sm:$0xff] %vm1102_vm15, %v1099_v39 }
 0x38d   :  { %v1097_v42 = vpop.permute.xlu1 %1096 }
 0x38e   :  { %1103 = vst.msk [vmem:[%s2567_s3] sm:$0xff] %vm1102_vm15, %v1097_v42 }
 0x392   :  { %v1237_v47 = vpop.permute.xlu2 %1236 }
 0x395   :  { %v1235_v41 = vpop.permute.xlu1 %1234 }
 0x3a4   :  { %v1386_v24 = vpop.permute.xlu2 %1385 }
 0x3ab   :  { %v1191_v48 = vpop.permute.xlu0 %1190 }
 0x3ac   :  { %v1283_v50 = vpop.permute.xlu1 %1282  ;;  %v1327_v44 = vpop.permute.xlu2 %1326 }
 0x3b3   :  { %v1281_v27 = vpop.permute.xlu0 %1280 }
 0x3b4   :  { %v1384_v43 = vpop.permute.xlu1 %1383  ;;  %v1476_v33 = vpop.permute.xlu2 %1475 }
 0x3bb   :  { %v1143_v51 = vpop.permute.xlu0 %1142 }
 0x3bc   :  { %1149 = vst.msk [vmem:[%s2567_s3] sm:$0xff] %vm1148_vm4, %v1143_v51  ;;  %v1145_v45 = vpop.permute.xlu1 %1144 }
 0x3bd   :  { %1195 = vst.msk [vmem:[%s2567_s3] sm:$0xff] %vm1194_vm10, %v1189_v40 }
 0x3be   :  { %1241 = vst.msk [vmem:[%s2567_s3] sm:$0xff] %vm1240_vm6, %v1235_v41 }
 0x3bf   :  { %1287 = vst.msk [vmem:[%s2567_s3] sm:$0xff] %vm1286_vm12, %v1281_v27 }
 0x3c0   :  { %1333 = vst.msk [vmem:[%s2567_s3] sm:$0xff] %vm1332_vm5, %v1327_v44 }
 0x3c1   :  { %1390 = vst.msk [vmem:[%s2567_s3] sm:$0xff] %vm1389_vm13, %v1384_v43 }
 0x3c2   :  { %1150 = vst.msk [vmem:[%s2567_s3 + $0x8] sm:$0xff] %vm1148_vm4, %v1145_v45 }
 0x3c3   :  { %v1430_v52 = vpop.permute.xlu0 %1429  ;;  %1196 = vst.msk [vmem:[%s2567_s3 + $0x8] sm:$0xff] %vm1194_vm10, %v1191_v48 }
 0x3c4   :  { %1436 = vst.msk [vmem:[%s2567_s3] sm:$0xff] %vm1435_vm0, %v1430_v52  ;;  %v1432_v55 = vpop.permute.xlu1 %1431 }
 0x3c5   :  { %1482 = vst.msk [vmem:[%s2567_s3] sm:$0xff] %vm1481_vm2, %v1476_v33 }
 0x3c6   :  { %1242 = vst.msk [vmem:[%s2567_s3 + $0x8] sm:$0xff] %vm1240_vm6, %v1237_v47 }
 0x3c7   :  { %1288 = vst.msk [vmem:[%s2567_s3 + $0x8] sm:$0xff] %vm1286_vm12, %v1283_v50 }
 0x3cb   :  { %v1329_v54 = vpop.permute.xlu0 %1328 }
 0x3cc   :  { %1334 = vst.msk [vmem:[%s2567_s3 + $0x8] sm:$0xff] %vm1332_vm5, %v1329_v54 }
 0x3cd   :  { %1391 = vst.msk [vmem:[%s2567_s3 + $0x8] sm:$0xff] %vm1389_vm13, %v1386_v24 }
 0x3ce   :  { %1437 = vst.msk [vmem:[%s2567_s3 + $0x8] sm:$0xff] %vm1435_vm0, %v1432_v55 }
 0x3d3   :  { %v1478_v21 = vpop.permute.xlu0 %1477 }
 0x3d4   :  { %1483 = vst.msk [vmem:[%s2567_s3 + $0x8] sm:$0xff] %vm1481_vm2, %v1478_v21 }

// kernel: lenet5_forward.3
= control target key start
LH: loop header
LB: loop body
LE: loop exit
PB: predicated region body
PF: predicated region fallthrough
CT: control target
= control target key end

     0   :  { %vm39_vm0 = vcmask 1040384   ;;  %vm41_vm1 = vcmask 1042434   ;;  %vm43_vm2 = vcmask 1041408   ;;  %vm45_vm3 = vcmask 1044484   ;;  %s3256_s20 = smov 29   ;;  %s3257_s21 = smov 31   ;;  %s4472_s0 = inlined_call_operand.vmem [shape: bf16[1,2048], index: 0, kind: input, shape index: {}]   ;;  %s4473_s1 = inlined_call_operand.vmem [shape: bf16[6,25], index: 1, kind: input, shape index: {}]   ;;  %s4474_s2 = inlined_call_operand.vmem [shape: f32[6,1], index: 2, kind: input, shape index: {}]   ;;  %s4475_s3 = inlined_call_operand.vmem [shape: f32[6,392], index: 3, kind: output, shape index: {}]  }
   0x1   :  { %vm47_vm4 = vcmask 1046534   ;;  %vm49_vm5 = vcmask 1045508   ;;  %vm51_vm6 = vcmask 1043456   ;;  %v1024_v0 = vld [vmem:[%s4472_s0] sm:$0xff]  ;;  %v1025_v1 = vld [vmem:[%s4472_s0 + $0x8] sm:$0xff]  ;;  %s3258_s26 = smov 28  }
   0x2   :  { %v1026_v2 = vunpack.c.l.bf16 %v1024_v0  ;;  %v1027_v3 = vunpack.c.h.bf16 %v1024_v0  ;;  %v1028_v4 = vunpack.c.l.bf16 %v1025_v1  ;;  %v1029_v5 = vunpack.c.h.bf16 %v1025_v1  ;;  %v1347_v6 = vld [vmem:[%s4472_s0 + $0x1] sm:$0xff]  ;;  %v1348_v7 = vld [vmem:[%s4472_s0 + $0x9] sm:$0x7f]  ;;  %s3259_s27 = smov 30   ;;  %s3260_s7 = smov 124  }
   0x3   :  { %v1349_v8 = vunpack.c.l.bf16 %v1347_v6  ;;  %v1350_v9 = vunpack.c.h.bf16 %v1347_v6  ;;  %v1351_v10 = vunpack.c.l.bf16 %v1348_v7  ;;  %v3333_v11 = vunpack.c.h.bf16 %v1348_v7  ;;  %v1293_v56 = vld [vmem:[%s4472_s0 + $0x9] sm:$0x7f]  ;;  %s3261_s8 = smov 125   ;;  %s3262_s9 = smov 127  }
   0x4   :  { %v1034_v12 = vrot.slane %v1026_v2, 1  ;;  %v1035_v13 = vrot.slane %v1026_v2, 2  ;;  %v1036_v14 = vrot.slane %v1026_v2, 3  ;;  %v1037_v15 = vrot.slane %v1027_v3, 4  ;;  %v1183_v61 = vld [vmem:[%s4472_s0 + $0x9] sm:$0x7f] }
   0x5   :  { %v1038_v16 = vrot.slane %v1027_v3, 5  ;;  %v1039_v17 = vrot.slane %v1027_v3, 6  ;;  %v1040_v18 = vrot.slane %v1027_v3, 7  ;;  %v1041_v19 = vrot.slane %v1028_v4, 1  ;;  %s3263_s14 = smov 126   ;;  %s3264_s19 = smov 95  }
   0x6   :  { %v1042_v20 = vrot.slane %v1028_v4, 2  ;;  %v1043_v21 = vrot.slane %v1028_v4, 3  ;;  %v1044_v22 = vrot.slane %v1029_v5, 4  ;;  %v1045_v23 = vrot.slane %v1029_v5, 5  ;;  %s3267_s22 = smov 93   ;;  %s3268_s23 = smov 62  }
   0x7   :  { %v1046_v24 = vrot.slane %v1029_v5, 6  ;;  %v1047_v25 = vrot.slane %v1029_v5, 7  ;;  %v1048_v26 = vsel %vm39_vm0, %v1026_v2, %v1034_v12  ;;  %v1049_v27 = vsel %vm41_vm1, %v1035_v13, %v1036_v14  ;;  %s3269_s24 = smov 63   ;;  %s3270_s25 = smov 94  }
   0x8   :  { %v1050_v28 = vsel %vm43_vm2, %v1048_v26, %v1049_v27  ;;  %v1051_v29 = vsel %vm45_vm3, %v1037_v15, %v1038_v16  ;;  %v1052_v30 = vsel %vm47_vm4, %v1039_v17, %v1040_v18  ;;  %v1055_v31 = vsel %vm39_vm0, %v1028_v4, %v1041_v19  ;;  %v185_v26 = vld [vmem:[%s4472_s0 + $0x8] sm:$0x7f]  ;;  %s3272_s28 = smov 60   ;;  %s3273_s29 = smov 64  }
   0x9   :  { %v1053_v32 = vsel %vm49_vm5, %v1051_v29, %v1052_v30  ;;  %v1056_v33 = vsel %vm41_vm1, %v1042_v20, %v1043_v21  ;;  %v1058_v34 = vsel %vm45_vm3, %v1044_v22, %v1045_v23  ;;  %v1059_v35 = vsel %vm47_vm4, %v1046_v24, %v1047_v25  ;;  %s3274_s30 = smov 61   ;;  %s3279_s17 = smov 56  }
   0xa   :  { %v3346_v36 = vsel %vm51_vm6, %v1050_v28, %v1053_v32  ;;  %v1057_v37 = vsel %vm43_vm2, %v1055_v31, %v1056_v33  ;;  %v1060_v38 = vsel %vm49_vm5, %v1058_v34, %v1059_v35  ;;  %v1357_v39 = vrot.slane %v1349_v8, 1  ;;  %v129_v31 = vld [vmem:[%s4472_s0 + $0x8] sm:$0x7f]  ;;  %s3281_s18 = smov 112   ;;  %s3293_s4 = smov 54  }
   0xb   :  { %v1061_v40 = vsel %vm51_vm6, %v1057_v37, %v1060_v38  ;;  %v1358_v41 = vrot.slane %v1349_v8, 2  ;;  %v1359_v42 = vrot.slane %v1349_v8, 3  ;;  %v1360_v43 = vrot.slane %v1350_v9, 4  ;;  %s3294_s5 = smov 82   ;;  %s3296_s10 = smov 66  }
   0xc   :  { %v3352_v44 = vpack.i.bf16 %v1061_v40, %v3346_v36  ;;  %v1361_v45 = vrot.slane %v1350_v9, 5  ;;  %v1362_v46 = vrot.slane %v1350_v9, 6  ;;  %v1363_v47 = vrot.slane %v1350_v9, 7  ;;  %s3297_s11 = smov 38   ;;  %s3299_s16 = smov 110  }
   0xd   :  { %v1364_v48 = vrot.slane %v1351_v10, 1  ;;  %v1365_v49 = vrot.slane %v1351_v10, 2  ;;  %v1366_v50 = vrot.slane %v1351_v10, 3  ;;  %v1367_v51 = vrot.slane %v3333_v11, 4 }
   0xe   :  { %3120 = vrot.lane.b32.xlu1 %v3352_v44, %s3256_s20  ;;  %3110 = vrot.lane.b32.xlu0 %v3352_v44, %s3257_s21  ;;  %v1368_v52 = vrot.slane %v3333_v11, 5  ;;  %v1369_v53 = vrot.slane %v3333_v11, 6  ;;  %v1370_v54 = vrot.slane %v3333_v11, 7  ;;  %v1371_v55 = vsel %vm39_vm0, %v1349_v8, %v1357_v39  ;;  %s3265_s20 = smov 96   ;;  %s3266_s21 = smov 92  }
   0xf   :  { %v1372_v57 = vsel %vm41_vm1, %v1358_v41, %v1359_v42  ;;  %v1374_v58 = vsel %vm45_vm3, %v1360_v43, %v1361_v45  ;;  %v1375_v59 = vsel %vm47_vm4, %v1362_v46, %v1363_v47  ;;  %v1378_v60 = vsel %vm39_vm0, %v1351_v10, %v1364_v48 }
  0x10   :  { %v1373_v62 = vsel %vm43_vm2, %v1371_v55, %v1372_v57  ;;  %v1376_v63 = vsel %vm49_vm5, %v1374_v58, %v1375_v59  ;;  %v1379_v0 = vsel %vm41_vm1, %v1365_v49, %v1366_v50  ;;  %v1381_v1 = vsel %vm45_vm3, %v1367_v51, %v1368_v52 }
  0x11   :  { %v3376_v2 = vsel %vm51_vm6, %v1373_v62, %v1376_v63  ;;  %v1380_v3 = vsel %vm43_vm2, %v1378_v60, %v1379_v0  ;;  %v1382_v4 = vsel %vm47_vm4, %v1369_v53, %v1370_v54  ;;  %v1296_v5 = vunpack.c.l.bf16 %v1293_v56  ;;  %v1238_v54 = vld [vmem:[%s4472_s0 + $0x9] sm:$0x7f] }
  0x12   :  { %v1383_v6 = vsel %vm49_vm5, %v1381_v1, %v1382_v4  ;;  %v1297_v7 = vunpack.c.h.bf16 %v1293_v56  ;;  %v1186_v8 = vunpack.c.l.bf16 %v1183_v61  ;;  %v1187_v9 = vunpack.c.h.bf16 %v1183_v61 }
  0x13   :  { %v1384_v10 = vsel %vm51_vm6, %v1380_v3, %v1383_v6  ;;  %v1309_v11 = vrot.slane %v1296_v5, 1  ;;  %v1310_v12 = vrot.slane %v1296_v5, 2  ;;  %v1311_v13 = vrot.slane %v1296_v5, 3 }
  0x14   :  { %v3144_v14 = vpack.i.bf16 %v1384_v10, %v3376_v2  ;;  %v1312_v15 = vrot.slane %v1297_v7, 4  ;;  %v1313_v16 = vrot.slane %v1297_v7, 5  ;;  %v1314_v17 = vrot.slane %v1297_v7, 6 }
  0x15   :  { %v1315_v18 = vrot.slane %v1297_v7, 7  ;;  %v1323_v19 = vsel %vm39_vm0, %v1296_v5, %v1309_v11  ;;  %v1324_v20 = vsel %vm41_vm1, %v1310_v12, %v1311_v13  ;;  %v1199_v21 = vrot.slane %v1186_v8, 1 }
  0x16   :  { %3125 = vrot.lane.b32.xlu1 %v3352_v44, %s3258_s26  ;;  %3115 = vrot.lane.b32.xlu0 %v3352_v44, %s3259_s27  ;;  %v1325_v22 = vsel %vm43_vm2, %v1323_v19, %v1324_v20  ;;  %v1326_v23 = vsel %vm45_vm3, %v1312_v15, %v1313_v16  ;;  %v1200_v24 = vrot.slane %v1186_v8, 2  ;;  %v1201_v25 = vrot.slane %v1186_v8, 3  ;;  %v71_v20 = vld [vmem:[%s4472_s0] sm:$0xff]  ;;  %s3271_s27 = smov 32  }
  0x17   :  { %v1327_v27 = vsel %vm47_vm4, %v1314_v17, %v1315_v18  ;;  %v1202_v28 = vrot.slane %v1187_v9, 4  ;;  %v1203_v29 = vrot.slane %v1187_v9, 5  ;;  %v1204_v30 = vrot.slane %v1187_v9, 6 }
  0x18   :  { %v1328_v32 = vsel %vm49_vm5, %v1326_v23, %v1327_v27  ;;  %v1205_v33 = vrot.slane %v1187_v9, 7  ;;  %v1213_v34 = vsel %vm39_vm0, %v1186_v8, %v1199_v21  ;;  %v1214_v35 = vsel %vm41_vm1, %v1200_v24, %v1201_v25  ;;  %v72_v25 = vld [vmem:[%s4472_s0 + $0x8] sm:$0x7f] }
  0x19   :  { %v1329_v37 = vsel %vm51_vm6, %v1325_v22, %v1328_v32  ;;  %v1215_v38 = vsel %vm43_vm2, %v1213_v34, %v1214_v35  ;;  %v1216_v39 = vsel %vm45_vm3, %v1202_v28, %v1203_v29  ;;  %v188_v40 = vunpack.c.l.bf16 %v185_v26 }
  0x1a   :  { %v3139_v41 = vpack.i.bf16 %v1329_v37, %v3376_v2  ;;  %v1217_v42 = vsel %vm47_vm4, %v1204_v30, %v1205_v33  ;;  %v189_v43 = vunpack.c.h.bf16 %v185_v26  ;;  %v132_v45 = vunpack.c.l.bf16 %v129_v31 }
  0x1b   :  { %v1218_v46 = vsel %vm49_vm5, %v1216_v39, %v1217_v42  ;;  %v201_v47 = vrot.slane %v188_v40, 1  ;;  %v202_v48 = vrot.slane %v188_v40, 2  ;;  %v203_v49 = vrot.slane %v188_v40, 3 }
  0x1c   :  { %v1219_v50 = vsel %vm51_vm6, %v1215_v38, %v1218_v46  ;;  %v204_v51 = vrot.slane %v189_v43, 4  ;;  %v205_v52 = vrot.slane %v189_v43, 5  ;;  %v206_v53 = vrot.slane %v189_v43, 6 }
  0x1d   :  { %v3129_v55 = vpack.i.bf16 %v1219_v50, %v3376_v2  ;;  %v207_v56 = vrot.slane %v189_v43, 7  ;;  %v215_v57 = vsel %vm39_vm0, %v188_v40, %v201_v47  ;;  %v216_v58 = vsel %vm41_vm1, %v202_v48, %v203_v49 }
  0x1e   :  { %3145 = vrot.lane.b32.xlu1 %v3144_v14, %s3260_s7  ;;  %3140 = vrot.lane.b32.xlu0 %v3139_v41, %s3261_s8  ;;  %v217_v59 = vsel %vm43_vm2, %v215_v57, %v216_v58  ;;  %v218_v60 = vsel %vm45_vm3, %v204_v51, %v205_v52  ;;  %v133_v61 = vunpack.c.h.bf16 %v129_v31  ;;  %v145_v62 = vrot.slane %v132_v45, 1 }
  0x1f   :  { %3130 = vrot.lane.b32.xlu2 %v3129_v55, %s3262_s9  ;;  %v219_v63 = vsel %vm47_vm4, %v206_v53, %v207_v56  ;;  %v146_v0 = vrot.slane %v132_v45, 2  ;;  %v147_v1 = vrot.slane %v132_v45, 3  ;;  %v1241_v3 = vunpack.c.l.bf16 %v1238_v54 }
  0x20   :  { %v220_v4 = vsel %vm49_vm5, %v218_v60, %v219_v63  ;;  %v148_v5 = vrot.slane %v133_v61, 4  ;;  %v149_v6 = vrot.slane %v133_v61, 5  ;;  %v150_v7 = vrot.slane %v133_v61, 6  ;;  %v241_v63 = vld [vmem:[%s4472_s0 + $0x8] sm:$0x7f] }
  0x21   :  { %v221_v8 = vsel %vm51_vm6, %v217_v59, %v220_v4  ;;  %v151_v9 = vrot.slane %v133_v61, 7  ;;  %v159_v10 = vsel %vm39_vm0, %v132_v45, %v145_v62  ;;  %v160_v11 = vsel %vm41_vm1, %v146_v0, %v147_v1 }
  0x22   :  { %v3159_v12 = vpack.i.bf16 %v221_v8, %v3346_v36  ;;  %v161_v13 = vsel %vm43_vm2, %v159_v10, %v160_v11  ;;  %v162_v14 = vsel %vm45_vm3, %v148_v5, %v149_v6  ;;  %v1242_v15 = vunpack.c.h.bf16 %v1238_v54 }
  0x23   :  { %v163_v16 = vsel %vm47_vm4, %v150_v7, %v151_v9  ;;  %v1254_v17 = vrot.slane %v1241_v3, 1  ;;  %v1255_v18 = vrot.slane %v1241_v3, 2  ;;  %v1256_v19 = vrot.slane %v1241_v3, 3 }
  0x24   :  { %v164_v21 = vsel %vm49_vm5, %v162_v14, %v163_v16  ;;  %v1257_v22 = vrot.slane %v1242_v15, 4  ;;  %v1258_v23 = vrot.slane %v1242_v15, 5  ;;  %v1259_v24 = vrot.slane %v1242_v15, 6 }
  0x25   :  { %v165_v26 = vsel %vm51_vm6, %v161_v13, %v164_v21  ;;  %v1260_v27 = vrot.slane %v1242_v15, 7  ;;  %v1268_v28 = vsel %vm39_vm0, %v1241_v3, %v1254_v17  ;;  %v1269_v29 = vsel %vm41_vm1, %v1255_v18, %v1256_v19 }
  0x26   :  { %3160 = vrot.lane.b32.xlu1 %v3159_v12, %s3261_s8  ;;  %v3154_v30 = vpack.i.bf16 %v165_v26, %v3346_v36  ;;  %v1270_v31 = vsel %vm43_vm2, %v1268_v28, %v1269_v29  ;;  %v1271_v32 = vsel %vm45_vm3, %v1257_v22, %v1258_v23  ;;  %v73_v33 = vunpack.c.l.bf16 %v71_v20  ;;  %s3295_s8 = smov 10  }
  0x27   :  { %v1272_v34 = vsel %vm47_vm4, %v1259_v24, %v1260_v27  ;;  %v74_v35 = vunpack.c.h.bf16 %v71_v20  ;;  %v75_v37 = vunpack.c.l.bf16 %v72_v25  ;;  %v76_v38 = vunpack.c.h.bf16 %v72_v25 }
  0x28   :  { %3155 = vrot.lane.b32.xlu0 %v3154_v30, %s3263_s14  ;;  %v1273_v39 = vsel %vm49_vm5, %v1271_v32, %v1272_v34  ;;  %v81_v40 = vrot.slane %v73_v33, 1  ;;  %v82_v41 = vrot.slane %v73_v33, 2  ;;  %v83_v42 = vrot.slane %v73_v33, 3 }
  0x29   :  { %v1274_v36 = vsel %vm51_vm6, %v1270_v31, %v1273_v39  ;;  %v84_v43 = vrot.slane %v74_v35, 4  ;;  %v85_v45 = vrot.slane %v74_v35, 5  ;;  %v86_v46 = vrot.slane %v74_v35, 6 }
  0x2a   :  { %v3134_v47 = vpack.i.bf16 %v1274_v36, %v3376_v2  ;;  %v87_v48 = vrot.slane %v74_v35, 7  ;;  %v88_v49 = vrot.slane %v75_v37, 1  ;;  %v89_v50 = vrot.slane %v75_v37, 2  ;;  %v689_v2 = vld [vmem:[%s4472_s0 + $0x8] sm:$0xff] }
  0x2b   :  { %v90_v51 = vrot.slane %v75_v37, 3  ;;  %v91_v52 = vrot.slane %v76_v38, 4  ;;  %v92_v53 = vrot.slane %v76_v38, 5  ;;  %v93_v54 = vrot.slane %v76_v38, 6 }
  0x2c   :  { %3135 = vrot.lane.b32.xlu2 %v3134_v47, %s3263_s14  ;;  %v94_v55 = vrot.slane %v76_v38, 7  ;;  %v95_v56 = vsel %vm39_vm0, %v73_v33, %v81_v40  ;;  %v96_v57 = vsel %vm41_vm1, %v82_v41, %v83_v42  ;;  %v98_v58 = vsel %vm45_vm3, %v84_v43, %v85_v45 }
  0x2d   :  { %v97_v59 = vsel %vm43_vm2, %v95_v56, %v96_v57  ;;  %v99_v60 = vsel %vm47_vm4, %v86_v46, %v87_v48  ;;  %v102_v61 = vsel %vm39_vm0, %v75_v37, %v88_v49  ;;  %v103_v62 = vsel %vm41_vm1, %v89_v50, %v90_v51  ;;  %v3748_v49 = vld [vmem:[%s4473_s1] sm:$0x7] }
  0x2e   :  { %3175 = vrot.lane.b32.xlu1 %v3352_v44, %s3264_s19  ;;  %v100_v0 = vsel %vm49_vm5, %v98_v58, %v99_v60  ;;  %v104_v1 = vsel %vm43_vm2, %v102_v61, %v103_v62  ;;  %v105_v3 = vsel %vm45_vm3, %v91_v52, %v92_v53  ;;  %v106_v4 = vsel %vm47_vm4, %v93_v54, %v94_v55 }
  0x2f   :  { %v101_v5 = vsel %vm51_vm6, %v97_v59, %v100_v0  ;;  %v107_v6 = vsel %vm49_vm5, %v105_v3, %v106_v4  ;;  %v692_v7 = vunpack.c.l.bf16 %v689_v2  ;;  %v693_v8 = vunpack.c.h.bf16 %v689_v2 }
  0x30   :  { %3170 = vrot.lane.b32.xlu0 %v3352_v44, %s3265_s20  ;;  %v108_v9 = vsel %vm51_vm6, %v104_v1, %v107_v6  ;;  %v244_v10 = vunpack.c.l.bf16 %v241_v63  ;;  %v245_v11 = vunpack.c.h.bf16 %v241_v63  ;;  %v64_v43 = vlaneseq }
  0x31   :  { %v3149_v12 = vpack.i.bf16 %v108_v9, %v101_v5  ;;  %v705_v13 = vrot.slane %v692_v7, 1  ;;  %v706_v14 = vrot.slane %v692_v7, 2  ;;  %v707_v15 = vrot.slane %v692_v7, 3 }
  0x32   :  { %v708_v16 = vrot.slane %v693_v8, 4  ;;  %v709_v17 = vrot.slane %v693_v8, 5  ;;  %v710_v18 = vrot.slane %v693_v8, 6  ;;  %v711_v19 = vrot.slane %v693_v8, 7 }
  0x33   :  { %v719_v20 = vsel %vm39_vm0, %v692_v7, %v705_v13  ;;  %v720_v21 = vsel %vm41_vm1, %v706_v14, %v707_v15  ;;  %v257_v22 = vrot.slane %v244_v10, 1  ;;  %v258_v23 = vrot.slane %v244_v10, 2 }
  0x34   :  { %3150 = vrot.lane.b32.xlu2 %v3149_v12, %s3262_s9  ;;  %v721_v24 = vsel %vm43_vm2, %v719_v20, %v720_v21  ;;  %v722_v25 = vsel %vm45_vm3, %v708_v16, %v709_v17  ;;  %v723_v26 = vsel %vm47_vm4, %v710_v18, %v711_v19  ;;  %v259_v27 = vrot.slane %v244_v10, 3 }
  0x35   :  { %v724_v28 = vsel %vm49_vm5, %v722_v25, %v723_v26  ;;  %v260_v29 = vrot.slane %v245_v11, 4  ;;  %v261_v30 = vrot.slane %v245_v11, 5  ;;  %v262_v31 = vrot.slane %v245_v11, 6 }
  0x36   :  { %3190 = vrot.lane.b32.xlu1 %v3352_v44, %s3266_s21  ;;  %v263_v32 = vrot.slane %v245_v11, 7  ;;  %v271_v33 = vsel %vm39_vm0, %v244_v10, %v257_v22  ;;  %v272_v34 = vsel %vm41_vm1, %v258_v23, %v259_v27  ;;  %v725_v35 = vsel %vm51_vm6, %v721_v24, %v724_v28  ;;  %s3283_s21 = smov 40  }
  0x37   :  { %v273_v37 = vsel %vm43_vm2, %v271_v33, %v272_v34  ;;  %v274_v38 = vsel %vm45_vm3, %v260_v29, %v261_v30  ;;  %v3204_v41 = vpack.i.bf16 %v725_v35, %v101_v5  ;;  %vm117_vm7 = vcmask 1039360  }
  0x38   :  { %3185 = vrot.lane.b32.xlu0 %v3352_v44, %s3267_s22  ;;  %v275_v39 = vsel %vm47_vm4, %v262_v31, %v263_v32  ;;  %vm115_vm8 = vcmask 1046528   ;;  %vm3492_vm9 = vcmp.lt.s32.totalorder %v64_v43, 892  ;;  %vm1069_vm10 = vcmask 236544   ;;  %s3284_s22 = smov 68  }
  0x39   :  { %v276_v40 = vsel %vm49_vm5, %v274_v38, %v275_v39  ;;  %vm957_vm11 = vcmask 252928   ;;  %vm173_vm12 = vcmask 1031168   ;;  %vm1125_vm13 = vcmask 228352  }
  0x3a   :  { %v277_v42 = vsel %vm51_vm6, %v273_v37, %v276_v40  ;;  %vm1013_vm14 = vcmask 244736   ;;  %vm285_vm15 = vcmask 1014784  }
  0x3b   :  { %v3164_v36 = vpack.i.bf16 %v277_v42, %v101_v5 }
  0x3d   :  { %3165 = vrot.lane.b32.xlu2 %v3164_v36, %s3260_s7 }
  0x3e   :  { %3205 = vrot.lane.b32.xlu1 %v3204_v41, %s3268_s23  ;;  %s3286_s23 = smov 52  }
  0x40   :  { %3200 = vrot.lane.b32.xlu0 %v3204_v41, %s3269_s24  ;;  %s3287_s24 = smov 80  }
  0x45   :  { %3180 = vrot.lane.b32.xlu2 %v3204_v41, %s3270_s25 }
  0x46   :  { %3220 = vrot.lane.b32.xlu1 %v3204_v41, %s3271_s27  ;;  %s3288_s27 = smov 14  }
  0x48   :  { %3215 = vrot.lane.b32.xlu0 %v3204_v41, %s3272_s28  ;;  %s3290_s28 = smov 42  }
  0x4d   :  { %3195 = vrot.lane.b32.xlu2 %v3204_v41, %s3273_s29 }
  0x55   :  { %3210 = vrot.lane.b32.xlu2 %v3204_v41, %s3274_s30  ;;  %s3292_s30 = smov 26  }
  0x79   :  { %v3131_v44 = vpop.permute.xlu2 %3130 }
  0x7a   :  { %v3133_v45 = vunpack.i.h.bf16 %v3131_v44  ;;  %v3132_v46 = vunpack.i.l.bf16 %v3131_v44 }
  0x7c   :  { %v1225_v47 = vrot.slane %v3133_v45, 1  ;;  %v1224_v48 = vrot.slane %v3132_v46, 1 }
  0x7e   :  { %v1228_v50 = vsel %vm117_vm7, %v3133_v45, %v1225_v47  ;;  %v1226_v51 = vsel %vm115_vm8, %v1224_v48, %v1225_v47 }
  0x7f   :  { %1235 = vst.msk [vmem:[#allocation2 + $0x135] ss:$8 sm:$0xf] %vm3492_vm9, %v1228_v50  ;;  %v1227_v52 = vsel %vm117_vm7, %v3132_v46, %v1226_v51 }
  0x80   :  { %1236 = vst.msk [vmem:[#allocation2 + $0x135] ss:$8 sm:$0x70] %vm3492_vm9, %v1228_v50  ;;  %v3121_v53 = vpop.permute.xlu1 %3120  ;;  %v3111_v54 = vpop.permute.xlu0 %3110 }
  0x81   :  { %1232 = vst [vmem:[#allocation2 + $0xf5] ss:$8 sm:$0xf] %v1227_v52  ;;  %v3123_v55 = vunpack.i.h.bf16 %v3121_v53  ;;  %v3122_v56 = vunpack.i.l.bf16 %v3121_v53  ;;  %v3113_v57 = vunpack.i.h.bf16 %v3111_v54  ;;  %v3112_v58 = vunpack.i.l.bf16 %v3111_v54 }
  0x82   :  { %1233 = vst [vmem:[#allocation2 + $0xf5] ss:$8 sm:$0xf0] %v1227_v52 }
  0x83   :  { %v1067_v2 = vrot.slane %v3123_v55, 1  ;;  %v1066_v59 = vrot.slane %v3122_v56, 1  ;;  %v955_v60 = vrot.slane %v3113_v57, 1  ;;  %v954_v61 = vrot.slane %v3112_v58, 1 }
  0x85   :  { %v1071_v62 = vsel %vm1069_vm10, %v3123_v55, %v1067_v2  ;;  %v1068_v63 = vsel %vm115_vm8, %v1066_v59, %v1067_v2  ;;  %v956_v0 = vsel %vm115_vm8, %v954_v61, %v955_v60  ;;  %v959_v4 = vsel %vm957_vm11, %v3113_v57, %v955_v60 }
  0x86   :  { %1078 = vst.msk [vmem:[#allocation2 + $0x132] ss:$8 sm:$0xf] %vm3492_vm9, %v1071_v62  ;;  %v1070_v1 = vsel %vm1069_vm10, %v3122_v56, %v1068_v63  ;;  %v3136_v3 = vpop.permute.xlu2 %3135  ;;  %v958_v7 = vsel %vm957_vm11, %v3112_v58, %v956_v0  ;;  %vm229_vm10 = vcmask 1022976   ;;  %vm397_vm11 = vcmask 777216  }
  0x87   :  { %1079 = vst.msk [vmem:[#allocation2 + $0x132] ss:$8 sm:$0x70] %vm3492_vm9, %v1071_v62  ;;  %v3138_v5 = vunpack.i.h.bf16 %v3136_v3  ;;  %v3137_v6 = vunpack.i.l.bf16 %v3136_v3 }
  0x88   :  { %1075 = vst [vmem:[#allocation2 + $0xf2] ss:$8 sm:$0xf] %v1070_v1  ;;  %v3126_v8 = vpop.permute.xlu1 %3125  ;;  %v3116_v9 = vpop.permute.xlu0 %3115 }
  0x89   :  { %1076 = vst [vmem:[#allocation2 + $0xf2] ss:$8 sm:$0xf0] %v1070_v1  ;;  %v1280_v10 = vrot.slane %v3138_v5, 1  ;;  %v1279_v11 = vrot.slane %v3137_v6, 1  ;;  %v3128_v12 = vunpack.i.h.bf16 %v3126_v8  ;;  %v3127_v13 = vunpack.i.l.bf16 %v3126_v8 }
  0x8a   :  { %966 = vst.msk [vmem:[#allocation2 + $0x130] ss:$8 sm:$0xf] %vm3492_vm9, %v959_v4  ;;  %v3118_v14 = vunpack.i.h.bf16 %v3116_v9  ;;  %v3117_v15 = vunpack.i.l.bf16 %v3116_v9 }
  0x8b   :  { %967 = vst.msk [vmem:[#allocation2 + $0x130] ss:$8 sm:$0x70] %vm3492_vm9, %v959_v4  ;;  %v1283_v16 = vsel %vm173_vm12, %v3138_v5, %v1280_v10  ;;  %v1281_v17 = vsel %vm115_vm8, %v1279_v11, %v1280_v10  ;;  %v1123_v18 = vrot.slane %v3128_v12, 1  ;;  %v1122_v19 = vrot.slane %v3127_v13, 1 }
  0x8c   :  { %963 = vst [vmem:[#allocation2 + $0xf0] ss:$8 sm:$0xf] %v958_v7  ;;  %v1282_v20 = vsel %vm173_vm12, %v3137_v6, %v1281_v17  ;;  %v1011_v22 = vrot.slane %v3118_v14, 1  ;;  %v1010_v23 = vrot.slane %v3117_v15, 1 }
  0x8d   :  { %964 = vst [vmem:[#allocation2 + $0xf0] ss:$8 sm:$0xf0] %v958_v7  ;;  %v1124_v21 = vsel %vm115_vm8, %v1122_v19, %v1123_v18  ;;  %v1127_v24 = vsel %vm1125_vm13, %v3128_v12, %v1123_v18 }
  0x8e   :  { %1290 = vst.msk [vmem:[#allocation2 + $0x136] ss:$8 sm:$0xf] %vm3492_vm9, %v1283_v16  ;;  %v1126_v27 = vsel %vm1125_vm13, %v3127_v13, %v1124_v21  ;;  %v1012_v30 = vsel %vm115_vm8, %v1010_v23, %v1011_v22  ;;  %v1015_v33 = vsel %vm1013_vm14, %v3118_v14, %v1011_v22  ;;  %v3151_v37 = vpop.permute.xlu2 %3150  ;;  %v1136_v13 = vld [vmem:[%s4472_s0 + $0x1] sm:$0xff]  ;;  %vm453_vm13 = vcmask 769024  }
  0x8f   :  { %1291 = vst.msk [vmem:[#allocation2 + $0x136] ss:$8 sm:$0x70] %vm3492_vm9, %v1283_v16  ;;  %v1014_v38 = vsel %vm1013_vm14, %v3117_v15, %v1012_v30  ;;  %v3153_v39 = vunpack.i.h.bf16 %v3151_v37  ;;  %v3152_v40 = vunpack.i.l.bf16 %v3151_v37  ;;  %v1138_v18 = vunpack.c.l.bf16 %v1136_v13 }
  0x90   :  { %1287 = vst [vmem:[#allocation2 + $0xf6] ss:$8 sm:$0xf] %v1282_v20  ;;  %v3146_v25 = vpop.permute.xlu1 %3145  ;;  %v3141_v26 = vpop.permute.xlu0 %3140  ;;  %vm565_vm14 = vcmask 752640  }
  0x91   :  { %1288 = vst [vmem:[#allocation2 + $0xf6] ss:$8 sm:$0xf0] %v1282_v20  ;;  %v3148_v28 = vunpack.i.h.bf16 %v3146_v25  ;;  %v3147_v29 = vunpack.i.l.bf16 %v3146_v25  ;;  %v3143_v31 = vunpack.i.h.bf16 %v3141_v26  ;;  %v3142_v32 = vunpack.i.l.bf16 %v3141_v26 }
  0x92   :  { %1134 = vst.msk [vmem:[#allocation2 + $0x133] ss:$8 sm:$0xf] %vm3492_vm9, %v1127_v24  ;;  %v114_v47 = vrot.slane %v3153_v39, 1  ;;  %v113_v48 = vrot.slane %v3152_v40, 1  ;;  %v1139_v25 = vunpack.c.h.bf16 %v1136_v13 }
  0x93   :  { %1135 = vst.msk [vmem:[#allocation2 + $0x133] ss:$8 sm:$0x70] %vm3492_vm9, %v1127_v24  ;;  %v1390_v34 = vrot.slane %v3148_v28, 1  ;;  %v1389_v35 = vrot.slane %v3147_v29, 1  ;;  %v1335_v42 = vrot.slane %v3143_v31, 1 }
  0x94   :  { %1131 = vst [vmem:[#allocation2 + $0xf3] ss:$8 sm:$0xf] %v1126_v27  ;;  %v1334_v36 = vrot.slane %v3142_v32, 1  ;;  %v116_v56 = vsel %vm115_vm8, %v113_v48, %v114_v47  ;;  %v119_v60 = vsel %vm117_vm7, %v3153_v39, %v114_v47  ;;  %v1149_v37 = vrot.slane %v1139_v25, 4 }
  0x95   :  { %1132 = vst [vmem:[#allocation2 + $0xf3] ss:$8 sm:$0xf0] %v1126_v27  ;;  %v1391_v41 = vsel %vm115_vm8, %v1389_v35, %v1390_v34  ;;  %v1393_v44 = vsel %vm285_vm15, %v3148_v28, %v1390_v34  ;;  %v1338_v53 = vsel %vm229_vm10, %v3143_v31, %v1335_v42  ;;  %v118_v62 = vsel %vm117_vm7, %v3152_v40, %v116_v56 }
  0x96   :  { %1022 = vst.msk [vmem:[#allocation2 + $0x131] ss:$8 sm:$0xf] %vm3492_vm9, %v1015_v33  ;;  %v1392_v46 = vsel %vm285_vm15, %v3147_v29, %v1391_v41  ;;  %v1336_v50 = vsel %vm115_vm8, %v1334_v36, %v1335_v42  ;;  %v1146_v28 = vrot.slane %v1138_v18, 1  ;;  %v1147_v29 = vrot.slane %v1138_v18, 2 }
  0x97   :  { %1023 = vst.msk [vmem:[#allocation2 + $0x131] ss:$8 sm:$0x70] %vm3492_vm9, %v1015_v33  ;;  %v1337_v55 = vsel %vm229_vm10, %v3142_v32, %v1336_v50  ;;  %v3166_v61 = vpop.permute.xlu2 %3165  ;;  %v1148_v35 = vrot.slane %v1138_v18, 3  ;;  %v1151_v39 = vrot.slane %v1139_v25, 6  ;;  %v1152_v40 = vrot.slane %v1139_v25, 7 }
  0x98   :  { %1019 = vst [vmem:[#allocation2 + $0xf1] ss:$8 sm:$0xf] %v1014_v38  ;;  %v3161_v45 = vpop.permute.xlu1 %3160  ;;  %v3168_v63 = vunpack.i.h.bf16 %v3166_v61  ;;  %v3167_v0 = vunpack.i.l.bf16 %v3166_v61  ;;  %v1160_v47 = vsel %vm39_vm0, %v1138_v18, %v1146_v28 }
  0x99   :  { %1020 = vst [vmem:[#allocation2 + $0xf1] ss:$8 sm:$0xf0] %v1014_v38  ;;  %v3163_v51 = vunpack.i.h.bf16 %v3161_v45  ;;  %v3162_v52 = vunpack.i.l.bf16 %v3161_v45  ;;  %v1150_v38 = vrot.slane %v1139_v25, 5  ;;  %v1161_v48 = vsel %vm41_vm1, %v1147_v29, %v1148_v35 }
  0x9a   :  { %1400 = vst.msk [vmem:[#allocation2 + $0x1a8] ss:$8 sm:$0xf] %vm3492_vm9, %v1393_v44  ;;  %v3156_v54 = vpop.permute.xlu0 %3155  ;;  %v283_v8 = vrot.slane %v3168_v63, 1  ;;  %v282_v9 = vrot.slane %v3167_v0, 1 }
  0x9b   :  { %1401 = vst.msk [vmem:[#allocation2 + $0x1a8] ss:$8 sm:$0x70] %vm3492_vm9, %v1393_v44  ;;  %v227_v57 = vrot.slane %v3163_v51, 1  ;;  %v226_v58 = vrot.slane %v3162_v52, 1  ;;  %v3158_v2 = vunpack.i.h.bf16 %v3156_v54  ;;  %v3157_v59 = vunpack.i.l.bf16 %v3156_v54 }
  0x9c   :  { %1397 = vst [vmem:[#allocation2 + $0x168] ss:$8 sm:$0xf] %v1392_v46  ;;  %v284_v17 = vsel %vm115_vm8, %v282_v9, %v283_v8  ;;  %v287_v24 = vsel %vm285_vm15, %v3168_v63, %v283_v8  ;;  %v1163_v50 = vsel %vm45_vm3, %v1149_v37, %v1150_v38 }
  0x9d   :  { %1398 = vst [vmem:[#allocation2 + $0x168] ss:$8 sm:$0xf0] %v1392_v46  ;;  %v228_v1 = vsel %vm115_vm8, %v226_v58, %v227_v57  ;;  %v171_v3 = vrot.slane %v3158_v2, 1  ;;  %v170_v4 = vrot.slane %v3157_v59, 1  ;;  %v231_v5 = vsel %vm229_vm10, %v3163_v51, %v227_v57 }
  0x9e   :  { %1345 = vst.msk [vmem:[#allocation2 + $0x137] ss:$8 sm:$0xf] %vm3492_vm9, %v1338_v53  ;;  %v230_v7 = vsel %vm229_vm10, %v3162_v52, %v228_v1  ;;  %v286_v26 = vsel %vm285_vm15, %v3167_v0, %v284_v17  ;;  %v1164_v51 = vsel %vm47_vm4, %v1151_v39, %v1152_v40  ;;  %v1162_v58 = vsel %vm43_vm2, %v1160_v47, %v1161_v48 }
  0x9f   :  { %1346 = vst.msk [vmem:[#allocation2 + $0x137] ss:$8 sm:$0x70] %vm3492_vm9, %v1338_v53  ;;  %v172_v10 = vsel %vm115_vm8, %v170_v4, %v171_v3  ;;  %v175_v14 = vsel %vm173_vm12, %v3158_v2, %v171_v3  ;;  %v3181_v23 = vpop.permute.xlu2 %3180  ;;  %v1165_v2 = vsel %vm49_vm5, %v1163_v50, %v1164_v51  ;;  %vm509_vm15 = vcmask 760832  }
  0xa0   :  { %1342 = vst [vmem:[#allocation2 + $0xf7] ss:$8 sm:$0xf] %v1337_v55  ;;  %v3176_v6 = vpop.permute.xlu1 %3175  ;;  %v174_v16 = vsel %vm173_vm12, %v3157_v59, %v172_v10  ;;  %v3183_v27 = vunpack.i.h.bf16 %v3181_v23  ;;  %v3182_v33 = vunpack.i.l.bf16 %v3181_v23  ;;  %vm341_vm12 = vcmask 785408  }
  0xa1   :  { %1343 = vst [vmem:[#allocation2 + $0xf7] ss:$8 sm:$0xf0] %v1337_v55  ;;  %v3178_v11 = vunpack.i.h.bf16 %v3176_v6  ;;  %v3177_v12 = vunpack.i.l.bf16 %v3176_v6  ;;  %v1166_v1 = vsel %vm51_vm6, %v1162_v58, %v1165_v2  ;;  %vm1503_vm10 = vcmask 1044480   ;;  %v1137_v58 = vld [vmem:[%s4472_s0 + $0x9] sm:$0x7f] }
  0xa2   :  { %126 = vst.msk [vmem:[#allocation2 + $0x41] ss:$8 sm:$0xf] %vm3492_vm9, %v119_v60  ;;  %v3171_v15 = vpop.permute.xlu0 %3170  ;;  %v451_v44 = vrot.slane %v3183_v27, 1  ;;  %v450_v45 = vrot.slane %v3182_v33, 1  ;;  %v3275_v10 = vmov 65535  }
  0xa3   :  { %127 = vst.msk [vmem:[#allocation2 + $0x41] ss:$8 sm:$0x70] %vm3492_vm9, %v119_v60  ;;  %v395_v19 = vrot.slane %v3178_v11, 1  ;;  %v394_v20 = vrot.slane %v3177_v12, 1  ;;  %v3173_v21 = vunpack.i.h.bf16 %v3171_v15  ;;  %v3172_v22 = vunpack.i.l.bf16 %v3171_v15 }
  0xa4   :  { %123 = vst [vmem:[#allocation2 + $0x1] ss:$8 sm:$0xf] %v118_v62  ;;  %v452_v56 = vsel %vm115_vm8, %v450_v45, %v451_v44  ;;  %v455_v57 = vsel %vm453_vm13, %v3183_v27, %v451_v44 }
  0xa5   :  { %124 = vst [vmem:[#allocation2 + $0x1] ss:$8 sm:$0xf0] %v118_v62  ;;  %v396_v30 = vsel %vm115_vm8, %v394_v20, %v395_v19  ;;  %v339_v31 = vrot.slane %v3173_v21, 1  ;;  %v338_v32 = vrot.slane %v3172_v22, 1  ;;  %v399_v34 = vsel %vm397_vm11, %v3178_v11, %v395_v19 }
  0xa6   :  { %238 = vst.msk [vmem:[#allocation2 + $0x43] ss:$8 sm:$0xf] %vm3492_vm9, %v231_v5  ;;  %v398_v41 = vsel %vm397_vm11, %v3177_v12, %v396_v30  ;;  %v454_v0 = vsel %vm453_vm13, %v3182_v33, %v452_v56  ;;  %v1504_v11 = vsel %vm51_vm6, 4294967295, %v3275_v10  ;;  %v1448_v19 = vld [vmem:[#allocation2 + $0x168] sm:$0x1] }
  0xa7   :  { %239 = vst.msk [vmem:[#allocation2 + $0x43] ss:$8 sm:$0x70] %vm3492_vm9, %v231_v5  ;;  %v340_v36 = vsel %vm115_vm8, %v338_v32, %v339_v31  ;;  %v343_v46 = vsel %vm341_vm12, %v3173_v21, %v339_v31  ;;  %v3599_v63 = vpop.permute.xlu2 %3195  ;;  %v1449_v20 = vld [vmem:[#allocation2 + $0x170] sm:$0x1]  ;;  %vm621_vm13 = vcmask 523264  }
  0xa8   :  { %235 = vst [vmem:[#allocation2 + $0x3] ss:$8 sm:$0xf] %v230_v7  ;;  %v3191_v42 = vpop.permute.xlu1 %3190  ;;  %v342_v54 = vsel %vm341_vm12, %v3172_v22, %v340_v36  ;;  %v3198_v3 = vunpack.i.h.bf16 %v3599_v63  ;;  %v1450_v21 = vld [vmem:[#allocation2 + $0x178] sm:$0x1]  ;;  %v3631_v25 = vsel %vm1503_vm10, %v1504_v11, 0 }
  0xa9   :  { %236 = vst [vmem:[#allocation2 + $0x3] ss:$8 sm:$0xf0] %v230_v7  ;;  %v3193_v52 = vunpack.i.h.bf16 %v3191_v42  ;;  %v3192_v53 = vunpack.i.l.bf16 %v3191_v42  ;;  %v3197_v7 = vunpack.i.l.bf16 %v3599_v63  ;;  %vm789_vm10 = vcmask 498688  }
  0xaa   :  { %182 = vst.msk [vmem:[#allocation2 + $0x42] ss:$8 sm:$0xf] %vm3492_vm9, %v175_v14  ;;  %v3186_v55 = vpop.permute.xlu0 %3185  ;;  %v619_v13 = vrot.slane %v3198_v3, 1 }
  0xab   :  { %183 = vst.msk [vmem:[#allocation2 + $0x42] ss:$8 sm:$0x70] %vm3492_vm9, %v175_v14  ;;  %v563_v59 = vrot.slane %v3193_v52, 1  ;;  %v562_v60 = vrot.slane %v3192_v53, 1  ;;  %v3188_v61 = vunpack.i.h.bf16 %v3186_v55  ;;  %v3187_v62 = vunpack.i.l.bf16 %v3186_v55 }
  0xac   :  { %179 = vst [vmem:[#allocation2 + $0x2] ss:$8 sm:$0xf] %v174_v16  ;;  %v618_v15 = vrot.slane %v3197_v7, 1  ;;  %v623_v37 = vsel %vm621_vm13, %v3198_v3, %v619_v13 }
  0xad   :  { %180 = vst [vmem:[#allocation2 + $0x2] ss:$8 sm:$0xf0] %v174_v16  ;;  %v564_v4 = vsel %vm115_vm8, %v562_v60, %v563_v59  ;;  %v507_v5 = vrot.slane %v3188_v61, 1  ;;  %v506_v6 = vrot.slane %v3187_v62, 1  ;;  %v567_v8 = vsel %vm565_vm14, %v3193_v52, %v563_v59 }
  0xae   :  { %294 = vst.msk [vmem:[#allocation2 + $0x44] ss:$8 sm:$0xf] %vm3492_vm9, %v287_v24  ;;  %v566_v12 = vsel %vm565_vm14, %v3192_v53, %v564_v4  ;;  %v620_v30 = vsel %vm115_vm8, %v618_v15, %v619_v13  ;;  %vm733_vm14 = vcmask 506880  }
  0xaf   :  { %295 = vst.msk [vmem:[#allocation2 + $0x44] ss:$8 sm:$0x70] %vm3492_vm9, %v287_v24  ;;  %v508_v14 = vsel %vm115_vm8, %v506_v6, %v507_v5  ;;  %v511_v22 = vsel %vm509_vm15, %v3188_v61, %v507_v5  ;;  %v3625_v23 = vpop.permute.xlu2 %3210  ;;  %v15_v24 = vld [vmem:[%s4472_s0] sm:$0xff]  ;;  %v1140_v6 = vunpack.c.l.bf16 %v1137_v58 }
  0xb0   :  { %291 = vst [vmem:[#allocation2 + $0x4] ss:$8 sm:$0xf] %v286_v26  ;;  %v3611_v9 = vpop.permute.xlu1 %3205  ;;  %v510_v27 = vsel %vm509_vm15, %v3187_v62, %v508_v14  ;;  %v3213_v38 = vunpack.i.h.bf16 %v3625_v23  ;;  %v3643_v39 = vunpack.c.l.bf16 %v15_v24  ;;  %v3212_v44 = vunpack.i.l.bf16 %v3625_v23 }
  0xb1   :  { %292 = vst [vmem:[#allocation2 + $0x4] ss:$8 sm:$0xf0] %v286_v26  ;;  %v3208_v16 = vunpack.i.h.bf16 %v3611_v9  ;;  %v3207_v17 = vunpack.i.l.bf16 %v3611_v9  ;;  %v1451_v26 = vld [vmem:[#allocation2 + $0x180] sm:$0x1]  ;;  %vm677_vm15 = vcmask 515072  }
  0xb2   :  { %406 = vst.msk [vmem:[#allocation2 + $0x46] ss:$8 sm:$0xf] %vm3492_vm9, %v399_v34  ;;  %v3620_v18 = vpop.permute.xlu0 %3200  ;;  %v787_v2 = vrot.slane %v3213_v38, 1  ;;  %v786_v59 = vrot.slane %v3212_v44, 1  ;;  %v26_v3 = vrot.slane %v3643_v39, 2 }
  0xb3   :  { %407 = vst.msk [vmem:[#allocation2 + $0x46] ss:$8 sm:$0x70] %vm3492_vm9, %v399_v34  ;;  %v3203_v28 = vunpack.i.h.bf16 %v3620_v18  ;;  %v3202_v29 = vunpack.i.l.bf16 %v3620_v18  ;;  %v731_v31 = vrot.slane %v3208_v16, 1  ;;  %v730_v32 = vrot.slane %v3207_v17, 1 }
  0xb4   :  { %403 = vst [vmem:[#allocation2 + $0x6] ss:$8 sm:$0xf] %v398_v41  ;;  %v27_v4 = vrot.slane %v3643_v39, 3 }
  0xb5   :  { %404 = vst [vmem:[#allocation2 + $0x6] ss:$8 sm:$0xf0] %v398_v41  ;;  %v675_v47 = vrot.slane %v3203_v28, 1  ;;  %v674_v48 = vrot.slane %v3202_v29, 1  ;;  %v735_v56 = vsel %vm733_vm14, %v3208_v16, %v731_v31 }
  0xb6   :  { %350 = vst.msk [vmem:[#allocation2 + $0x45] ss:$8 sm:$0xf] %vm3492_vm9, %v343_v46  ;;  %v16_v16 = vld [vmem:[%s4472_s0 + $0x8] sm:$0x7f]  ;;  %v42_v18 = vsel %vm41_vm1, %v26_v3, %v27_v4  ;;  %s3298_s0 = smov 108  }
  0xb7   :  { %351 = vst.msk [vmem:[#allocation2 + $0x45] ss:$8 sm:$0x70] %vm3492_vm9, %v343_v46  ;;  %v622_v46 = vsel %vm621_vm13, %v3197_v7, %v620_v30  ;;  %v676_v63 = vsel %vm115_vm8, %v674_v48, %v675_v47  ;;  %v679_v5 = vsel %vm677_vm15, %v3203_v28, %v675_v47  ;;  %v1141_v7 = vunpack.c.h.bf16 %v1137_v58  ;;  %v1452_v4 = vld [vmem:[#allocation2 + $0x188] sm:$0x1] }
  0xb8   :  { %347 = vst [vmem:[#allocation2 + $0x5] ss:$8 sm:$0xf] %v342_v54  ;;  %v3649_v50 = vpop.permute.xlu1 %3220  ;;  %vm901_vm13 = vcmask 261120   ;;  %v20_v28 = vunpack.c.h.bf16 %v16_v16 }
  0xb9   :  { %348 = vst [vmem:[#allocation2 + $0x5] ss:$8 sm:$0xf0] %v342_v54  ;;  %v732_v54 = vsel %vm115_vm8, %v730_v32, %v731_v31  ;;  %v3223_v60 = vunpack.i.h.bf16 %v3649_v50  ;;  %v3222_v62 = vunpack.i.l.bf16 %v3649_v50  ;;  %v1154_v32 = vrot.slane %v1140_v6, 2 }
  0xba   :  { %462 = vst.msk [vmem:[#allocation2 + $0x47] ss:$8 sm:$0xf] %vm3492_vm9, %v455_v57  ;;  %v734_v61 = vsel %vm733_vm14, %v3207_v17, %v732_v54  ;;  %vm845_vm14 = vcmask 490496   ;;  %v37_v47 = vrot.slane %v20_v28, 6  ;;  %v38_v48 = vrot.slane %v20_v28, 7 }
  0xbb   :  { %463 = vst.msk [vmem:[#allocation2 + $0x47] ss:$8 sm:$0x70] %vm3492_vm9, %v455_v57  ;;  %v18_v57 = vunpack.c.h.bf16 %v15_v24  ;;  %v899_v9 = vrot.slane %v3223_v60, 1  ;;  %v898_v13 = vrot.slane %v3222_v62, 1  ;;  %v19_v24 = vunpack.c.l.bf16 %v16_v16 }
  0xbc   :  { %459 = vst [vmem:[#allocation2 + $0x7] ss:$8 sm:$0xf] %v454_v0 }
  0xbd   :  { %460 = vst [vmem:[#allocation2 + $0x7] ss:$8 sm:$0xf0] %v454_v0  ;;  %v3672_v0 = vpop.permute.xlu0 %3215  ;;  %v28_v10 = vrot.slane %v18_v57, 4  ;;  %v29_v11 = vrot.slane %v18_v57, 5  ;;  %v30_v17 = vrot.slane %v18_v57, 6 }
  0xbe   :  { %1177 = vst [vmem:[#allocation2 + $0xf4] ss:$8 sm:$0xf] %v1166_v1  ;;  %v3218_v14 = vunpack.i.h.bf16 %v3672_v0  ;;  %v3217_v15 = vunpack.i.l.bf16 %v3672_v0 }
  0xbf   :  { %1178 = vst [vmem:[#allocation2 + $0xf4] ss:$8 sm:$0xf0] %v1166_v1  ;;  %v25_v1 = vrot.slane %v3643_v39, 1 }
  0xc0   :  { %574 = vst.msk [vmem:[#allocation2 + $0xb9] ss:$8 sm:$0xf] %vm3492_vm9, %v567_v8  ;;  %v843_v30 = vrot.slane %v3218_v14, 1  ;;  %v842_v31 = vrot.slane %v3217_v15, 1 }
  0xc1   :  { %575 = vst.msk [vmem:[#allocation2 + $0xb9] ss:$8 sm:$0x70] %vm3492_vm9, %v567_v8  ;;  %v788_v8 = vsel %vm115_vm8, %v786_v59, %v787_v2 }
  0xc2   :  { %571 = vst [vmem:[#allocation2 + $0x79] ss:$8 sm:$0xf] %v566_v12 }
  0xc3   :  { %572 = vst [vmem:[#allocation2 + $0x79] ss:$8 sm:$0xf0] %v566_v12  ;;  %v678_v12 = vsel %vm677_vm15, %v3202_v29, %v676_v63  ;;  %v900_v29 = vsel %vm115_vm8, %v898_v13, %v899_v9  ;;  %vm2153_vm15 = vcmask 456016  }
  0xc4   :  { %518 = vst.msk [vmem:[#allocation2 + $0xb8] ss:$8 sm:$0xf] %vm3492_vm9, %v511_v22 }
  0xc5   :  { %v1433_v33 = vld [vmem:[#allocation2 + $0xf0] sm:$0xff]  ;;  %v1434_v34 = vld [vmem:[#allocation2 + $0xf8] sm:$0xff]  ;;  %v1435_v35 = vld [vmem:[#allocation2 + $0x100] sm:$0xff]  ;;  %519 = vst.msk [vmem:[#allocation2 + $0xb8] ss:$8 sm:$0x70] %vm3492_vm9, %v511_v22  ;;  %v790_v22 = vsel %vm789_vm10, %v3212_v44, %v788_v8 }
  0xc6   :  { %v1478_v40 = vpack.c.bf16 %v1448_v19, %v1433_v33  ;;  %v1479_v41 = vpack.c.bf16 %v1449_v20, %v1434_v34  ;;  %v1480_v42 = vpack.c.bf16 %v1450_v21, %v1435_v35  ;;  %v1436_v36 = vld [vmem:[#allocation2 + $0x108] sm:$0xff]  ;;  %515 = vst [vmem:[#allocation2 + $0x78] ss:$8 sm:$0xf] %v510_v27  ;;  %v31_v19 = vrot.slane %v18_v57, 7 }
  0xc7   :  { %v1481_v45 = vpack.c.bf16 %v1451_v26, %v1436_v36  ;;  %516 = vst [vmem:[#allocation2 + $0x78] ss:$8 sm:$0xf0] %v510_v27  ;;  %v40_v20 = vsel %vm39_vm0, %v3643_v39, %v25_v1  ;;  %v791_v21 = vsel %vm789_vm10, %v3213_v38, %v787_v2  ;;  %v46_v26 = vsel %vm45_vm3, %v28_v10, %v29_v11  ;;  %v1455_v8 = vld [vmem:[#allocation2 + $0x1a0] sm:$0x1]  ;;  %v1438_v10 = vld [vmem:[#allocation2 + $0x118] sm:$0xff] }
  0xc8   :  { %v1507_v51 = vand.u32 %v3631_v25, %v1478_v40  ;;  %v1510_v52 = vand.u32 %v3631_v25, %v1479_v41  ;;  %v1513_v53 = vand.u32 %v3631_v25, %v1480_v42  ;;  %630 = vst.msk [vmem:[#allocation2 + $0xba] ss:$8 sm:$0xf] %vm3492_vm9, %v623_v37  ;;  %v1153_v27 = vrot.slane %v1140_v6, 1  ;;  %v1439_v11 = vld [vmem:[#allocation2 + $0x120] sm:$0xff] }
  0xc9   :  { %v1516_v55 = vand.u32 %v3631_v25, %v1481_v45  ;;  %631 = vst.msk [vmem:[#allocation2 + $0xba] ss:$8 sm:$0x70] %vm3492_vm9, %v623_v37  ;;  %v48_v23 = vsel %vm47_vm4, %v30_v17, %v31_v19  ;;  %v1155_v33 = vrot.slane %v1140_v6, 3  ;;  %v1156_v34 = vrot.slane %v1141_v7, 4 }
  0xca   :  { %1557 = vmatpush.bf16.msra.mxu0 %v1507_v51  ;;  %1570 = vmatpush.bf16.msra.mxu1 %v1510_v52  ;;  %627 = vst [vmem:[#allocation2 + $0x7a] ss:$8 sm:$0xf] %v622_v46  ;;  %v1157_v35 = vrot.slane %v1141_v7, 5  ;;  %v903_v37 = vsel %vm901_vm13, %v3223_v60, %v899_v9  ;;  %v1158_v38 = vrot.slane %v1141_v7, 6  ;;  %v1159_v39 = vrot.slane %v1141_v7, 7 }
  0xcb   :  { %1583 = vmatpush.bf16.msra.mxu2 %v1513_v53  ;;  %1596 = vmatpush.bf16.msra.mxu3 %v1516_v55  ;;  %628 = vst [vmem:[#allocation2 + $0x7a] ss:$8 sm:$0xf0] %v622_v46  ;;  %v32_v40 = vrot.slane %v19_v24, 1  ;;  %v902_v41 = vsel %vm901_vm13, %v3222_v62, %v900_v29  ;;  %v33_v42 = vrot.slane %v19_v24, 2  ;;  %v34_v36 = vrot.slane %v19_v24, 3 }
  0xcc   :  { %742 = vst.msk [vmem:[#allocation2 + $0xbc] ss:$8 sm:$0xf] %vm3492_vm9, %v735_v56  ;;  %v35_v44 = vrot.slane %v20_v28, 4  ;;  %v844_v45 = vsel %vm115_vm8, %v842_v31, %v843_v30  ;;  %v36_v46 = vrot.slane %v20_v28, 5  ;;  %v1167_v50 = vsel %vm39_vm0, %v1140_v6, %v1153_v27  ;;  %v1437_v9 = vld [vmem:[#allocation2 + $0x110] sm:$0xff] }
  0xcd   :  { %743 = vst.msk [vmem:[#allocation2 + $0xbc] ss:$8 sm:$0x70] %vm3492_vm9, %v735_v56  ;;  %v847_v51 = vsel %vm845_vm14, %v3218_v14, %v843_v30  ;;  %v1168_v52 = vsel %vm41_vm1, %v1154_v32, %v1155_v33  ;;  %v1170_v53 = vsel %vm45_vm3, %v1156_v34, %v1157_v35  ;;  %v1171_v54 = vsel %vm47_vm4, %v1158_v38, %v1159_v39  ;;  %v1454_v7 = vld [vmem:[#allocation2 + $0x198] sm:$0x1] }
  0xce   :  { %739 = vst [vmem:[#allocation2 + $0x7c] ss:$8 sm:$0xf] %v734_v61  ;;  %v846_v55 = vsel %vm845_vm14, %v3217_v15, %v844_v45  ;;  %v44_v56 = vsel %vm43_vm2, %v40_v20, %v42_v18  ;;  %v50_v57 = vsel %vm49_vm5, %v46_v26, %v48_v23  ;;  %v53_v58 = vsel %vm39_vm0, %v19_v24, %v32_v40  ;;  %v1456_v30 = vld [vmem:[#allocation2 + $0x1a8] sm:$0x1] }
  0xcf   :  { %740 = vst [vmem:[#allocation2 + $0x7c] ss:$8 sm:$0xf0] %v734_v61  ;;  %v54_v2 = vsel %vm41_vm1, %v33_v42, %v34_v36  ;;  %v56_v59 = vsel %vm45_vm3, %v35_v44, %v36_v46  ;;  %v57_v60 = vsel %vm47_vm4, %v37_v47, %v38_v48  ;;  %v1169_v61 = vsel %vm43_vm2, %v1167_v50, %v1168_v52  ;;  %v1457_v31 = vld [vmem:[#allocation2 + $0x1b0] sm:$0x1] }
  0xd0   :  { %686 = vst.msk [vmem:[#allocation2 + $0xbb] ss:$8 sm:$0xf] %vm3492_vm9, %v679_v5  ;;  %v1172_v62 = vsel %vm49_vm5, %v1170_v53, %v1171_v54  ;;  %v52_v63 = vsel %vm51_vm6, %v44_v56, %v50_v57  ;;  %v55_v0 = vsel %vm43_vm2, %v53_v58, %v54_v2  ;;  %v58_v1 = vsel %vm49_vm5, %v56_v59, %v57_v60  ;;  %v1458_v23 = vld [vmem:[#allocation2 + $0x1b8] sm:$0x1] }
  0xd1   :  { %687 = vst.msk [vmem:[#allocation2 + $0xbb] ss:$8 sm:$0x70] %vm3492_vm9, %v679_v5  ;;  %v1173_v3 = vsel %vm51_vm6, %v1169_v61, %v1172_v62  ;;  %v1453_v5 = vld [vmem:[#allocation2 + $0x190] sm:$0x1]  ;;  %v59_v6 = vsel %vm51_vm6, %v55_v0, %v58_v1  ;;  %v1482_v17 = vpack.c.bf16 %v1452_v4, %v1437_v9  ;;  %vm1499_vm0 = vcmask 203776  }
  0xd2   :  { %683 = vst [vmem:[#allocation2 + $0x7b] ss:$8 sm:$0xf] %v678_v12  ;;  %v1483_v19 = vpack.c.bf16 %v1453_v5, %v1438_v10  ;;  %v1459_v33 = vld [vmem:[#allocation2 + $0x1c0] sm:$0x1]  ;;  %vm2035_vm1 = vcmask 1042432  }
  0xd3   :  { %684 = vst [vmem:[#allocation2 + $0x7b] ss:$8 sm:$0xf0] %v678_v12  ;;  %v1440_v12 = vld [vmem:[#allocation2 + $0x128] sm:$0xff]  ;;  %v1519_v34 = vand.u32 %v3631_v25, %v1482_v17  ;;  %v1493_v4 = vld [vmem:[%s4474_s2] sm:$0x3f] }
  0xd4   :  { %798 = vst.msk [vmem:[#allocation2 + $0xbd] ss:$8 sm:$0xf] %vm3492_vm9, %v791_v21  ;;  %v1485_v24 = vpack.c.bf16 %v1455_v8, %v1440_v12  ;;  %v1522_v35 = vand.u32 %v3631_v25, %v1483_v19  ;;  %v1461_v17 = vld [vmem:[#allocation2 + $0x1d0] sm:$0x1]  ;;  %vm2031_vm6 = vcmask 220160  }
  0xd5   :  { %799 = vst.msk [vmem:[#allocation2 + $0xbd] ss:$8 sm:$0x70] %vm3492_vm9, %v791_v21  ;;  %vm2059_vm8 = vcmask 111616   ;;  %s3300_s2 = smov 122   ;;  %vm2183_vm10 = vcmask 570816  }
  0xd6   :  { %795 = vst [vmem:[#allocation2 + $0x7d] ss:$8 sm:$0xf] %v790_v22  ;;  %vm2215_vm13 = vcmask 685616   ;;  %vm2245_vm14 = vcmask 800416  }
  0xd7   :  { %796 = vst [vmem:[#allocation2 + $0x7d] ss:$8 sm:$0xf0] %v790_v22  ;;  %v1484_v22 = vpack.c.bf16 %v1454_v7, %v1439_v11  ;;  %v3276_v11 = vmov 0  }
  0xd8   :  { %910 = vst.msk [vmem:[#allocation2 + $0xbf] ss:$8 sm:$0xf] %vm3492_vm9, %v903_v37  ;;  %3224 = vset.pattern.permute.xlu2 %v3276_v11  ;;  %3225 = vset.pattern.permute.xlu0 %v3276_v11 }
  0xd9   :  { %911 = vst.msk [vmem:[#allocation2 + $0xbf] ss:$8 sm:$0x70] %vm3492_vm9, %v903_v37  ;;  %v1525_v40 = vand.u32 %v3631_v25, %v1484_v22  ;;  %1496 = vperm.xlu2 %3224, %v1493_v4  }
  0xda   :  { %907 = vst [vmem:[#allocation2 + $0x7f] ss:$8 sm:$0xf] %v902_v41 }
  0xdb   :  { %908 = vst [vmem:[#allocation2 + $0x7f] ss:$8 sm:$0xf0] %v902_v41  ;;  %v1528_v41 = vand.u32 %v3631_v25, %v1485_v24 }
  0xdc   :  { %854 = vst.msk [vmem:[#allocation2 + $0xbe] ss:$8 sm:$0xf] %vm3492_vm9, %v847_v51 }
  0xdd   :  { %855 = vst.msk [vmem:[#allocation2 + $0xbe] ss:$8 sm:$0x70] %vm3492_vm9, %v847_v51 }
  0xde   :  { %851 = vst [vmem:[#allocation2 + $0x7e] ss:$8 sm:$0xf] %v846_v55 }
  0xdf   :  { %852 = vst [vmem:[#allocation2 + $0x7e] ss:$8 sm:$0xf0] %v846_v55 }
  0xe0   :  { %62 = vst [vmem:[#allocation2] ss:$8 sm:$0xf] %v52_v63 }
  0xe1   :  { %63 = vst [vmem:[#allocation2] ss:$8 sm:$0xf0] %v52_v63 }
  0xe2   :  { %1180 = vst.msk [vmem:[#allocation2 + $0x134] ss:$8 sm:$0xf] %vm3492_vm9, %v1173_v3 }
  0xe3   :  { %1181 = vst.msk [vmem:[#allocation2 + $0x134] ss:$8 sm:$0x70] %vm3492_vm9, %v1173_v3  ;;  %v1426_v63 = vld [vmem:[#allocation2 + $0xb8] sm:$0xff]  ;;  %v1427_v0 = vld [vmem:[#allocation2 + $0xc0] sm:$0xff]  ;;  %v1428_v1 = vld [vmem:[#allocation2 + $0xc8] sm:$0xff] }
  0xe4   :  { %69 = vst.msk [vmem:[#allocation2 + $0x40] ss:$8 sm:$0xf] %vm3492_vm9, %v59_v6  ;;  %v1429_v3 = vld [vmem:[#allocation2 + $0xd0] sm:$0xff] }
  0xe5   :  { %v1418_v13 = vld [vmem:[#allocation2 + $0x78] sm:$0xff]  ;;  %v1419_v14 = vld [vmem:[#allocation2 + $0x80] sm:$0xff]  ;;  %v1420_v15 = vld [vmem:[#allocation2 + $0x88] sm:$0xff]  ;;  %70 = vst.msk [vmem:[#allocation2 + $0x40] ss:$8 sm:$0x70] %vm3492_vm9, %v59_v6 }
  0xe6   :  { %v1421_v16 = vld [vmem:[#allocation2 + $0x90] sm:$0xff]  ;;  %v1422_v37 = vld [vmem:[#allocation2 + $0x98] sm:$0xff]  ;;  %v1423_v42 = vld [vmem:[#allocation2 + $0xa0] sm:$0xff]  ;;  %vm2621_vm9 = vcmask 78848  }
  0xe7   :  { %v1403_v20 = vld [vmem:[#allocation2] sm:$0xff]  ;;  %v1404_v18 = vld [vmem:[#allocation2 + $0x8] sm:$0xff]  ;;  %v1405_v21 = vld [vmem:[#allocation2 + $0x10] sm:$0xff] }
  0xe8   :  { %v1463_v26 = vpack.c.bf16 %v1418_v13, %v1403_v20  ;;  %v1464_v27 = vpack.c.bf16 %v1419_v14, %v1404_v18  ;;  %v1465_v28 = vpack.c.bf16 %v1420_v15, %v1405_v21  ;;  %v1406_v29 = vld [vmem:[#allocation2 + $0x18] sm:$0xff]  ;;  %v1424_v45 = vld [vmem:[#allocation2 + $0xa8] sm:$0xff]  ;;  %v1425_v46 = vld [vmem:[#allocation2 + $0xb0] sm:$0xff] }
  0xe9   :  { %v1466_v32 = vpack.c.bf16 %v1421_v16, %v1406_v29  ;;  %v1441_v38 = vld [vmem:[#allocation2 + $0x130] sm:$0xff]  ;;  %v1442_v39 = vld [vmem:[#allocation2 + $0x138] sm:$0xff]  ;;  %v1443_v36 = vld [vmem:[#allocation2 + $0x140] sm:$0xff] }
  0xea   :  { %1558 = vmatpush.bf16.msra.mxu0 %v1463_v26  ;;  %1571 = vmatpush.bf16.msra.mxu1 %v1464_v27  ;;  %v1444_v44 = vld [vmem:[#allocation2 + $0x148] sm:$0xff]  ;;  %v1486_v47 = vpack.c.bf16 %v1456_v30, %v1441_v38  ;;  %v1487_v48 = vpack.c.bf16 %v1457_v31, %v1442_v39  ;;  %v1407_v50 = vld [vmem:[#allocation2 + $0x20] sm:$0xff]  ;;  %v1488_v52 = vpack.c.bf16 %v1458_v23, %v1443_v36  ;;  %v1409_v56 = vld [vmem:[#allocation2 + $0x30] sm:$0xff] }
  0xeb   :  { %1584 = vmatpush.bf16.msra.mxu2 %v1465_v28  ;;  %1597 = vmatpush.bf16.msra.mxu3 %v1466_v32  ;;  %v1408_v51 = vld [vmem:[#allocation2 + $0x28] sm:$0xff]  ;;  %v1489_v53 = vpack.c.bf16 %v1459_v33, %v1444_v44  ;;  %v1467_v54 = vpack.c.bf16 %v1422_v37, %v1407_v50  ;;  %v1410_v57 = vld [vmem:[#allocation2 + $0x38] sm:$0xff]  ;;  %v1469_v58 = vpack.c.bf16 %v1424_v45, %v1409_v56  ;;  %v1411_v5 = vld [vmem:[#allocation2 + $0x40] sm:$0xff] }
  0xec   :  { %v1468_v55 = vpack.c.bf16 %v1423_v42, %v1408_v51  ;;  %v1470_v2 = vpack.c.bf16 %v1425_v46, %v1410_v57  ;;  %v1531_v59 = vand.u32 %v3631_v25, %v1486_v47  ;;  %v1534_v60 = vand.u32 %v3631_v25, %v1487_v48  ;;  %v1412_v6 = vld [vmem:[#allocation2 + $0x48] sm:$0xff]  ;;  %v1413_v9 = vld [vmem:[#allocation2 + $0x50] sm:$0xff]  ;;  %v1414_v10 = vld [vmem:[#allocation2 + $0x58] sm:$0xff] }
  0xed   :  { %2909 = vmatmul.msk.bf16.vlgmr.msra.gmra.mxu0 %vm1499_vm0, %v3748_v49  ;;  %2910 = vmatmul.msk.bf16.vlgmr.msra.gmra.mxu1 %vm1499_vm0, %v3748_v49  ;;  %v1537_v61 = vand.u32 %v3631_v25, %v1488_v52  ;;  %v1540_v62 = vand.u32 %v3631_v25, %v1489_v53  ;;  %v1471_v7 = vpack.c.bf16 %v1426_v63, %v1411_v5  ;;  %v1460_v14 = vld [vmem:[#allocation2 + $0x1c8] sm:$0x1]  ;;  %v1445_v15 = vld [vmem:[#allocation2 + $0x150] sm:$0xff]  ;;  %v1446_v16 = vld [vmem:[#allocation2 + $0x158] sm:$0xff] }
  0xee   :  { %1609 = vmatpush.bf16.msrb.mxu0 %v1519_v34  ;;  %1622 = vmatpush.bf16.msrb.mxu1 %v1522_v35  ;;  %v1472_v8 = vpack.c.bf16 %v1427_v0, %v1412_v6  ;;  %v1473_v12 = vpack.c.bf16 %v1428_v1, %v1413_v9  ;;  %v1474_v13 = vpack.c.bf16 %v1429_v3, %v1414_v10  ;;  %v1447_v19 = vld [vmem:[#allocation2 + $0x160] sm:$0xff]  ;;  %v1462_v20 = vld [vmem:[#allocation2 + $0x1d8] sm:$0x1]  ;;  %v1432_v30 = vld [vmem:[#allocation2 + $0xe8] sm:$0xff] }
  0xef   :  { %1635 = vmatpush.bf16.msrb.mxu2 %v1525_v40  ;;  %1648 = vmatpush.bf16.msrb.mxu3 %v1528_v41  ;;  %v1490_v18 = vpack.c.bf16 %v1460_v14, %v1445_v15  ;;  %v1491_v21 = vpack.c.bf16 %v1461_v17, %v1446_v16  ;;  %v1492_v22 = vpack.c.bf16 %v1462_v20, %v1447_v19  ;;  %v1430_v28 = vld [vmem:[#allocation2 + $0xd8] sm:$0xff]  ;;  %v1431_v29 = vld [vmem:[#allocation2 + $0xe0] sm:$0xff]  ;;  %v1416_v32 = vld [vmem:[#allocation2 + $0x68] sm:$0xff] }
  0xf0   :  { %2911 = vmatmul.msk.bf16.vlgmr.msra.gmra.mxu2 %vm1499_vm0, %v3748_v49  ;;  %2912 = vmatmul.msk.bf16.vlgmr.msra.gmra.mxu3 %vm1499_vm0, %v3748_v49  ;;  %v1415_v31 = vld [vmem:[#allocation2 + $0x60] sm:$0xff]  ;;  %v1476_v33 = vpack.c.bf16 %v1431_v29, %v1416_v32  ;;  %v1417_v34 = vld [vmem:[#allocation2 + $0x70] sm:$0xff] }
  0xf1   :  { %v1543_v24 = vand.u32 %v3631_v25, %v1490_v18  ;;  %v1546_v26 = vand.u32 %v3631_v25, %v1491_v21  ;;  %v1549_v27 = vand.u32 %v3631_v25, %v1492_v22  ;;  %v1475_v23 = vpack.c.bf16 %v1430_v28, %v1415_v31 }
  0xf2   :  { %1610 = vmatpush.bf16.msrb.mxu0 %v1467_v54  ;;  %1623 = vmatpush.bf16.msrb.mxu1 %v1468_v55  ;;  %v1477_v35 = vpack.c.bf16 %v1432_v30, %v1417_v34  ;;  %v2020_v34 = vand.u32 127, %v64_v43 }
  0xf3   :  { %1636 = vmatpush.bf16.msrb.mxu2 %v1469_v58  ;;  %1649 = vmatpush.bf16.msrb.mxu3 %v1470_v2 }
  0xf6   :  { %1661 = vmatpush.bf16.msra.mxu0 %v1531_v59  ;;  %1674 = vmatpush.bf16.msra.mxu1 %v1534_v60 }
  0xf7   :  { %1687 = vmatpush.bf16.msra.mxu2 %v1537_v61  ;;  %1700 = vmatpush.bf16.msra.mxu3 %v1540_v62 }
  0xfa   :  { %1662 = vmatpush.bf16.msra.mxu0 %v1471_v7  ;;  %1675 = vmatpush.bf16.msra.mxu1 %v1472_v8 }
  0xfb   :  { %1688 = vmatpush.bf16.msra.mxu2 %v1473_v12  ;;  %1701 = vmatpush.bf16.msra.mxu3 %v1474_v13 }
  0xfd   :  { %2913 = vmatmul.msk.bf16.vlgmr.msrb.gmra.mxu0 %vm1499_vm0, %v3748_v49  ;;  %2914 = vmatmul.msk.bf16.vlgmr.msrb.gmra.mxu1 %vm1499_vm0, %v3748_v49 }
  0xfe   :  { %1713 = vmatpush.bf16.msrb.mxu0 %v1543_v24  ;;  %1726 = vmatpush.bf16.msrb.mxu1 %v1546_v26 }
 0x100   :  { %2915 = vmatmul.msk.bf16.vlgmr.msrb.gmra.mxu2 %vm1499_vm0, %v3748_v49  ;;  %2916 = vmatmul.msk.bf16.vlgmr.msrb.gmra.mxu3 %vm1499_vm0, %v3748_v49 }
 0x101   :  { %1739 = vmatpush.bf16.msrb.mxu2 %v1549_v27 }
 0x102   :  { %1714 = vmatpush.bf16.msrb.mxu0 %v1475_v23  ;;  %1727 = vmatpush.bf16.msrb.mxu1 %v1476_v33  ;;  %v2015_v33 = vshrl.u32 %v64_v43, 7 }
 0x105   :  { %1740 = vmatpush.bf16.msrb.mxu2 %v1477_v35 }
 0x10d   :  { %2917 = vmatmul.msk.bf16.vlgmr.msra.gmra.mxu0 %vm1499_vm0, %v3748_v49  ;;  %2918 = vmatmul.msk.bf16.vlgmr.msra.gmra.mxu1 %vm1499_vm0, %v3748_v49 }
 0x110   :  { %2919 = vmatmul.msk.bf16.vlgmr.msra.gmra.mxu2 %vm1499_vm0, %v3748_v49  ;;  %2920 = vmatmul.msk.bf16.vlgmr.msra.gmra.mxu3 %vm1499_vm0, %v3748_v49 }
 0x11d   :  { %2921 = vmatmul.msk.bf16.vlgmr.msrb.gmra.mxu0 %vm1499_vm0, %v3748_v49  ;;  %2922 = vmatmul.msk.bf16.vlgmr.msrb.gmra.mxu1 %vm1499_vm0, %v3748_v49 }
 0x120   :  { %2923 = vmatmul.msk.bf16.vlgmr.msrb.gmra.mxu2 %vm1499_vm0, %v3748_v49  ;;  %vm2277_vm0 = vcmask 915216  }
 0x133   :  { %v3794_v25 = vpop.permute.xlu2 %1496 }
 0x16a   :  { %v1560_v37 = vpop.f32.mrf.mxu0  ;;  %v1573_v38 = vpop.f32.mrf.mxu1 }
 0x16b   :  { %v1561_v39 = vadd.f32 %v1560_v37, %v3794_v25  ;;  %v1574_v40 = vadd.f32 %v1573_v38, %v3794_v25  ;;  %v2021_v37 = vmul.u32 2, %v2020_v34  ;;  %v3277_v38 = vmov 0.0  }
 0x16d   :  { %3226 = vtanh.f32 %v1561_v39  ;;  %vm3947_vm5 = vcmp.eq.s32.totalorder %v2015_v33, %v2021_v37 }
 0x16e   :  { %3228 = vtanh.f32 %v1574_v40  ;;  %v2017_v40 = vadd.s32 16, %v2015_v33 }
 0x170   :  { %vm3924_vm3 = vcmp.eq.s32.totalorder %v2017_v40, %v2021_v37 }
 0x172   :  { %v1562_v36 = vpop.f32.mrf.mxu0  ;;  %v1575_v44 = vpop.f32.mrf.mxu1 }
 0x173   :  { %v1586_v41 = vpop.f32.mrf.mxu2  ;;  %v1599_v42 = vpop.f32.mrf.mxu3 }
 0x174   :  { %v3798_v45 = vpop.eup %3226  ;;  %v1587_v49 = vadd.f32 %v1586_v41, %v3794_v25  ;;  %v1600_v50 = vadd.f32 %v1599_v42, %v3794_v25  ;;  %v2016_v41 = vadd.s32 8, %v2015_v33 }
 0x175   :  { %v3800_v46 = vpop.eup %3228  ;;  %1850 = vrot.lane.b32.xlu2 %v3798_v45, %s3265_s20  ;;  %1776 = vrot.lane.b32.xlu0 %v3798_v45, %s3262_s9 }
 0x176   :  { %1778 = vrot.lane.b32.xlu1 %v3800_v46, %s3262_s9  ;;  %3230 = vtanh.f32 %v1587_v49  ;;  %vm3938_vm4 = vcmp.eq.s32.totalorder %v2016_v41, %v2021_v37  ;;  %v3278_v49 = vmov 0.25  }
 0x177   :  { %3232 = vtanh.f32 %v1600_v50 }
 0x17a   :  { %v1612_v51 = vpop.f32.mrf.mxu0  ;;  %v1625_v52 = vpop.f32.mrf.mxu1 }
 0x17b   :  { %v1588_v47 = vpop.f32.mrf.mxu2  ;;  %v1601_v48 = vpop.f32.mrf.mxu3  ;;  %v1613_v2 = vadd.f32 %v1612_v51, %v3794_v25  ;;  %v1626_v61 = vadd.f32 %v1625_v52, %v3794_v25 }
 0x17c   :  { %v3816_v57 = vpop.eup %3230 }
 0x17d   :  { %1926 = vrot.lane.b32.xlu2 %v3800_v46, %s3264_s19  ;;  %1852 = vrot.lane.b32.xlu0 %v3800_v46, %s3265_s20  ;;  %v3818_v58 = vpop.eup %3232  ;;  %3234 = vtanh.f32 %v1613_v2 }
 0x17e   :  { %1924 = vrot.lane.b32.xlu1 %v3798_v45, %s3264_s19  ;;  %3236 = vtanh.f32 %v1626_v61 }
 0x182   :  { %v1614_v55 = vpop.f32.mrf.mxu0  ;;  %v1627_v56 = vpop.f32.mrf.mxu1 }
 0x183   :  { %v1638_v53 = vpop.f32.mrf.mxu2  ;;  %v1651_v54 = vpop.f32.mrf.mxu3 }
 0x184   :  { %v3834_v5 = vpop.eup %3234  ;;  %v1639_v7 = vadd.f32 %v1638_v53, %v3794_v25  ;;  %v1652_v10 = vadd.f32 %v1651_v54, %v3794_v25 }
 0x185   :  { %1854 = vrot.lane.b32.xlu2 %v3816_v57, %s3265_s20  ;;  %1780 = vrot.lane.b32.xlu0 %v3816_v57, %s3262_s9  ;;  %v3836_v6 = vpop.eup %3236 }
 0x186   :  { %1782 = vrot.lane.b32.xlu1 %v3818_v58, %s3262_s9  ;;  %3238 = vtanh.f32 %v1639_v7 }
 0x187   :  { %3240 = vtanh.f32 %v1652_v10 }
 0x18a   :  { %v1664_v62 = vpop.f32.mrf.mxu0  ;;  %v1677_v63 = vpop.f32.mrf.mxu1 }
 0x18b   :  { %v1640_v59 = vpop.f32.mrf.mxu2  ;;  %v1653_v60 = vpop.f32.mrf.mxu3  ;;  %v1665_v19 = vadd.f32 %v1664_v62, %v3794_v25  ;;  %v1678_v21 = vadd.f32 %v1677_v63, %v3794_v25 }
 0x18c   :  { %v3852_v16 = vpop.eup %3238 }
 0x18d   :  { %1930 = vrot.lane.b32.xlu2 %v3818_v58, %s3264_s19  ;;  %1856 = vrot.lane.b32.xlu0 %v3818_v58, %s3265_s20  ;;  %v3241_v17 = vpop.eup %3240  ;;  %3242 = vtanh.f32 %v1665_v19 }
 0x18e   :  { %1928 = vrot.lane.b32.xlu1 %v3816_v57, %s3264_s19 }
 0x192   :  { %v1666_v3 = vpop.f32.mrf.mxu0  ;;  %v1679_v4 = vpop.f32.mrf.mxu1 }
 0x193   :  { %v1690_v0 = vpop.f32.mrf.mxu2  ;;  %v1703_v1 = vpop.f32.mrf.mxu3 }
 0x194   :  { %v1691_v20 = vadd.f32 %v1690_v0, %v3794_v25  ;;  %v3866_v22 = vpop.eup %3242  ;;  %v1704_v27 = vadd.f32 %v1703_v1, %v3794_v25 }
 0x195   :  { %1858 = vrot.lane.b32.xlu2 %v3834_v5, %s3265_s20  ;;  %1784 = vrot.lane.b32.xlu0 %v3834_v5, %s3262_s9 }
 0x196   :  { %1786 = vrot.lane.b32.xlu1 %v3836_v6, %s3262_s9  ;;  %3244 = vtanh.f32 %v1691_v20 }
 0x197   :  { %3246 = vtanh.f32 %v1678_v21 }
 0x198   :  { %3248 = vtanh.f32 %v1704_v27 }
 0x19a   :  { %v1716_v11 = vpop.f32.mrf.mxu0  ;;  %v1729_v12 = vpop.f32.mrf.mxu1 }
 0x19b   :  { %v1692_v8 = vpop.f32.mrf.mxu2  ;;  %v1705_v9 = vpop.f32.mrf.mxu3  ;;  %v1717_v28 = vadd.f32 %v1716_v11, %v3794_v25  ;;  %v1730_v31 = vadd.f32 %v1729_v12, %v3794_v25 }
 0x19c   :  { %v3868_v24 = vpop.eup %3244 }
 0x19d   :  { %1934 = vrot.lane.b32.xlu2 %v3836_v6, %s3264_s19  ;;  %1860 = vrot.lane.b32.xlu0 %v3836_v6, %s3265_s20  ;;  %v3870_v26 = vpop.eup %3246  ;;  %3250 = vtanh.f32 %v1717_v28 }
 0x19e   :  { %1932 = vrot.lane.b32.xlu1 %v3834_v5, %s3264_s19  ;;  %v3892_v29 = vpop.eup %3248  ;;  %3252 = vtanh.f32 %v1730_v31 }
 0x1a2   :  { %v1718_v14 = vpop.f32.mrf.mxu0  ;;  %v1731_v15 = vpop.f32.mrf.mxu1 }
 0x1a3   :  { %v1742_v13 = vpop.f32.mrf.mxu2  ;;  %v3904_v23 = vpop.eup %3250 }
 0x1a4   :  { %v1743_v32 = vadd.f32 %v1742_v13, %v3794_v25  ;;  %v2018_v25 = vadd.s32 24, %v2015_v33  ;;  %v3922_v43 = vpop.eup %3252 }
 0x1a5   :  { %1862 = vrot.lane.b32.xlu2 %v3852_v16, %s3265_s20  ;;  %1788 = vrot.lane.b32.xlu0 %v3852_v16, %s3262_s9 }
 0x1a6   :  { %1790 = vrot.lane.b32.xlu1 %v3241_v17, %s3262_s9  ;;  %3254 = vtanh.f32 %v1743_v32  ;;  %vm2025_vm2 = vcmp.eq.s32.totalorder %v2018_v25, %v2021_v37 }
 0x1a7   :  { %v3916_v39 = vsel %vm2025_vm2, 0.25, %v3277_v38  ;;  %vm2339_vm2 = vcmask 1046512  }
 0x1a8   :  { %2924 = vmatpush.msk.msrb.mxu3 %vm2035_vm1, %v3916_v39  ;;  %2934 = vmatpush.msk.msra.mxu0 %vm2035_vm1, %v3916_v39 }
 0x1a9   :  { %2944 = vmatpush.msk.msra.mxu2 %vm2035_vm1, %v3916_v39  ;;  %2939 = vmatpush.msk.msra.mxu1 %vm2035_vm1, %v3916_v39 }
 0x1aa   :  { %2925 = vmatpush.msk.msrb.mxu3 %vm3924_vm3, %v3278_v49  ;;  %2935 = vmatpush.msk.msra.mxu0 %vm3924_vm3, %v3278_v49 }
 0x1ab   :  { %v1744_v18 = vpop.f32.mrf.mxu2  ;;  %2945 = vmatpush.msk.msra.mxu2 %vm3924_vm3, %v3278_v49  ;;  %2940 = vmatpush.msk.msra.mxu1 %vm3924_vm3, %v3278_v49 }
 0x1ac   :  { %v3932_v36 = vpop.eup %3254  ;;  %2926 = vmatpush.msk.msrb.mxu3 %vm3938_vm4, %v3278_v49  ;;  %2936 = vmatpush.msk.msra.mxu0 %vm3938_vm4, %v3278_v49 }
 0x1ad   :  { %1938 = vrot.lane.b32.xlu2 %v3241_v17, %s3264_s19  ;;  %1864 = vrot.lane.b32.xlu0 %v3241_v17, %s3265_s20 }
 0x1ae   :  { %1936 = vrot.lane.b32.xlu1 %v3852_v16, %s3264_s19  ;;  %2946 = vmatpush.msk.msra.mxu2 %vm3938_vm4, %v3278_v49 }
 0x1af   :  { %2927 = vmatpush.msk.msrb.mxu3 %vm3947_vm5, %v3278_v49  ;;  %2941 = vmatpush.msk.msra.mxu1 %vm3938_vm4, %v3278_v49 }
 0x1b0   :  { %2937 = vmatpush.msk.msra.mxu0 %vm3947_vm5, %v3278_v49  ;;  %2947 = vmatpush.msk.msra.mxu2 %vm3947_vm5, %v3278_v49 }
 0x1b1   :  { %2929 = vmatpush.msk.msra.mxu3 %vm2035_vm1, %v3916_v39  ;;  %2942 = vmatpush.msk.msra.mxu1 %vm3947_vm5, %v3278_v49 }
 0x1b2   :  { %2954 = vmatpush.msk.msrb.mxu0 %vm2035_vm1, %v3916_v39  ;;  %2964 = vmatpush.msk.msrb.mxu2 %vm2035_vm1, %v3916_v39 }
 0x1b3   :  { %2930 = vmatpush.msk.msra.mxu3 %vm3924_vm3, %v3278_v49  ;;  %2959 = vmatpush.msk.msrb.mxu1 %vm2035_vm1, %v3916_v39 }
 0x1b4   :  { %2955 = vmatpush.msk.msrb.mxu0 %vm3924_vm3, %v3278_v49  ;;  %2965 = vmatpush.msk.msrb.mxu2 %vm3924_vm3, %v3278_v49 }
 0x1b5   :  { %1796 = vrot.lane.b32.xlu2 %v3868_v24, %s3262_s9  ;;  %1792 = vrot.lane.b32.xlu0 %v3866_v22, %s3262_s9 }
 0x1b6   :  { %1794 = vrot.lane.b32.xlu1 %v3870_v26, %s3262_s9  ;;  %2956 = vmatpush.msk.msrb.mxu0 %vm3938_vm4, %v3278_v49 }
 0x1b7   :  { %2966 = vmatpush.msk.msrb.mxu2 %vm3938_vm4, %v3278_v49  ;;  %2931 = vmatpush.msk.msra.mxu3 %vm3938_vm4, %v3278_v49 }
 0x1b8   :  { %2957 = vmatpush.msk.msrb.mxu0 %vm3947_vm5, %v3278_v49  ;;  %2960 = vmatpush.msk.msrb.mxu1 %vm3924_vm3, %v3278_v49 }
 0x1b9   :  { %2967 = vmatpush.msk.msrb.mxu2 %vm3947_vm5, %v3278_v49  ;;  %2932 = vmatpush.msk.msra.mxu3 %vm3947_vm5, %v3278_v49 }
 0x1ba   :  { %2961 = vmatpush.msk.msrb.mxu1 %vm3938_vm4, %v3278_v49 }
 0x1bc   :  { %2962 = vmatpush.msk.msrb.mxu1 %vm3947_vm5, %v3278_v49 }
 0x1bd   :  { %1870 = vrot.lane.b32.xlu2 %v3868_v24, %s3265_s20  ;;  %1866 = vrot.lane.b32.xlu0 %v3866_v22, %s3265_s20 }
 0x1be   :  { %1868 = vrot.lane.b32.xlu1 %v3870_v26, %s3265_s20 }
 0x1c5   :  { %1944 = vrot.lane.b32.xlu2 %v3868_v24, %s3264_s19  ;;  %1940 = vrot.lane.b32.xlu0 %v3866_v22, %s3264_s19 }
 0x1c6   :  { %1942 = vrot.lane.b32.xlu1 %v3870_v26, %s3264_s19 }
 0x1cd   :  { %1872 = vrot.lane.b32.xlu2 %v3892_v29, %s3265_s20  ;;  %1798 = vrot.lane.b32.xlu0 %v3892_v29, %s3262_s9 }
 0x1ce   :  { %1946 = vrot.lane.b32.xlu1 %v3892_v29, %s3264_s19 }
 0x1cf   :  { %v3900_v30 = vpop.permute.xlu2 %1850 }
 0x1d5   :  { %1948 = vrot.lane.b32.xlu2 %v3904_v23, %s3264_s19  ;;  %1874 = vrot.lane.b32.xlu0 %v3904_v23, %s3265_s20 }
 0x1d6   :  { %1800 = vrot.lane.b32.xlu1 %v3904_v23, %s3262_s9 }
 0x1d7   :  { %v3914_v35 = vpop.permute.xlu2 %1926 }
 0x1dd   :  { %1876 = vrot.lane.b32.xlu2 %v3922_v43, %s3265_s20  ;;  %1802 = vrot.lane.b32.xlu0 %v3922_v43, %s3262_s9 }
 0x1de   :  { %1804 = vrot.lane.b32.xlu1 %v3932_v36, %s3262_s9 }
 0x1df   :  { %v1855_v48 = vpop.permute.xlu2 %1854 }
 0x1e5   :  { %1952 = vrot.lane.b32.xlu2 %v3932_v36, %s3264_s19  ;;  %1878 = vrot.lane.b32.xlu0 %v3932_v36, %s3265_s20 }
 0x1e6   :  { %1950 = vrot.lane.b32.xlu1 %v3922_v43, %s3264_s19  ;;  %s3282_s19 = smov 12  }
 0x1e7   :  { %v1777_v50 = vpop.permute.xlu0 %1776  ;;  %v4016_v52 = vpop.permute.xlu2 %1930 }
 0x1e8   :  { %v1779_v51 = vpop.permute.xlu1 %1778 }
 0x1e9   :  { %v1806_v53 = vsel %vm117_vm7, %v1777_v50, %v1779_v51 }
 0x1ea   :  { %v1835_v54 = vadd.f32 %v3798_v45, %v1806_v53 }
 0x1ef   :  { %v1853_v55 = vpop.permute.xlu0 %1852  ;;  %v1859_v62 = vpop.permute.xlu2 %1858 }
 0x1f0   :  { %v1925_v56 = vpop.permute.xlu1 %1924  ;;  %v1880_v2 = vsel %vm341_vm12, %v3900_v30, %v1853_v55  ;;  %v1881_v8 = vsel %vm341_vm12, %v1853_v55, %v1855_v48 }
 0x1f1   :  { %v1909_v59 = vadd.f32 %v1880_v2, %v1835_v54  ;;  %v1954_v60 = vsel %vm397_vm11, %v1925_v56, %v3914_v35 }
 0x1f3   :  { %v1983_v61 = vadd.f32 %v1954_v60, %v1909_v59 }
 0x1f5   :  { %1998 = vst [vmem:[#allocation3] sm:$0x3f] %v1983_v61 }
 0x1f7   :  { %v1781_v63 = vpop.permute.xlu0 %1780  ;;  %v4050_v9 = vpop.permute.xlu2 %1934 }
 0x1f8   :  { %v1783_v0 = vpop.permute.xlu1 %1782  ;;  %v1807_v45 = vsel %vm117_vm7, %v1779_v51, %v1781_v63 }
 0x1f9   :  { %v1808_v1 = vsel %vm117_vm7, %v1781_v63, %v1783_v0  ;;  %v1836_v3 = vadd.f32 %v3800_v46, %v1807_v45 }
 0x1fa   :  { %v1837_v10 = vadd.f32 %v3816_v57, %v1808_v1 }
 0x1fb   :  { %v1910_v13 = vadd.f32 %v1881_v8, %v1836_v3 }
 0x1fc   :  { %v2061_v4 = vld [vmem:[#allocation3] sm:$0x3f] }
 0x1fd   :  { %v2030_v7 = vld [vmem:[#allocation3] sm:$0x3f]  ;;  %2063 = vrot.lane.b32.xlu0 %v2061_v4, %s3273_s29 }
 0x1fe   :  { %2928 = vmatmul.msk.f32.vlgmr.msrb.gmra.mxu3 %vm2031_vm6, %v2030_v7 }
 0x1ff   :  { %2949 = vmatpush.msk.msrb.mxu3 %vm2035_vm1, %v3916_v39  ;;  %v1857_v11 = vpop.permute.xlu0 %1856  ;;  %v1863_v21 = vpop.permute.xlu2 %1862 }
 0x200   :  { %v1929_v12 = vpop.permute.xlu1 %1928  ;;  %v1882_v46 = vsel %vm341_vm12, %v1855_v48, %v1857_v11 }
 0x201   :  { %2950 = vmatpush.msk.msrb.mxu3 %vm3924_vm3, %v3278_v49  ;;  %v1955_v14 = vsel %vm397_vm11, %v3914_v35, %v1929_v12  ;;  %v1911_v15 = vadd.f32 %v1882_v46, %v1837_v10  ;;  %v1956_v17 = vsel %vm397_vm11, %v1929_v12, %v4016_v52  ;;  %v1883_v35 = vsel %vm341_vm12, %v1857_v11, %v1859_v62 }
 0x202   :  { %v1984_v19 = vadd.f32 %v1955_v14, %v1910_v13 }
 0x203   :  { %2951 = vmatpush.msk.msrb.mxu3 %vm3938_vm4, %v3278_v49  ;;  %v1985_v57 = vadd.f32 %v1956_v17, %v1911_v15 }
 0x204   :  { %1999 = vst [vmem:[#allocation3 + $0x8] sm:$0x3f] %v1984_v19 }
 0x205   :  { %2952 = vmatpush.msk.msrb.mxu3 %vm3947_vm5, %v3278_v49  ;;  %2000 = vst [vmem:[#allocation3 + $0x10] sm:$0x3f] %v1985_v57 }
 0x207   :  { %v1785_v20 = vpop.permute.xlu0 %1784  ;;  %v1939_v51 = vpop.permute.xlu2 %1938 }
 0x208   :  { %v1787_v18 = vpop.permute.xlu1 %1786  ;;  %v1809_v27 = vsel %vm117_vm7, %v1783_v0, %v1785_v20 }
 0x209   :  { %v1810_v31 = vsel %vm117_vm7, %v1785_v20, %v1787_v18  ;;  %v1838_v32 = vadd.f32 %v3818_v58, %v1809_v27 }
 0x20a   :  { %v1839_v58 = vadd.f32 %v3834_v5, %v1810_v31 }
 0x20b   :  { %v2123_v28 = vld [vmem:[#allocation3 + $0x8] sm:$0x3f]  ;;  %v1912_v38 = vadd.f32 %v1883_v35, %v1838_v32 }
 0x20c   :  { %v2093_v30 = vld [vmem:[#allocation3 + $0x8] sm:$0x3f]  ;;  %2125 = vrot.lane.b32.xlu1 %v2123_v28, %s3273_s29  ;;  %v2185_v33 = vld [vmem:[#allocation3 + $0x10] sm:$0x3f] }
 0x20d   :  { %2938 = vmatmul.msk.f32.vlgmr.msra.gmra.mxu0 %vm2031_vm6, %v2093_v30  ;;  %v2155_v34 = vld [vmem:[#allocation3 + $0x10] sm:$0x3f]  ;;  %2187 = vrot.lane.b32.xlu2 %v2185_v33, %s3273_s29 }
 0x20e   :  { %2948 = vmatmul.msk.f32.vlgmr.msra.gmra.mxu2 %vm2031_vm6, %v2155_v34  ;;  %2974 = vmatpush.msk.msra.mxu0 %vm2035_vm1, %v3916_v39 }
 0x20f   :  { %2984 = vmatpush.msk.msra.mxu2 %vm2035_vm1, %v3916_v39  ;;  %v1861_v25 = vpop.permute.xlu0 %1860  ;;  %v4108_v63 = vpop.permute.xlu2 %1796 }
 0x210   :  { %v1933_v37 = vpop.permute.xlu1 %1932  ;;  %v1884_v40 = vsel %vm341_vm12, %v1859_v62, %v1861_v25  ;;  %2975 = vmatpush.msk.msra.mxu0 %vm3924_vm3, %v3278_v49 }
 0x211   :  { %2985 = vmatpush.msk.msra.mxu2 %vm3924_vm3, %v3278_v49  ;;  %v1957_v41 = vsel %vm397_vm11, %v4016_v52, %v1933_v37  ;;  %v1913_v48 = vadd.f32 %v1884_v40, %v1839_v58  ;;  %v1958_v5 = vsel %vm397_vm11, %v1933_v37, %v4050_v9 }
 0x212   :  { %v1986_v50 = vadd.f32 %v1957_v41, %v1912_v38  ;;  %2976 = vmatpush.msk.msra.mxu0 %vm3938_vm4, %v3278_v49 }
 0x213   :  { %2986 = vmatpush.msk.msra.mxu2 %vm3938_vm4, %v3278_v49  ;;  %v1987_v53 = vadd.f32 %v1958_v5, %v1913_v48 }
 0x214   :  { %2001 = vst [vmem:[#allocation3 + $0x18] sm:$0x3f] %v1986_v50  ;;  %2977 = vmatpush.msk.msra.mxu0 %vm3947_vm5, %v3278_v49 }
 0x215   :  { %2987 = vmatpush.msk.msra.mxu2 %vm3947_vm5, %v3278_v49  ;;  %2002 = vst [vmem:[#allocation3 + $0x20] sm:$0x3f] %v1987_v53 }
 0x217   :  { %v1789_v52 = vpop.permute.xlu0 %1788 }
 0x218   :  { %v1791_v54 = vpop.permute.xlu1 %1790  ;;  %v1811_v55 = vsel %vm117_vm7, %v1787_v18, %v1789_v52 }
 0x219   :  { %v1812_v59 = vsel %vm117_vm7, %v1789_v52, %v1791_v54  ;;  %v1840_v60 = vadd.f32 %v3836_v6, %v1811_v55  ;;  %v1885_v6 = vsel %vm341_vm12, %v1861_v25, %v1863_v21 }
 0x21a   :  { %v1841_v0 = vadd.f32 %v3852_v16, %v1812_v59 }
 0x21b   :  { %v2247_v56 = vld [vmem:[#allocation3 + $0x18] sm:$0x3f]  ;;  %v1914_v3 = vadd.f32 %v1885_v6, %v1840_v60 }
 0x21c   :  { %v2217_v2 = vld [vmem:[#allocation3 + $0x18] sm:$0x3f]  ;;  %2249 = vrot.lane.b32.xlu0 %v2247_v56, %s3273_s29  ;;  %v2309_v61 = vld [vmem:[#allocation3 + $0x20] sm:$0x3f] }
 0x21d   :  { %2958 = vmatmul.msk.f32.vlgmr.msrb.gmra.mxu0 %vm2031_vm6, %v2217_v2  ;;  %v2279_v62 = vld [vmem:[#allocation3 + $0x20] sm:$0x3f]  ;;  %2311 = vrot.lane.b32.xlu1 %v2309_v61, %s3273_s29 }
 0x21e   :  { %2968 = vmatmul.msk.f32.vlgmr.msrb.gmra.mxu2 %vm2031_vm6, %v2279_v62  ;;  %2994 = vmatpush.msk.msrb.mxu0 %vm2035_vm1, %v3916_v39 }
 0x21f   :  { %3004 = vmatpush.msk.msrb.mxu2 %vm2035_vm1, %v3916_v39  ;;  %v1865_v45 = vpop.permute.xlu0 %1864 }
 0x220   :  { %v1937_v1 = vpop.permute.xlu1 %1936  ;;  %v1886_v4 = vsel %vm341_vm12, %v1863_v21, %v1865_v45  ;;  %2995 = vmatpush.msk.msrb.mxu0 %vm3924_vm3, %v3278_v49 }
 0x221   :  { %3005 = vmatpush.msk.msrb.mxu2 %vm3924_vm3, %v3278_v49  ;;  %v1959_v7 = vsel %vm397_vm11, %v4050_v9, %v1937_v1  ;;  %v1915_v8 = vadd.f32 %v1886_v4, %v1841_v0  ;;  %v1960_v10 = vsel %vm397_vm11, %v1937_v1, %v1939_v51  ;;  %v1871_v9 = vpop.permute.xlu2 %1870 }
 0x222   :  { %v1988_v16 = vadd.f32 %v1959_v7, %v1914_v3  ;;  %2996 = vmatpush.msk.msrb.mxu0 %vm3938_vm4, %v3278_v49 }
 0x223   :  { %3006 = vmatpush.msk.msrb.mxu2 %vm3938_vm4, %v3278_v49  ;;  %v1989_v11 = vadd.f32 %v1960_v10, %v1915_v8 }
 0x224   :  { %2003 = vst [vmem:[#allocation3 + $0x28] sm:$0x3f] %v1988_v16  ;;  %2997 = vmatpush.msk.msrb.mxu0 %vm3947_vm5, %v3278_v49 }
 0x225   :  { %3007 = vmatpush.msk.msrb.mxu2 %vm3947_vm5, %v3278_v49  ;;  %2004 = vst [vmem:[#allocation3 + $0x30] sm:$0x3f] %v1989_v11 }
 0x227   :  { %v1793_v12 = vpop.permute.xlu0 %1792 }
 0x228   :  { %v1795_v13 = vpop.permute.xlu1 %1794 }
 0x229   :  { %v1945_v20 = vpop.permute.xlu2 %1944  ;;  %v1815_v18 = vsel %vm117_vm7, %v1795_v13, %v4108_v63  ;;  %v1814_v21 = vsel %vm117_vm7, %v1793_v12, %v1795_v13 }
 0x22a   :  { %v1844_v30 = vadd.f32 %v3870_v26, %v1815_v18  ;;  %v1843_v31 = vadd.f32 %v3866_v22, %v1814_v21 }
 0x22b   :  { %v2373_v46 = vld [vmem:[#allocation3 + $0x28] sm:$0x3f] }
 0x22c   :  { %v2343_v14 = vld [vmem:[#allocation3 + $0x28] sm:$0x3f]  ;;  %2375 = vrot.lane.b32.xlu2 %v2373_v46, %s3273_s29  ;;  %v2435_v15 = vld [vmem:[#allocation3 + $0x30] sm:$0x3f] }
 0x22d   :  { %2978 = vmatmul.msk.f32.vlgmr.msra.gmra.mxu0 %vm2031_vm6, %v2343_v14  ;;  %v2405_v17 = vld [vmem:[#allocation3 + $0x30] sm:$0x3f]  ;;  %2437 = vrot.lane.b32.xlu0 %v2435_v15, %s3273_s29 }
 0x22e   :  { %2988 = vmatmul.msk.f32.vlgmr.msra.gmra.mxu2 %vm2031_vm6, %v2405_v17  ;;  %3014 = vmatpush.msk.msra.mxu0 %vm2035_vm1, %v3916_v39 }
 0x22f   :  { %3024 = vmatpush.msk.msra.mxu2 %vm2035_vm1, %v3916_v39  ;;  %v1867_v19 = vpop.permute.xlu0 %1866 }
 0x230   :  { %v1869_v57 = vpop.permute.xlu1 %1868  ;;  %3015 = vmatpush.msk.msra.mxu0 %vm3924_vm3, %v3278_v49 }
 0x231   :  { %3025 = vmatpush.msk.msra.mxu2 %vm3924_vm3, %v3278_v49  ;;  %v1889_v27 = vsel %vm341_vm12, %v1869_v57, %v1871_v9  ;;  %v1888_v28 = vsel %vm341_vm12, %v1867_v19, %v1869_v57  ;;  %v1873_v40 = vpop.permute.xlu2 %1872 }
 0x232   :  { %3016 = vmatpush.msk.msra.mxu0 %vm3938_vm4, %v3278_v49  ;;  %v1918_v33 = vadd.f32 %v1889_v27, %v1844_v30  ;;  %v1917_v34 = vadd.f32 %v1888_v28, %v1843_v31  ;;  %v1890_v5 = vsel %vm341_vm12, %v1871_v9, %v1873_v40 }
 0x233   :  { %3026 = vmatpush.msk.msra.mxu2 %vm3938_vm4, %v3278_v49 }
 0x234   :  { %3017 = vmatpush.msk.msra.mxu0 %vm3947_vm5, %v3278_v49 }
 0x235   :  { %3027 = vmatpush.msk.msra.mxu2 %vm3947_vm5, %v3278_v49 }
 0x237   :  { %v1941_v32 = vpop.permute.xlu0 %1940 }
 0x238   :  { %v1943_v35 = vpop.permute.xlu1 %1942 }
 0x239   :  { %v1963_v58 = vsel %vm397_vm11, %v1943_v35, %v1945_v20  ;;  %v1962_v25 = vsel %vm397_vm11, %v1941_v32, %v1943_v35  ;;  %v1949_v56 = vpop.permute.xlu2 %1948 }
 0x23a   :  { %v1992_v37 = vadd.f32 %v1963_v58, %v1918_v33  ;;  %v1991_v38 = vadd.f32 %v1962_v25, %v1917_v34 }
 0x23c   :  { %2007 = vst [vmem:[#allocation3 + $0x48] sm:$0x3f] %v1992_v37 }
 0x23d   :  { %2006 = vst [vmem:[#allocation3 + $0x40] sm:$0x3f] %v1991_v38 }
 0x23f   :  { %v1799_v41 = vpop.permute.xlu0 %1798 }
 0x240   :  { %v1947_v48 = vpop.permute.xlu1 %1946  ;;  %v1816_v26 = vsel %vm117_vm7, %v4108_v63, %v1799_v41 }
 0x241   :  { %v1845_v22 = vadd.f32 %v3868_v24, %v1816_v26  ;;  %v1964_v52 = vsel %vm397_vm11, %v1945_v20, %v1947_v48  ;;  %v1877_v1 = vpop.permute.xlu2 %1876 }
 0x243   :  { %v1919_v50 = vadd.f32 %v1890_v5, %v1845_v22  ;;  %v2559_v51 = vld [vmem:[#allocation3 + $0x48] sm:$0x3f] }
 0x244   :  { %v2529_v53 = vld [vmem:[#allocation3 + $0x48] sm:$0x3f]  ;;  %2561 = vrot.lane.b32.xlu2 %v2559_v51, %s3273_s29  ;;  %v2497_v54 = vld [vmem:[#allocation3 + $0x40] sm:$0x3f] }
 0x245   :  { %3008 = vmatmul.msk.f32.vlgmr.msrb.gmra.mxu2 %vm2031_vm6, %v2529_v53  ;;  %v2467_v55 = vld [vmem:[#allocation3 + $0x40] sm:$0x3f]  ;;  %v1993_v2 = vadd.f32 %v1964_v52, %v1919_v50  ;;  %2499 = vrot.lane.b32.xlu1 %v2497_v54, %s3273_s29 }
 0x246   :  { %2998 = vmatmul.msk.f32.vlgmr.msrb.gmra.mxu0 %vm2031_vm6, %v2467_v55  ;;  %3044 = vmatpush.msk.msrb.mxu2 %vm2035_vm1, %v3916_v39 }
 0x247   :  { %3034 = vmatpush.msk.msrb.mxu0 %vm2035_vm1, %v3916_v39  ;;  %2008 = vst [vmem:[#allocation3 + $0x50] sm:$0x3f] %v1993_v2  ;;  %v1875_v24 = vpop.permute.xlu0 %1874 }
 0x248   :  { %v1801_v59 = vpop.permute.xlu1 %1800  ;;  %3045 = vmatpush.msk.msrb.mxu2 %vm3924_vm3, %v3278_v49  ;;  %v1891_v62 = vsel %vm341_vm12, %v1873_v40, %v1875_v24  ;;  %v1892_v11 = vsel %vm341_vm12, %v1875_v24, %v1877_v1 }
 0x249   :  { %3035 = vmatpush.msk.msrb.mxu0 %vm3924_vm3, %v3278_v49  ;;  %v1817_v60 = vsel %vm117_vm7, %v1799_v41, %v1801_v59  ;;  %v1953_v17 = vpop.permute.xlu2 %1952 }
 0x24a   :  { %v1846_v61 = vadd.f32 %v3892_v29, %v1817_v60  ;;  %3046 = vmatpush.msk.msrb.mxu2 %vm3938_vm4, %v3278_v49  ;;  %v1965_v29 = vsel %vm397_vm11, %v1947_v48, %v1949_v56 }
 0x24b   :  { %3036 = vmatpush.msk.msrb.mxu0 %vm3938_vm4, %v3278_v49 }
 0x24c   :  { %v1920_v63 = vadd.f32 %v1891_v62, %v1846_v61  ;;  %3047 = vmatpush.msk.msrb.mxu2 %vm3947_vm5, %v3278_v49 }
 0x24d   :  { %3037 = vmatpush.msk.msrb.mxu0 %vm3947_vm5, %v3278_v49 }
 0x24e   :  { %v1994_v6 = vadd.f32 %v1965_v29, %v1920_v63  ;;  %v2623_v0 = vld [vmem:[#allocation3 + $0x50] sm:$0x3f] }
 0x24f   :  { %v2591_v45 = vld [vmem:[#allocation3 + $0x50] sm:$0x3f]  ;;  %2625 = vrot.lane.b32.xlu0 %v2623_v0, %s3273_s29  ;;  %v1803_v3 = vpop.permute.xlu0 %1802 }
 0x250   :  { %3018 = vmatmul.msk.f32.vlgmr.msra.gmra.mxu0 %vm2031_vm6, %v2591_v45  ;;  %2009 = vst [vmem:[#allocation3 + $0x58] sm:$0x3f] %v1994_v6  ;;  %v1805_v4 = vpop.permute.xlu1 %1804  ;;  %v1818_v7 = vsel %vm117_vm7, %v1801_v59, %v1803_v3 }
 0x251   :  { %3054 = vmatpush.msk.msra.mxu0 %vm2035_vm1, %v3916_v39  ;;  %v1819_v8 = vsel %vm117_vm7, %v1803_v3, %v1805_v4  ;;  %v1847_v10 = vadd.f32 %v3904_v23, %v1818_v7  ;;  %v1849_v16 = vadd.f32 %v3932_v36, %v1805_v4  ;;  %vm2012_vm7 = vcmask 742400  }
 0x252   :  { %v1848_v9 = vadd.f32 %v3922_v43, %v1819_v8 }
 0x253   :  { %3055 = vmatpush.msk.msra.mxu0 %vm3924_vm3, %v3278_v49  ;;  %v1921_v15 = vadd.f32 %v1892_v11, %v1847_v10 }
 0x255   :  { %3056 = vmatpush.msk.msra.mxu0 %vm3938_vm4, %v3278_v49 }
 0x257   :  { %3057 = vmatpush.msk.msra.mxu0 %vm3947_vm5, %v3278_v49  ;;  %v2685_v12 = vld [vmem:[#allocation3 + $0x58] sm:$0x3f]  ;;  %v1879_v46 = vpop.permute.xlu0 %1878 }
 0x258   :  { %v2655_v13 = vld [vmem:[#allocation3 + $0x58] sm:$0x3f]  ;;  %v1951_v14 = vpop.permute.xlu1 %1950  ;;  %2687 = vrot.lane.b32.xlu1 %v2685_v12, %s3273_s29  ;;  %v1893_v23 = vsel %vm341_vm12, %v1877_v1, %v1879_v46  ;;  %v1923_v36 = vadd.f32 %v1879_v46, %v1849_v16  ;;  %vm2121_vm12 = vcmask 341216  }
 0x259   :  { %3028 = vmatmul.msk.f32.vlgmr.msra.gmra.mxu2 %vm2031_vm6, %v2655_v13  ;;  %v1966_v19 = vsel %vm397_vm11, %v1949_v56, %v1951_v14  ;;  %v1922_v57 = vadd.f32 %v1893_v23, %v1848_v9  ;;  %v1967_v20 = vsel %vm397_vm11, %v1951_v14, %v1953_v17  ;;  %vm2091_vm11 = vcmask 226416  }
 0x25a   :  { %v1995_v18 = vadd.f32 %v1966_v19, %v1921_v15  ;;  %v1997_v43 = vadd.f32 %v1953_v17, %v1923_v36 }
 0x25b   :  { %v1996_v21 = vadd.f32 %v1967_v20, %v1922_v57 }
 0x25c   :  { %2010 = vst [vmem:[#allocation3 + $0x60] sm:$0x3f] %v1995_v18 }
 0x25d   :  { %2011 = vst [vmem:[#allocation3 + $0x68] sm:$0x3f] %v1996_v21 }
 0x25e   :  { %2013 = vst.msk [vmem:[#allocation3 + $0x70] sm:$0x3f] %vm2012_vm7, %v1997_v43  ;;  %vm2465_vm7 = vcmask 554416  }
 0x263   :  { %v2747_v27 = vld [vmem:[#allocation3 + $0x60] sm:$0x3f] }
 0x264   :  { %v2717_v28 = vld [vmem:[#allocation3 + $0x60] sm:$0x3f]  ;;  %2749 = vrot.lane.b32.xlu2 %v2747_v27, %s3273_s29  ;;  %v2809_v30 = vld [vmem:[#allocation3 + $0x68] sm:$0x3f] }
 0x265   :  { %3038 = vmatmul.msk.f32.vlgmr.msrb.gmra.mxu0 %vm2031_vm6, %v2717_v28  ;;  %v2779_v31 = vld [vmem:[#allocation3 + $0x68] sm:$0x3f]  ;;  %v2871_v32 = vld [vmem:[#allocation3 + $0x70] sm:$0x3f]  ;;  %2811 = vrot.lane.b32.xlu0 %v2809_v30, %s3273_s29 }
 0x266   :  { %3048 = vmatmul.msk.f32.vlgmr.msrb.gmra.mxu2 %vm2031_vm6, %v2779_v31  ;;  %2873 = vrot.lane.b32.xlu1 %v2871_v32, %s3273_s29  ;;  %v2841_v33 = vld [vmem:[#allocation3 + $0x70] sm:$0x3f]  ;;  %s3291_s29 = smov 98  }
 0x267   :  { %v2188_v35 = vpop.permute.xlu2 %2187 }
 0x26d   :  { %3058 = vmatmul.msk.f32.vlgmr.msra.gmra.mxu0 %vm2031_vm6, %v2841_v33 }
 0x26f   :  { %v2064_v34 = vpop.permute.xlu0 %2063 }
 0x270   :  { %2933 = vmatmul.msk.f32.vlgmr.msra.gmra.mxu3 %vm2031_vm6, %v2064_v34 }
 0x271   :  { %2969 = vmatpush.msk.msra.mxu3 %vm2035_vm1, %v3916_v39 }
 0x273   :  { %2970 = vmatpush.msk.msra.mxu3 %vm3924_vm3, %v3278_v49 }
 0x275   :  { %2971 = vmatpush.msk.msra.mxu3 %vm3938_vm4, %v3278_v49 }
 0x277   :  { %2972 = vmatpush.msk.msra.mxu3 %vm3947_vm5, %v3278_v49 }
 0x278   :  { %2953 = vmatmul.msk.f32.vlgmr.msrb.gmra.mxu3 %vm2031_vm6, %v2188_v35 }
 0x279   :  { %2989 = vmatpush.msk.msrb.mxu3 %vm2035_vm1, %v3916_v39 }
 0x27b   :  { %2990 = vmatpush.msk.msrb.mxu3 %vm3924_vm3, %v3278_v49 }
 0x27d   :  { %2991 = vmatpush.msk.msrb.mxu3 %vm3938_vm4, %v3278_v49 }
 0x27e   :  { %v2126_v58 = vpop.permute.xlu1 %2125 }
 0x27f   :  { %2943 = vmatmul.msk.f32.vlgmr.msra.gmra.mxu1 %vm2031_vm6, %v2126_v58  ;;  %2992 = vmatpush.msk.msrb.mxu3 %vm3947_vm5, %v3278_v49 }
 0x280   :  { %2979 = vmatpush.msk.msra.mxu1 %vm2035_vm1, %v3916_v39 }
 0x281   :  { %v2056_v25 = vpop.f32.mrf.mxu3 }
 0x282   :  { %2060 = vst.msk [vmem:[%s4475_s3] sm:$0x3f] %vm2059_vm8, %v2056_v25  ;;  %2980 = vmatpush.msk.msra.mxu1 %vm3924_vm3, %v3278_v49  ;;  %vm2495_vm8 = vcmask 669216  }
 0x284   :  { %2981 = vmatpush.msk.msra.mxu1 %vm3938_vm4, %v3278_v49 }
 0x286   :  { %2982 = vmatpush.msk.msra.mxu1 %vm3947_vm5, %v3278_v49  ;;  %v2376_v48 = vpop.permute.xlu2 %2375 }
 0x28a   :  { %v2114_v37 = vpop.f32.mrf.mxu0 }
 0x28b   :  { %2118 = vrot.lane.b32.xlu0 %v2114_v37, %s3258_s26  ;;  %s3280_s26 = smov 84  }
 0x28e   :  { %v2250_v38 = vpop.permute.xlu0 %2249 }
 0x28f   :  { %2963 = vmatmul.msk.f32.vlgmr.msrb.gmra.mxu1 %vm2031_vm6, %v2250_v38  ;;  %v2312_v40 = vpop.permute.xlu1 %2311 }
 0x290   :  { %2973 = vmatmul.msk.f32.vlgmr.msra.gmra.mxu3 %vm2031_vm6, %v2312_v40  ;;  %2999 = vmatpush.msk.msrb.mxu1 %vm2035_vm1, %v3916_v39 }
 0x291   :  { %v2176_v41 = vpop.f32.mrf.mxu2  ;;  %3009 = vmatpush.msk.msra.mxu3 %vm2035_vm1, %v3916_v39 }
 0x292   :  { %2180 = vrot.lane.b32.xlu2 %v2176_v41, %s3279_s17  ;;  %3000 = vmatpush.msk.msrb.mxu1 %vm3924_vm3, %v3278_v49 }
 0x293   :  { %3010 = vmatpush.msk.msra.mxu3 %vm3924_vm3, %v3278_v49 }
 0x294   :  { %3001 = vmatpush.msk.msrb.mxu1 %vm3938_vm4, %v3278_v49 }
 0x295   :  { %3011 = vmatpush.msk.msra.mxu3 %vm3938_vm4, %v3278_v49 }
 0x296   :  { %3002 = vmatpush.msk.msrb.mxu1 %vm3947_vm5, %v3278_v49 }
 0x297   :  { %2983 = vmatmul.msk.f32.vlgmr.msra.gmra.mxu1 %vm2031_vm6, %v2376_v48  ;;  %3012 = vmatpush.msk.msra.mxu3 %vm3947_vm5, %v3278_v49 }
 0x298   :  { %3019 = vmatpush.msk.msra.mxu1 %vm2035_vm1, %v3916_v39 }
 0x29a   :  { %v2238_v26 = vpop.f32.mrf.mxu0  ;;  %3020 = vmatpush.msk.msra.mxu1 %vm3924_vm3, %v3278_v49 }
 0x29b   :  { %2242 = vrot.lane.b32.xlu1 %v2238_v26, %s3280_s26 }
 0x29c   :  { %3021 = vmatpush.msk.msra.mxu1 %vm3938_vm4, %v3278_v49 }
 0x29e   :  { %3022 = vmatpush.msk.msra.mxu1 %vm3947_vm5, %v3278_v49  ;;  %v2562_v50 = vpop.permute.xlu2 %2561 }
 0x29f   :  { %v2438_v22 = vpop.permute.xlu0 %2437 }
 0x2a0   :  { %2993 = vmatmul.msk.f32.vlgmr.msrb.gmra.mxu3 %vm2031_vm6, %v2438_v22 }
 0x2a1   :  { %v2300_v5 = vpop.f32.mrf.mxu2  ;;  %3029 = vmatpush.msk.msrb.mxu3 %vm2035_vm1, %v3916_v39 }
 0x2a2   :  { %2304 = vrot.lane.b32.xlu0 %v2300_v5, %s3281_s18 }
 0x2a3   :  { %3030 = vmatpush.msk.msrb.mxu3 %vm3924_vm3, %v3278_v49 }
 0x2a5   :  { %3031 = vmatpush.msk.msrb.mxu3 %vm3938_vm4, %v3278_v49 }
 0x2a7   :  { %3032 = vmatpush.msk.msrb.mxu3 %vm3947_vm5, %v3278_v49 }
 0x2a8   :  { %3013 = vmatmul.msk.f32.vlgmr.msra.gmra.mxu3 %vm2031_vm6, %v2562_v50 }
 0x2a9   :  { %3049 = vmatpush.msk.msra.mxu3 %vm2035_vm1, %v3916_v39 }
 0x2aa   :  { %v2364_v51 = vpop.f32.mrf.mxu0 }
 0x2ab   :  { %2368 = vrot.lane.b32.xlu2 %v2364_v51, %s3282_s19  ;;  %3050 = vmatpush.msk.msra.mxu3 %vm3924_vm3, %v3278_v49 }
 0x2ad   :  { %3051 = vmatpush.msk.msra.mxu3 %vm3938_vm4, %v3278_v49 }
 0x2af   :  { %3052 = vmatpush.msk.msra.mxu3 %vm3947_vm5, %v3278_v49 }
 0x2b1   :  { %v2426_v53 = vpop.f32.mrf.mxu2 }
 0x2b2   :  { %2430 = vrot.lane.b32.xlu1 %v2426_v53, %s3283_s21 }
 0x2b7   :  { %v2500_v52 = vpop.permute.xlu1 %2499 }
 0x2b8   :  { %3003 = vmatmul.msk.f32.vlgmr.msrb.gmra.mxu1 %vm2031_vm6, %v2500_v52 }
 0x2b9   :  { %3039 = vmatpush.msk.msrb.mxu1 %vm2035_vm1, %v3916_v39 }
 0x2bb   :  { %3040 = vmatpush.msk.msrb.mxu1 %vm3924_vm3, %v3278_v49 }
 0x2bd   :  { %3041 = vmatpush.msk.msrb.mxu1 %vm3938_vm4, %v3278_v49 }
 0x2be   :  { %v2750_v2 = vpop.permute.xlu2 %2749 }
 0x2bf   :  { %3042 = vmatpush.msk.msrb.mxu1 %vm3947_vm5, %v3278_v49 }
 0x2c1   :  { %v2626_v54 = vpop.permute.xlu0 %2625 }
 0x2c2   :  { %3023 = vmatmul.msk.f32.vlgmr.msra.gmra.mxu1 %vm2031_vm6, %v2626_v54 }
 0x2c3   :  { %v2488_v55 = vpop.f32.mrf.mxu0  ;;  %3059 = vmatpush.msk.msra.mxu1 %vm2035_vm1, %v3916_v39  ;;  %vm2307_vm1 = vcmask 1030016  }
 0x2c4   :  { %2492 = vrot.lane.b32.xlu2 %v2488_v55, %s3284_s22 }
 0x2c5   :  { %3060 = vmatpush.msk.msra.mxu1 %vm3924_vm3, %v3278_v49  ;;  %vm2341_vm3 = vcmask 95232  }
 0x2c7   :  { %3061 = vmatpush.msk.msra.mxu1 %vm3938_vm4, %v3278_v49  ;;  %vm2371_vm4 = vcmask 210016  }
 0x2c8   :  { %v2550_v56 = vpop.f32.mrf.mxu2 }
 0x2c9   :  { %2554 = vrot.lane.b32.xlu0 %v2550_v56, %s3265_s20  ;;  %3062 = vmatpush.msk.msra.mxu1 %vm3947_vm5, %v3278_v49  ;;  %s3285_s20 = smov 24   ;;  %vm2403_vm5 = vcmask 324816  }
 0x2ca   :  { %v2688_v24 = vpop.permute.xlu1 %2687  ;;  %3043 = vmatmul.msk.f32.vlgmr.msrb.gmra.mxu1 %vm2031_vm6, %v2750_v2 }
 0x2cb   :  { %3033 = vmatmul.msk.f32.vlgmr.msrb.gmra.mxu3 %vm2031_vm6, %v2688_v24 }
 0x2cd   :  { %v2612_v39 = vpop.f32.mrf.mxu0 }
 0x2ce   :  { %2616 = vrot.lane.b32.xlu1 %v2612_v39, %s3260_s7  ;;  %s3289_s7 = smov 70  }
 0x2d7   :  { %v2812_v42 = vpop.permute.xlu0 %2811 }
 0x2d8   :  { %v2874_v59 = vpop.permute.xlu1 %2873  ;;  %3053 = vmatmul.msk.f32.vlgmr.msra.gmra.mxu3 %vm2031_vm6, %v2812_v42 }
 0x2d9   :  { %3063 = vmatmul.msk.f32.vlgmr.msra.gmra.mxu1 %vm2031_vm6, %v2874_v59  ;;  %vm2433_vm6 = vcmask 439616  }
 0x2dc   :  { %v2676_v44 = vpop.f32.mrf.mxu2 }
 0x2dd   :  { %2680 = vrot.lane.b32.xlu0 %v2676_v44, %s3285_s20 }
 0x2e2   :  { %v2738_v60 = vpop.f32.mrf.mxu0 }
 0x2e3   :  { %2742 = vrot.lane.b32.xlu1 %v2738_v60, %s3286_s23 }
 0x2e9   :  { %v2800_v49 = vpop.f32.mrf.mxu2 }
 0x2ea   :  { %2804 = vrot.lane.b32.xlu2 %v2800_v49, %s3287_s24  ;;  %v2862_v46 = vpop.f32.mrf.mxu0 }
 0x2ec   :  { %v2181_v45 = vpop.permute.xlu2 %2180 }
 0x2f3   :  { %v2084_v47 = vpop.f32.mrf.mxu3 }
 0x2f4   :  { %2088 = vrot.lane.b32.xlu2 %v2084_v47, %s3288_s27 }
 0x2fb   :  { %v2208_v61 = vpop.f32.mrf.mxu3 }
 0x2fc   :  { %v2146_v62 = vpop.f32.mrf.mxu1  ;;  %2212 = vrot.lane.b32.xlu0 %v2208_v61, %s3289_s7 }
 0x2fd   :  { %2150 = vrot.lane.b32.xlu1 %v2146_v62, %s3290_s28  ;;  %v2119_v15 = vpop.permute.xlu0 %2118 }
 0x305   :  { %v2369_v4 = vpop.permute.xlu2 %2368 }
 0x30c   :  { %v2270_v63 = vpop.f32.mrf.mxu1 }
 0x30d   :  { %2274 = vrot.lane.b32.xlu2 %v2270_v63, %s3291_s29  ;;  %v2243_v1 = vpop.permute.xlu1 %2242 }
 0x313   :  { %v2332_v29 = vpop.f32.mrf.mxu3 }
 0x314   :  { %v2396_v6 = vpop.f32.mrf.mxu1  ;;  %2336 = vrot.lane.b32.xlu1 %v2332_v29, %s3263_s14  ;;  %v2305_v23 = vpop.permute.xlu0 %2304 }
 0x315   :  { %2400 = vrot.lane.b32.xlu0 %v2396_v6, %s3292_s30 }
 0x31e   :  { %v4371_v8 = vpop.permute.xlu2 %2492 }
 0x323   :  { %v2458_v0 = vpop.f32.mrf.mxu3 }
 0x324   :  { %2462 = vrot.lane.b32.xlu0 %v2458_v0, %s3293_s4  ;;  %v2431_v7 = vpop.permute.xlu1 %2430 }
 0x32b   :  { %v2582_v11 = vpop.f32.mrf.mxu3 }
 0x335   :  { %v2520_v3 = vpop.f32.mrf.mxu1 }
 0x336   :  { %2524 = vrot.lane.b32.xlu1 %v2520_v3, %s3294_s5 }
 0x33b   :  { %v2555_v17 = vpop.permute.xlu0 %2554 }
 0x33f   :  { %v2646_v16 = vpop.f32.mrf.mxu1 }
 0x340   :  { %v4373_v10 = vpop.permute.xlu1 %2616  ;;  %2650 = vrot.lane.b32.xlu2 %v2646_v16, %s3295_s8 }
 0x341   :  { %2622 = vst.msk [vmem:[%s4475_s3 + $0x10] sm:$0x3f] %vm2621_vm9, %v4373_v10  ;;  %vm2653_vm9 = vcmask 193616  }
 0x344   :  { %v4379_v9 = vpop.permute.xlu2 %2804 }
 0x347   :  { %v2770_v12 = vpop.f32.mrf.mxu1 }
 0x348   :  { %2774 = vrot.lane.b32.xlu0 %v2770_v12, %s3296_s10 }
 0x34e   :  { %v2708_v13 = vpop.f32.mrf.mxu3  ;;  %v2089_v14 = vpop.permute.xlu2 %2088 }
 0x34f   :  { %2712 = vrot.lane.b32.xlu2 %v2708_v13, %s3297_s11  ;;  %2092 = vst.msk [vmem:[%s4475_s3] sm:$0x3f] %vm2091_vm11, %v2089_v14  ;;  %v2681_v20 = vpop.permute.xlu0 %2680  ;;  %vm2683_vm11 = vcmask 308416  }
 0x350   :  { %2866 = vrot.lane.b32.xlu0 %v2862_v46, %s3298_s0  ;;  %2122 = vst.msk [vmem:[%s4475_s3] sm:$0x3f] %vm2121_vm12, %v2119_v15  ;;  %vm2527_vm12 = vcmask 784016  }
 0x355   :  { %v2743_v57 = vpop.permute.xlu1 %2742 }
 0x356   :  { %v2894_v19 = vpop.f32.mrf.mxu1 }
 0x357   :  { %2586 = vrot.lane.b32.xlu2 %v2582_v11, %s3299_s16 }
 0x35b   :  { %v2832_v36 = vpop.f32.mrf.mxu3 }
 0x35c   :  { %2836 = vrot.lane.b32.xlu1 %v2832_v36, %s3270_s25 }
 0x364   :  { %2898 = vrot.lane.b32.xlu1 %v2894_v19, %s3300_s2 }
 0x367   :  { %v2275_v21 = vpop.permute.xlu2 %2274 }
 0x36e   :  { %v2213_v43 = vpop.permute.xlu0 %2212 }
 0x36f   :  { %v2151_v18 = vpop.permute.xlu1 %2150 }
 0x370   :  { %2154 = vst.msk [vmem:[%s4475_s3] sm:$0x3f] %vm2153_vm15, %v2151_v18  ;;  %vm2715_vm15 = vcmask 423216  }
 0x371   :  { %2184 = vst.msk [vmem:[%s4475_s3] sm:$0x3f] %vm2183_vm10, %v2181_v45  ;;  %vm2557_vm10 = vcmask 898816  }
 0x372   :  { %2216 = vst.msk [vmem:[%s4475_s3] sm:$0x3f] %vm2215_vm13, %v2213_v43  ;;  %vm2745_vm13 = vcmask 538016  }
 0x373   :  { %2246 = vst.msk [vmem:[%s4475_s3] sm:$0x3f] %vm2245_vm14, %v2243_v1  ;;  %vm2589_vm14 = vcmask 1013616  }
 0x374   :  { %2278 = vst.msk [vmem:[%s4475_s3] sm:$0x3f] %vm2277_vm0, %v2275_v21  ;;  %vm2619_vm0 = vcmask 1046496  }
 0x375   :  { %2308 = vst.msk [vmem:[%s4475_s3] sm:$0x3f] %vm2307_vm1, %v2305_v23  ;;  %vm2777_vm1 = vcmask 652816  }
 0x386   :  { %v2337_v27 = vpop.permute.xlu1 %2336 }
 0x387   :  { %2340 = vst.msk [vmem:[%s4475_s3] sm:$0x3f] %vm2339_vm2, %v2337_v27  ;;  %v2401_v28 = vpop.permute.xlu0 %2400  ;;  %vm2807_vm2 = vcmask 767616  }
 0x388   :  { %2342 = vst.msk [vmem:[%s4475_s3 + $0x8] sm:$0x3f] %vm2341_vm3, %v2337_v27  ;;  %vm2839_vm3 = vcmask 882416  }
 0x389   :  { %2372 = vst.msk [vmem:[%s4475_s3 + $0x8] sm:$0x3f] %vm2371_vm4, %v2369_v4  ;;  %vm2869_vm4 = vcmask 997216  }
 0x38a   :  { %2404 = vst.msk [vmem:[%s4475_s3 + $0x8] sm:$0x3f] %vm2403_vm5, %v2401_v28  ;;  %vm2901_vm5 = vcmask 1046480  }
 0x38b   :  { %2434 = vst.msk [vmem:[%s4475_s3 + $0x8] sm:$0x3f] %vm2433_vm6, %v2431_v7  ;;  %vm2903_vm6 = vcmask 62464  }
 0x396   :  { %v2463_v30 = vpop.permute.xlu0 %2462 }
 0x397   :  { %2466 = vst.msk [vmem:[%s4475_s3 + $0x8] sm:$0x3f] %vm2465_vm7, %v2463_v30 }
 0x398   :  { %2496 = vst.msk [vmem:[%s4475_s3 + $0x8] sm:$0x3f] %vm2495_vm8, %v4371_v8 }
 0x39a   :  { %v2651_v31 = vpop.permute.xlu2 %2650 }
 0x39b   :  { %2654 = vst.msk [vmem:[%s4475_s3 + $0x10] sm:$0x3f] %vm2653_vm9, %v2651_v31 }
 0x39c   :  { %2684 = vst.msk [vmem:[%s4475_s3 + $0x10] sm:$0x3f] %vm2683_vm11, %v2681_v20 }
 0x3a8   :  { %v2525_v32 = vpop.permute.xlu1 %2524 }
 0x3a9   :  { %2528 = vst.msk [vmem:[%s4475_s3 + $0x8] sm:$0x3f] %vm2527_vm12, %v2525_v32  ;;  %v2713_v33 = vpop.permute.xlu2 %2712 }
 0x3aa   :  { %2716 = vst.msk [vmem:[%s4475_s3 + $0x10] sm:$0x3f] %vm2715_vm15, %v2713_v33 }
 0x3ab   :  { %2558 = vst.msk [vmem:[%s4475_s3 + $0x8] sm:$0x3f] %vm2557_vm10, %v2555_v17 }
 0x3ac   :  { %2746 = vst.msk [vmem:[%s4475_s3 + $0x10] sm:$0x3f] %vm2745_vm13, %v2743_v57 }
 0x3b1   :  { %v2587_v34 = vpop.permute.xlu2 %2586 }
 0x3b2   :  { %2590 = vst.msk [vmem:[%s4475_s3 + $0x8] sm:$0x3f] %vm2589_vm14, %v2587_v34 }
 0x3b3   :  { %2620 = vst.msk [vmem:[%s4475_s3 + $0x8] sm:$0x3f] %vm2619_vm0, %v4373_v10 }
 0x3ba   :  { %v2775_v35 = vpop.permute.xlu0 %2774 }
 0x3bb   :  { %2778 = vst.msk [vmem:[%s4475_s3 + $0x10] sm:$0x3f] %vm2777_vm1, %v2775_v35 }
 0x3bc   :  { %2808 = vst.msk [vmem:[%s4475_s3 + $0x10] sm:$0x3f] %vm2807_vm2, %v4379_v9 }
 0x3c2   :  { %v2867_v25 = vpop.permute.xlu0 %2866 }
 0x3ce   :  { %v2837_v58 = vpop.permute.xlu1 %2836 }
 0x3cf   :  { %2840 = vst.msk [vmem:[%s4475_s3 + $0x10] sm:$0x3f] %vm2839_vm3, %v2837_v58 }
 0x3d0   :  { %2870 = vst.msk [vmem:[%s4475_s3 + $0x10] sm:$0x3f] %vm2869_vm4, %v2867_v25 }
 0x3d6   :  { %v2899_v37 = vpop.permute.xlu1 %2898 }
 0x3d7   :  { %2902 = vst.msk [vmem:[%s4475_s3 + $0x10] sm:$0x3f] %vm2901_vm5, %v2899_v37 }
 0x3d8   :  { %2904 = vst.msk [vmem:[%s4475_s3 + $0x18] sm:$0x3f] %vm2903_vm6, %v2899_v37 }

</bundles_post_ra>
